<compile_context>
chip_gen: v6e
topology: v6e:2x2x1
jax: 0.10.0
libtpu: 0.0.40
codegen_flags: <defaults>
</compile_context>

<pallas_src>
import math

import numpy as np

import jax
import jax.numpy as jnp
from jax.experimental import pallas as pl
from jax.experimental.pallas import tpu as pltpu

# ------------- hyperparameters consistent with the module ctor (small demo) -------------
NODE_FEATS = 32                 # node_feats
HIDDEN_FEATS = (32, 32, 32)     # hidden_feats (one entry per interaction layer)
PRED_HIDDEN = 32                # predictor_hidden_feats
N_TASKS = 1                     # n_tasks
NUM_NODE_TYPES = 16             # num_node_types
CUTOFF = 8.0                    # cutoff  (largest RBF center)
GAP = 0.25                      # gap
GAMMA = 1.0 / GAP
NUM_CENTERS = int(math.ceil((CUTOFF - 0.0) / GAP))   # RBFExpansion num_centers = 32
N_LAYERS = len(HIDDEN_FEATS)
LOG2 = math.log(2.0)


def _ceil_to(x, m):
    return ((int(x) + m - 1) // m) * m


def _ssp(x):
    """ShiftedSoftplus: softplus(x) - log(2), branch-free numerically stable form."""
    return jnp.maximum(x, 0.0) + jnp.log(1.0 + jnp.exp(-jnp.abs(x))) - LOG2


def schnet_graph_kernel(edge_d_ref, src_ref, dst_ref, valid_ref, node_emb_ref,
                        centers_ref,
                        we1_ref, be1_ref, we2_ref, be2_ref,
                        wn_ref, bn_ref, wc_ref, bc_ref, wo_ref, bo_ref,
                        wr1_ref, br1_ref, wr2_ref, br2_ref,
                        out_ref):
    """One grid step == one (padded) graph of the batch."""
    f32 = jnp.float32
    bf16 = jnp.bfloat16
    Vp = node_emb_ref.shape[0]

    # --- one-hot incidence masks, built on-chip from small iota broadcasts.
    # Padded edges carry src/dst == Vp -> all-zero rows/columns (no contribution).
    lane_ids = jax.lax.broadcasted_iota(jnp.int32, (1, Vp), 1)            # (1, Vp)
    sub_ids = jax.lax.broadcasted_iota(jnp.int32, (Vp, 1), 0)             # (Vp, 1)
    src_oh = jnp.where(src_ref[...] == lane_ids, 1.0, 0.0).astype(bf16)   # (Ep, Vp) gather
    dst_ohT = jnp.where(sub_ids == dst_ref[...], 1.0, 0.0).astype(bf16)   # (Vp, Ep) scatter

    # --- SchNetPotentialPredictor.forward: edge_dists = -0.75 / edge_dists
    #     (no eps guard, matching the PyTorch module; padded edges use dist = 1.0).
    d = -0.75 / edge_d_ref[...]                                           # (Ep, 1)

    # --- RBFExpansion: exp(-(1/gap) * (d - centers)^2)
    radial = d - centers_ref[...]                                         # (Ep, C)
    rbf = jnp.exp(-GAMMA * radial * radial)                               # (Ep, C)

    h = node_emb_ref[...]                                                 # (Vp, F)

    # --- SchNetGNN interaction layers (CFConv + project_out, no residual).
    for l in range(N_LAYERS):
        # CFConv.project_edge: Linear -> ssp -> Linear -> ssp (layer-major weights,
        # so no lane-misaligned 32-wide column slices).
        he = _ssp(jnp.dot(rbf, we1_ref[l], preferred_element_type=f32) + be1_ref[l])   # (Ep, H)
        he = _ssp(jnp.dot(he, we2_ref[l], preferred_element_type=f32) + be2_ref[l])    # (Ep, H)
        # CFConv.project_node
        hv = jnp.dot(h, wn_ref[l], preferred_element_type=f32) + bn_ref[l]             # (Vp, H)
        # update_all(u_mul_e, sum): m_e = hv[src(e)] * he_e ; sum messages into dst node.
        # Gather / scatter as bf16 one-hot matmuls (exact 0/1 masks, f32 accumulation).
        # TODO(synk): replace the src-side one-hot matmul with a true in-kernel row
        # gather (jnp.take / DMA gather) once dynamic sublane gather is dependable.
        msg = jnp.dot(src_oh, hv.astype(bf16), preferred_element_type=f32) * he        # (Ep, H)
        agg = jnp.dot(dst_ohT, msg.astype(bf16), preferred_element_type=f32)           # (Vp, H)
        # CFConv.project_out: Linear -> ssp
        cf = _ssp(jnp.dot(agg, wc_ref[l], preferred_element_type=f32) + bc_ref[l])     # (Vp, H)
        # Interaction.project_out: Linear (no activation)
        h = jnp.dot(cf, wo_ref[l], preferred_element_type=f32) + bo_ref[l]             # (Vp, F)

    # --- MLPNodeReadout: Linear -> ssp -> Linear -> per-graph sum, with the node sum
    #     commuted past the last Linear: sum_v(r1_v @ W + b) = (sum_v r1_v) @ W + n_g * b.
    r1 = _ssp(jnp.dot(h, wr1_ref[...], preferred_element_type=f32) + br1_ref[...])     # (Vp, P)
    valid = valid_ref[...]                                                             # (1, Vp)
    gsum = jnp.dot(valid, r1, preferred_element_type=f32)                              # (1, P)
    n_nodes = jnp.sum(valid, axis=1, keepdims=True)                                    # (1, 1)
    out_ref[...] = (jnp.dot(gsum, wr2_ref[...], preferred_element_type=f32)
                    + n_nodes * br2_ref[...])                                          # (1, T)


def schnet_potential_forward(params, node_types, edge_dists, src, dst,
                             graph_ids, num_graphs):
    """Host-side packing (block-diagonal batch -> padded per-graph tiles) + Pallas call."""
    F, H, C = NODE_FEATS, HIDDEN_FEATS[0], NUM_CENTERS
    P, T, L = PRED_HIDDEN, N_TASKS, N_LAYERS
    G = int(num_graphs)

    node_types_np = np.asarray(node_types, dtype=np.int64)
    dists_np = np.asarray(edge_dists, dtype=np.float32).reshape(-1)
    src_np = np.asarray(src, dtype=np.int64)
    dst_np = np.asarray(dst, dtype=np.int64)
    gid_np = np.asarray(graph_ids, dtype=np.int64)
    V, E = int(node_types_np.shape[0]), int(src_np.shape[0])
    edge_gid = gid_np[src_np]                                  # graph owning each edge

    # Pad per-graph node count to a lane multiple (mask lane axis / MXU-K axis) and the
    # per-graph edge count to a bf16-sublane multiple.
    node_counts = np.bincount(gid_np, minlength=G)
    edge_counts = np.bincount(edge_gid, minlength=G)
    Vp = max(128, _ceil_to(node_counts.max(), 128))
    Ep = max(16, _ceil_to(edge_counts.max(), 16))

    # Local (within-graph) indices for nodes and edges.
    node_local = np.zeros(V, np.int64)
    edge_local = np.zeros(E, np.int64)
    for g in range(G):
        nidx = np.flatnonzero(gid_np == g)
        node_local[nidx] = np.arange(nidx.size)
        eidx = np.flatnonzero(edge_gid == g)
        edge_local[eidx] = np.arange(eidx.size)

    # Per-graph packed inputs.  Padded edges get sentinel node index Vp (all-zero one-hot
    # row/column) and distance 1.0; padded nodes are excluded from the readout mask.
    embed_np = np.asarray(params["embed"], dtype=np.float32)
    node_emb_p = np.zeros((G, Vp, F), np.float32)
    node_emb_p[gid_np, node_local] = embed_np[node_types_np]
    valid_p = np.zeros((G, 1, Vp), np.float32)
    valid_p[gid_np, 0, node_local] = 1.0
    edge_d_p = np.ones((G, Ep, 1), np.float32)
    edge_d_p[edge_gid, edge_local, 0] = dists_np
    src_p = np.full((G, Ep, 1), Vp, np.int32)
    src_p[edge_gid, edge_local, 0] = node_local[src_np]
    dst_p = np.full((G, 1, Ep), Vp, np.int32)
    dst_p[edge_gid, 0, edge_local] = node_local[dst_np]
    centers = np.asarray(params["centers"], dtype=np.float32).reshape(1, C)

    per_graph = [jnp.asarray(edge_d_p), jnp.asarray(src_p), jnp.asarray(dst_p),
                 jnp.asarray(valid_p), jnp.asarray(node_emb_p)]
    shared = [jnp.asarray(centers),
              params["we1"], params["be1"], params["we2"], params["be2"],
              params["wn"], params["bn"], params["wc"], params["bc"],
              params["wo"], params["bo"],
              params["wr1"], params["br1"], params["wr2"], params["br2"]]

    def graph_spec(arr):
        # One graph per grid step; leading (graph) axis squeezed out of the kernel view.
        return pl.BlockSpec((None,) + tuple(arr.shape[1:]), lambda g: (g, 0, 0))

    def shared_spec(arr):
        if arr.ndim == 2:
            return pl.BlockSpec(tuple(arr.shape), lambda g: (0, 0))
        return pl.BlockSpec(tuple(arr.shape), lambda g: (0, 0, 0))

    in_specs = [graph_spec(a) for a in per_graph] + [shared_spec(a) for a in shared]
    out_specs = pl.BlockSpec((None, 1, T), lambda g: (g, 0, 0))

    # Generation-aware VMEM budget (v5e/v6e: 128 MiB physical, v7x: 64 MiB).
    try:
        vmem_cap = int(pltpu.get_tpu_info().vmem_capacity_bytes)
    except Exception:
        vmem_cap = 128 * 1024 * 1024
    step_in_bytes = (sum(int(np.prod(a.shape[1:])) * a.dtype.itemsize for a in per_graph)
                     + sum(int(a.size) * a.dtype.itemsize for a in shared))
    step_bytes = (2 * step_in_bytes                 # double-buffered input tiles
                  + 2 * Ep * Vp * 2                 # bf16 incidence masks
                  + 8 * Ep * Vp                     # mask-build compare/select temporaries
                  + 6 * Ep * max(C, H) * 4          # edge activations (rbf, he, msg)
                  + 8 * Vp * max(F, H) * 4)         # node activations (h, hv, agg, cf, r1)
    vmem_limit = int(min(0.80 * vmem_cap, max(32 * 1024 * 1024, 2 * step_bytes)))

    # Advisory cost estimate: compute-bound kernel with tiny HBM traffic.
    flops = G * (L * (4 * Ep * Vp * H            # gather + scatter one-hot matmuls
                      + 2 * Ep * C * H + 2 * Ep * H * H      # edge filter
                      + 2 * Vp * F * H + 2 * Vp * H * H + 2 * Vp * H * F)  # node linears
                 + 2 * Vp * F * P + 2 * Vp * P + 2 * P * T)  # readout
    transcendentals = G * (Ep * C + L * (4 * Ep * H + 2 * Vp * H) + 2 * Vp * P)
    bytes_accessed = (sum(int(a.size) * a.dtype.itemsize for a in per_graph + shared)
                      + G * T * 4)

    out = pl.pallas_call(
        schnet_graph_kernel,
        out_shape=jax.ShapeDtypeStruct((G, 1, T), jnp.float32),
        grid=(G,),
        in_specs=in_specs,
        out_specs=out_specs,
        compiler_params=pltpu.CompilerParams(
            dimension_semantics=("parallel",),     # megacore split over graphs (v7x)
            vmem_limit_bytes=vmem_limit),
        cost_estimate=pl.CostEstimate(flops=int(flops),
                                      transcendentals=int(transcendentals),
                                      bytes_accessed=int(bytes_accessed)),
    )(*per_graph, *shared)
    return out.reshape(G, T)


def init_params(key):
    keys = iter(jax.random.split(key, 64))

    def linear(fan_in, fan_out):
        bound = 1.0 / math.sqrt(fan_in)
        w = jax.random.uniform(next(keys), (fan_in, fan_out), jnp.float32, -bound, bound)
        b = jax.random.uniform(next(keys), (1, fan_out), jnp.float32, -bound, bound)
        return w, b

    H, F = HIDDEN_FEATS[0], NODE_FEATS
    we1, be1, we2, be2, wn, bn, wc, bc, wo, bo = ([] for _ in range(10))
    for _ in range(N_LAYERS):
        w, b = linear(NUM_CENTERS, H); we1.append(w); be1.append(b)   # CFConv.project_edge[0]
        w, b = linear(H, H);           we2.append(w); be2.append(b)   # CFConv.project_edge[2]
        w, b = linear(F, H);           wn.append(w);  bn.append(b)    # CFConv.project_node
        w, b = linear(H, H);           wc.append(w);  bc.append(b)    # CFConv.project_out
        w, b = linear(H, F);           wo.append(w);  bo.append(b)    # Interaction.project_out

    params = {
        "embed": 0.1 * jax.random.normal(next(keys), (NUM_NODE_TYPES, F), jnp.float32),
        # RBFExpansion centers: np.linspace(low, high, num_centers)
        "centers": jnp.linspace(0.0, CUTOFF, NUM_CENTERS, dtype=jnp.float32),
        "we1": jnp.stack(we1), "be1": jnp.stack(be1),
        "we2": jnp.stack(we2), "be2": jnp.stack(be2),
        "wn": jnp.stack(wn),   "bn": jnp.stack(bn),
        "wc": jnp.stack(wc),   "bc": jnp.stack(bc),
        "wo": jnp.stack(wo),   "bo": jnp.stack(bo),
    }
    w, b = linear(F, PRED_HIDDEN);       params["wr1"] = w; params["br1"] = b  # readout.in_project
    w, b = linear(PRED_HIDDEN, N_TASKS); params["wr2"] = w; params["br2"] = b  # readout.out_project
    return params


if __name__ == "__main__":
    key = jax.random.PRNGKey(0)
    kp, kt, kd = jax.random.split(key, 3)
    params = init_params(kp)

    # Synthetic batched graph: 2 ring graphs of 8 nodes each (V=16, E=32, G=2).
    nodes_per_graph, num_graphs = 8, 2
    V = nodes_per_graph * num_graphs
    src_list, dst_list, graph_list = [], [], []
    for g in range(num_graphs):
        base = g * nodes_per_graph
        for i in range(nodes_per_graph):
            u, v = base + i, base + (i + 1) % nodes_per_graph
            src_list += [u, v]
            dst_list += [v, u]
        graph_list += [g] * nodes_per_graph
    src = jnp.asarray(src_list, dtype=jnp.int32)
    dst = jnp.asarray(dst_list, dtype=jnp.int32)
    graph_ids = jnp.asarray(graph_list, dtype=jnp.int32)
    E = int(src.shape[0])

    node_types = jax.random.randint(kt, (V,), 0, NUM_NODE_TYPES)          # int node types (V,)
    edge_dists = jax.random.uniform(kd, (E, 1), jnp.float32, 0.5, 3.0)    # distances (E, 1)

    out = schnet_potential_forward(params, node_types, edge_dists, src, dst,
                                   graph_ids, num_graphs)
    out = jax.block_until_ready(out)
    assert out.shape == (num_graphs, N_TASKS)
    assert bool(jnp.all(jnp.isfinite(out)))
    print("KERNEL_OK")
</pallas_src>

<mosaic_0001>
module attributes {stable_mosaic.version = 11 : i64} {
  func.func @schnet_graph_kernel(%arg0: i32, %arg1: memref<1x16x1xf32, #tpu.memory_space<vmem>>, %arg2: memref<1x16x1xi32, #tpu.memory_space<vmem>>, %arg3: memref<1x1x16xi32, #tpu.memory_space<vmem>>, %arg4: memref<1x1x128xf32, #tpu.memory_space<vmem>>, %arg5: memref<1x128x32xf32, #tpu.memory_space<vmem>>, %arg6: memref<1x32xf32, #tpu.memory_space<vmem>>, %arg7: memref<3x32x32xf32, #tpu.memory_space<vmem>>, %arg8: memref<3x1x32xf32, #tpu.memory_space<vmem>>, %arg9: memref<3x32x32xf32, #tpu.memory_space<vmem>>, %arg10: memref<3x1x32xf32, #tpu.memory_space<vmem>>, %arg11: memref<3x32x32xf32, #tpu.memory_space<vmem>>, %arg12: memref<3x1x32xf32, #tpu.memory_space<vmem>>, %arg13: memref<3x32x32xf32, #tpu.memory_space<vmem>>, %arg14: memref<3x1x32xf32, #tpu.memory_space<vmem>>, %arg15: memref<3x32x32xf32, #tpu.memory_space<vmem>>, %arg16: memref<3x1x32xf32, #tpu.memory_space<vmem>>, %arg17: memref<32x32xf32, #tpu.memory_space<vmem>>, %arg18: memref<1x32xf32, #tpu.memory_space<vmem>>, %arg19: memref<32x1xf32, #tpu.memory_space<vmem>>, %arg20: memref<1x1xf32, #tpu.memory_space<vmem>>, %arg21: memref<1x1x1xf32, #tpu.memory_space<vmem>>) attributes {dimension_semantics = [#tpu.dimension_semantics<parallel>], iteration_bounds = array<i64: 2>, scalar_prefetch = 0 : i64, scratch_operands = 0 : i64, tpu.core_type = #tpu.core_type<tc>, window_params = [{transform_indices = @transform_0, window_bounds = array<i64: 1, 16, 1>}, {transform_indices = @transform_1, window_bounds = array<i64: 1, 16, 1>}, {transform_indices = @transform_2, window_bounds = array<i64: 1, 1, 16>}, {transform_indices = @transform_3, window_bounds = array<i64: 1, 1, 128>}, {transform_indices = @transform_4, window_bounds = array<i64: 1, 128, 32>}, {pipeline_mode = #tpu.pipeline_mode<synchronous>, transform_indices = @transform_5, window_bounds = array<i64: 1, 32>}, {pipeline_mode = #tpu.pipeline_mode<synchronous>, transform_indices = @transform_6, window_bounds = array<i64: 3, 32, 32>}, {pipeline_mode = #tpu.pipeline_mode<synchronous>, transform_indices = @transform_7, window_bounds = array<i64: 3, 1, 32>}, {pipeline_mode = #tpu.pipeline_mode<synchronous>, transform_indices = @transform_8, window_bounds = array<i64: 3, 32, 32>}, {pipeline_mode = #tpu.pipeline_mode<synchronous>, transform_indices = @transform_9, window_bounds = array<i64: 3, 1, 32>}, {pipeline_mode = #tpu.pipeline_mode<synchronous>, transform_indices = @transform_10, window_bounds = array<i64: 3, 32, 32>}, {pipeline_mode = #tpu.pipeline_mode<synchronous>, transform_indices = @transform_11, window_bounds = array<i64: 3, 1, 32>}, {pipeline_mode = #tpu.pipeline_mode<synchronous>, transform_indices = @transform_12, window_bounds = array<i64: 3, 32, 32>}, {pipeline_mode = #tpu.pipeline_mode<synchronous>, transform_indices = @transform_13, window_bounds = array<i64: 3, 1, 32>}, {pipeline_mode = #tpu.pipeline_mode<synchronous>, transform_indices = @transform_14, window_bounds = array<i64: 3, 32, 32>}, {pipeline_mode = #tpu.pipeline_mode<synchronous>, transform_indices = @transform_15, window_bounds = array<i64: 3, 1, 32>}, {pipeline_mode = #tpu.pipeline_mode<synchronous>, transform_indices = @transform_16, window_bounds = array<i64: 32, 32>}, {pipeline_mode = #tpu.pipeline_mode<synchronous>, transform_indices = @transform_17, window_bounds = array<i64: 1, 32>}, {pipeline_mode = #tpu.pipeline_mode<synchronous>, transform_indices = @transform_18, window_bounds = array<i64: 32, 1>}, {pipeline_mode = #tpu.pipeline_mode<synchronous>, transform_indices = @transform_19, window_bounds = array<i64: 1, 1>}, {transform_indices = @transform_20, window_bounds = array<i64: 1, 1, 1>}]} {
    %0 = tpu.iota {dimensions = array<i32: 1>} : vector<1x128xi32>
    %1 = tpu.iota {dimensions = array<i32: 0>} : vector<128x1xi32>
    %c0 = arith.constant 0 : index
    %c0_0 = arith.constant 0 : index
    %c0_1 = arith.constant 0 : index
    %2 = vector.load %arg2[%c0, %c0_0, %c0_1] : memref<1x16x1xi32, #tpu.memory_space<vmem>>, vector<1x16x1xi32>
    %3 = vector.shape_cast %2 : vector<1x16x1xi32> to vector<16x1xi32>
    %4 = vector.broadcast %3 : vector<16x1xi32> to vector<16x128xi32>
    %5 = vector.broadcast %0 : vector<1x128xi32> to vector<16x128xi32>
    %6 = arith.cmpi eq, %4, %5 : vector<16x128xi32>
    %cst = arith.constant 1.000000e+00 : f32
    %cst_2 = arith.constant 0.000000e+00 : f32
    %7 = vector.broadcast %cst : f32 to vector<16x128xf32>
    %8 = vector.broadcast %cst_2 : f32 to vector<16x128xf32>
    %9 = arith.select %6, %7, %8 : vector<16x128xi1>, vector<16x128xf32>
    %10 = arith.truncf %9 : vector<16x128xf32> to vector<16x128xbf16>
    %c0_3 = arith.constant 0 : index
    %c0_4 = arith.constant 0 : index
    %c0_5 = arith.constant 0 : index
    %11 = vector.load %arg3[%c0_3, %c0_4, %c0_5] : memref<1x1x16xi32, #tpu.memory_space<vmem>>, vector<1x1x16xi32>
    %12 = vector.shape_cast %11 : vector<1x1x16xi32> to vector<1x16xi32>
    %13 = vector.broadcast %1 : vector<128x1xi32> to vector<128x16xi32>
    %14 = vector.broadcast %12 : vector<1x16xi32> to vector<128x16xi32>
    %15 = arith.cmpi eq, %13, %14 : vector<128x16xi32>
    %cst_6 = arith.constant 1.000000e+00 : f32
    %cst_7 = arith.constant 0.000000e+00 : f32
    %16 = vector.broadcast %cst_6 : f32 to vector<128x16xf32>
    %17 = vector.broadcast %cst_7 : f32 to vector<128x16xf32>
    %18 = arith.select %15, %16, %17 : vector<128x16xi1>, vector<128x16xf32>
    %19 = arith.truncf %18 : vector<128x16xf32> to vector<128x16xbf16>
    %c0_8 = arith.constant 0 : index
    %c0_9 = arith.constant 0 : index
    %c0_10 = arith.constant 0 : index
    %20 = vector.load %arg1[%c0_8, %c0_9, %c0_10] : memref<1x16x1xf32, #tpu.memory_space<vmem>>, vector<1x16x1xf32>
    %21 = vector.shape_cast %20 : vector<1x16x1xf32> to vector<16x1xf32>
    %cst_11 = arith.constant -7.500000e-01 : f32
    %22 = vector.broadcast %cst_11 : f32 to vector<16x1xf32>
    %23 = arith.divf %22, %21 : vector<16x1xf32>
    %c0_12 = arith.constant 0 : index
    %c0_13 = arith.constant 0 : index
    %24 = vector.load %arg6[%c0_12, %c0_13] : memref<1x32xf32, #tpu.memory_space<vmem>>, vector<1x32xf32>
    %25 = vector.broadcast %23 : vector<16x1xf32> to vector<16x32xf32>
    %26 = vector.broadcast %24 : vector<1x32xf32> to vector<16x32xf32>
    %27 = arith.subf %25, %26 : vector<16x32xf32>
    %cst_14 = arith.constant -4.000000e+00 : f32
    %28 = vector.broadcast %cst_14 : f32 to vector<16x32xf32>
    %29 = arith.mulf %28, %27 : vector<16x32xf32>
    %30 = arith.mulf %29, %27 : vector<16x32xf32>
    %31 = math.exp %30 : vector<16x32xf32>
    %c0_15 = arith.constant 0 : index
    %c0_16 = arith.constant 0 : index
    %c0_17 = arith.constant 0 : index
    %32 = vector.load %arg5[%c0_15, %c0_16, %c0_17] : memref<1x128x32xf32, #tpu.memory_space<vmem>>, vector<1x128x32xf32>
    %33 = vector.shape_cast %32 : vector<1x128x32xf32> to vector<128x32xf32>
    %c0_18 = arith.constant 0 : index
    %c0_19 = arith.constant 0 : index
    %c0_20 = arith.constant 0 : index
    %34 = vector.load %arg7[%c0_18, %c0_19, %c0_20] : memref<3x32x32xf32, #tpu.memory_space<vmem>>, vector<1x32x32xf32>
    %35 = vector.shape_cast %34 : vector<1x32x32xf32> to vector<32x32xf32>
    %cst_21 = arith.constant dense<0.000000e+00> : vector<16x32xf32>
    %36 = tpu.matmul %31, %35, %cst_21 {dimension_numbers = #tpu.dot_dimension_numbers<[1], [0], [0], [1], [0, 0, 1, 1], [], []>} : vector<16x32xf32>, vector<32x32xf32>, vector<16x32xf32> -> vector<16x32xf32>
    %c0_22 = arith.constant 0 : index
    %c0_23 = arith.constant 0 : index
    %c0_24 = arith.constant 0 : index
    %37 = vector.load %arg8[%c0_22, %c0_23, %c0_24] : memref<3x1x32xf32, #tpu.memory_space<vmem>>, vector<1x1x32xf32>
    %38 = vector.shape_cast %37 : vector<1x1x32xf32> to vector<1x32xf32>
    %39 = vector.broadcast %38 : vector<1x32xf32> to vector<16x32xf32>
    %40 = arith.addf %36, %39 : vector<16x32xf32>
    %cst_25 = arith.constant 0.000000e+00 : f32
    %41 = vector.broadcast %cst_25 : f32 to vector<16x32xf32>
    %42 = arith.maximumf %40, %41 : vector<16x32xf32>
    %43 = math.absf %40 : vector<16x32xf32>
    %cst_26 = arith.constant 0.000000e+00 : f32
    %44 = vector.broadcast %cst_26 : f32 to vector<16x32xf32>
    %45 = arith.subf %44, %43 : vector<16x32xf32>
    %46 = math.exp %45 : vector<16x32xf32>
    %cst_27 = arith.constant 1.000000e+00 : f32
    %47 = vector.broadcast %cst_27 : f32 to vector<16x32xf32>
    %48 = arith.addf %47, %46 : vector<16x32xf32>
    %49 = math.log %48 : vector<16x32xf32>
    %50 = arith.addf %42, %49 : vector<16x32xf32>
    %cst_28 = arith.constant 0.693147182 : f32
    %51 = vector.broadcast %cst_28 : f32 to vector<16x32xf32>
    %52 = arith.subf %50, %51 : vector<16x32xf32>
    %c0_29 = arith.constant 0 : index
    %c0_30 = arith.constant 0 : index
    %c0_31 = arith.constant 0 : index
    %53 = vector.load %arg9[%c0_29, %c0_30, %c0_31] : memref<3x32x32xf32, #tpu.memory_space<vmem>>, vector<1x32x32xf32>
    %54 = vector.shape_cast %53 : vector<1x32x32xf32> to vector<32x32xf32>
    %cst_32 = arith.constant dense<0.000000e+00> : vector<16x32xf32>
    %55 = tpu.matmul %52, %54, %cst_32 {dimension_numbers = #tpu.dot_dimension_numbers<[1], [0], [0], [1], [0, 0, 1, 1], [], []>} : vector<16x32xf32>, vector<32x32xf32>, vector<16x32xf32> -> vector<16x32xf32>
    %c0_33 = arith.constant 0 : index
    %c0_34 = arith.constant 0 : index
    %c0_35 = arith.constant 0 : index
    %56 = vector.load %arg10[%c0_33, %c0_34, %c0_35] : memref<3x1x32xf32, #tpu.memory_space<vmem>>, vector<1x1x32xf32>
    %57 = vector.shape_cast %56 : vector<1x1x32xf32> to vector<1x32xf32>
    %58 = vector.broadcast %57 : vector<1x32xf32> to vector<16x32xf32>
    %59 = arith.addf %55, %58 : vector<16x32xf32>
    %cst_36 = arith.constant 0.000000e+00 : f32
    %60 = vector.broadcast %cst_36 : f32 to vector<16x32xf32>
    %61 = arith.maximumf %59, %60 : vector<16x32xf32>
    %62 = math.absf %59 : vector<16x32xf32>
    %cst_37 = arith.constant 0.000000e+00 : f32
    %63 = vector.broadcast %cst_37 : f32 to vector<16x32xf32>
    %64 = arith.subf %63, %62 : vector<16x32xf32>
    %65 = math.exp %64 : vector<16x32xf32>
    %cst_38 = arith.constant 1.000000e+00 : f32
    %66 = vector.broadcast %cst_38 : f32 to vector<16x32xf32>
    %67 = arith.addf %66, %65 : vector<16x32xf32>
    %68 = math.log %67 : vector<16x32xf32>
    %69 = arith.addf %61, %68 : vector<16x32xf32>
    %cst_39 = arith.constant 0.693147182 : f32
    %70 = vector.broadcast %cst_39 : f32 to vector<16x32xf32>
    %71 = arith.subf %69, %70 : vector<16x32xf32>
    %c0_40 = arith.constant 0 : index
    %c0_41 = arith.constant 0 : index
    %c0_42 = arith.constant 0 : index
    %72 = vector.load %arg11[%c0_40, %c0_41, %c0_42] : memref<3x32x32xf32, #tpu.memory_space<vmem>>, vector<1x32x32xf32>
    %73 = vector.shape_cast %72 : vector<1x32x32xf32> to vector<32x32xf32>
    %cst_43 = arith.constant dense<0.000000e+00> : vector<128x32xf32>
    %74 = tpu.matmul %33, %73, %cst_43 {dimension_numbers = #tpu.dot_dimension_numbers<[1], [0], [0], [1], [0, 0, 1, 1], [], []>} : vector<128x32xf32>, vector<32x32xf32>, vector<128x32xf32> -> vector<128x32xf32>
    %c0_44 = arith.constant 0 : index
    %c0_45 = arith.constant 0 : index
    %c0_46 = arith.constant 0 : index
    %75 = vector.load %arg12[%c0_44, %c0_45, %c0_46] : memref<3x1x32xf32, #tpu.memory_space<vmem>>, vector<1x1x32xf32>
    %76 = vector.shape_cast %75 : vector<1x1x32xf32> to vector<1x32xf32>
    %77 = vector.broadcast %76 : vector<1x32xf32> to vector<128x32xf32>
    %78 = arith.addf %74, %77 : vector<128x32xf32>
    %79 = arith.truncf %78 : vector<128x32xf32> to vector<128x32xbf16>
    %cst_47 = arith.constant dense<0.000000e+00> : vector<16x32xf32>
    %80 = tpu.matmul %10, %79, %cst_47 {dimension_numbers = #tpu.dot_dimension_numbers<[1], [0], [0], [1], [0, 0, 1, 1], [], []>} : vector<16x128xbf16>, vector<128x32xbf16>, vector<16x32xf32> -> vector<16x32xf32>
    %81 = arith.mulf %80, %71 : vector<16x32xf32>
    %82 = arith.truncf %81 : vector<16x32xf32> to vector<16x32xbf16>
    %cst_48 = arith.constant dense<0.000000e+00> : vector<128x32xf32>
    %83 = tpu.matmul %19, %82, %cst_48 {dimension_numbers = #tpu.dot_dimension_numbers<[1], [0], [0], [1], [0, 0, 1, 1], [], []>} : vector<128x16xbf16>, vector<16x32xbf16>, vector<128x32xf32> -> vector<128x32xf32>
    %c0_49 = arith.constant 0 : index
    %c0_50 = arith.constant 0 : index
    %c0_51 = arith.constant 0 : index
    %84 = vector.load %arg13[%c0_49, %c0_50, %c0_51] : memref<3x32x32xf32, #tpu.memory_space<vmem>>, vector<1x32x32xf32>
    %85 = vector.shape_cast %84 : vector<1x32x32xf32> to vector<32x32xf32>
    %cst_52 = arith.constant dense<0.000000e+00> : vector<128x32xf32>
    %86 = tpu.matmul %83, %85, %cst_52 {dimension_numbers = #tpu.dot_dimension_numbers<[1], [0], [0], [1], [0, 0, 1, 1], [], []>} : vector<128x32xf32>, vector<32x32xf32>, vector<128x32xf32> -> vector<128x32xf32>
    %c0_53 = arith.constant 0 : index
    %c0_54 = arith.constant 0 : index
    %c0_55 = arith.constant 0 : index
    %87 = vector.load %arg14[%c0_53, %c0_54, %c0_55] : memref<3x1x32xf32, #tpu.memory_space<vmem>>, vector<1x1x32xf32>
    %88 = vector.shape_cast %87 : vector<1x1x32xf32> to vector<1x32xf32>
    %89 = vector.broadcast %88 : vector<1x32xf32> to vector<128x32xf32>
    %90 = arith.addf %86, %89 : vector<128x32xf32>
    %cst_56 = arith.constant 0.000000e+00 : f32
    %91 = vector.broadcast %cst_56 : f32 to vector<128x32xf32>
    %92 = arith.maximumf %90, %91 : vector<128x32xf32>
    %93 = math.absf %90 : vector<128x32xf32>
    %cst_57 = arith.constant 0.000000e+00 : f32
    %94 = vector.broadcast %cst_57 : f32 to vector<128x32xf32>
    %95 = arith.subf %94, %93 : vector<128x32xf32>
    %96 = math.exp %95 : vector<128x32xf32>
    %cst_58 = arith.constant 1.000000e+00 : f32
    %97 = vector.broadcast %cst_58 : f32 to vector<128x32xf32>
    %98 = arith.addf %97, %96 : vector<128x32xf32>
    %99 = math.log %98 : vector<128x32xf32>
    %100 = arith.addf %92, %99 : vector<128x32xf32>
    %cst_59 = arith.constant 0.693147182 : f32
    %101 = vector.broadcast %cst_59 : f32 to vector<128x32xf32>
    %102 = arith.subf %100, %101 : vector<128x32xf32>
    %c0_60 = arith.constant 0 : index
    %c0_61 = arith.constant 0 : index
    %c0_62 = arith.constant 0 : index
    %103 = vector.load %arg15[%c0_60, %c0_61, %c0_62] : memref<3x32x32xf32, #tpu.memory_space<vmem>>, vector<1x32x32xf32>
    %104 = vector.shape_cast %103 : vector<1x32x32xf32> to vector<32x32xf32>
    %cst_63 = arith.constant dense<0.000000e+00> : vector<128x32xf32>
    %105 = tpu.matmul %102, %104, %cst_63 {dimension_numbers = #tpu.dot_dimension_numbers<[1], [0], [0], [1], [0, 0, 1, 1], [], []>} : vector<128x32xf32>, vector<32x32xf32>, vector<128x32xf32> -> vector<128x32xf32>
    %c0_64 = arith.constant 0 : index
    %c0_65 = arith.constant 0 : index
    %c0_66 = arith.constant 0 : index
    %106 = vector.load %arg16[%c0_64, %c0_65, %c0_66] : memref<3x1x32xf32, #tpu.memory_space<vmem>>, vector<1x1x32xf32>
    %107 = vector.shape_cast %106 : vector<1x1x32xf32> to vector<1x32xf32>
    %108 = vector.broadcast %107 : vector<1x32xf32> to vector<128x32xf32>
    %109 = arith.addf %105, %108 : vector<128x32xf32>
    %c1 = arith.constant 1 : index
    %c0_67 = arith.constant 0 : index
    %c0_68 = arith.constant 0 : index
    %110 = vector.load %arg7[%c1, %c0_67, %c0_68] : memref<3x32x32xf32, #tpu.memory_space<vmem>>, vector<1x32x32xf32>
    %111 = vector.shape_cast %110 : vector<1x32x32xf32> to vector<32x32xf32>
    %cst_69 = arith.constant dense<0.000000e+00> : vector<16x32xf32>
    %112 = tpu.matmul %31, %111, %cst_69 {dimension_numbers = #tpu.dot_dimension_numbers<[1], [0], [0], [1], [0, 0, 1, 1], [], []>} : vector<16x32xf32>, vector<32x32xf32>, vector<16x32xf32> -> vector<16x32xf32>
    %c1_70 = arith.constant 1 : index
    %c0_71 = arith.constant 0 : index
    %c0_72 = arith.constant 0 : index
    %113 = vector.load %arg8[%c1_70, %c0_71, %c0_72] : memref<3x1x32xf32, #tpu.memory_space<vmem>>, vector<1x1x32xf32>
    %114 = vector.shape_cast %113 : vector<1x1x32xf32> to vector<1x32xf32>
    %115 = vector.broadcast %114 : vector<1x32xf32> to vector<16x32xf32>
    %116 = arith.addf %112, %115 : vector<16x32xf32>
    %cst_73 = arith.constant 0.000000e+00 : f32
    %117 = vector.broadcast %cst_73 : f32 to vector<16x32xf32>
    %118 = arith.maximumf %116, %117 : vector<16x32xf32>
    %119 = math.absf %116 : vector<16x32xf32>
    %cst_74 = arith.constant 0.000000e+00 : f32
    %120 = vector.broadcast %cst_74 : f32 to vector<16x32xf32>
    %121 = arith.subf %120, %119 : vector<16x32xf32>
    %122 = math.exp %121 : vector<16x32xf32>
    %cst_75 = arith.constant 1.000000e+00 : f32
    %123 = vector.broadcast %cst_75 : f32 to vector<16x32xf32>
    %124 = arith.addf %123, %122 : vector<16x32xf32>
    %125 = math.log %124 : vector<16x32xf32>
    %126 = arith.addf %118, %125 : vector<16x32xf32>
    %cst_76 = arith.constant 0.693147182 : f32
    %127 = vector.broadcast %cst_76 : f32 to vector<16x32xf32>
    %128 = arith.subf %126, %127 : vector<16x32xf32>
    %c1_77 = arith.constant 1 : index
    %c0_78 = arith.constant 0 : index
    %c0_79 = arith.constant 0 : index
    %129 = vector.load %arg9[%c1_77, %c0_78, %c0_79] : memref<3x32x32xf32, #tpu.memory_space<vmem>>, vector<1x32x32xf32>
    %130 = vector.shape_cast %129 : vector<1x32x32xf32> to vector<32x32xf32>
    %cst_80 = arith.constant dense<0.000000e+00> : vector<16x32xf32>
    %131 = tpu.matmul %128, %130, %cst_80 {dimension_numbers = #tpu.dot_dimension_numbers<[1], [0], [0], [1], [0, 0, 1, 1], [], []>} : vector<16x32xf32>, vector<32x32xf32>, vector<16x32xf32> -> vector<16x32xf32>
    %c1_81 = arith.constant 1 : index
    %c0_82 = arith.constant 0 : index
    %c0_83 = arith.constant 0 : index
    %132 = vector.load %arg10[%c1_81, %c0_82, %c0_83] : memref<3x1x32xf32, #tpu.memory_space<vmem>>, vector<1x1x32xf32>
    %133 = vector.shape_cast %132 : vector<1x1x32xf32> to vector<1x32xf32>
    %134 = vector.broadcast %133 : vector<1x32xf32> to vector<16x32xf32>
    %135 = arith.addf %131, %134 : vector<16x32xf32>
    %cst_84 = arith.constant 0.000000e+00 : f32
    %136 = vector.broadcast %cst_84 : f32 to vector<16x32xf32>
    %137 = arith.maximumf %135, %136 : vector<16x32xf32>
    %138 = math.absf %135 : vector<16x32xf32>
    %cst_85 = arith.constant 0.000000e+00 : f32
    %139 = vector.broadcast %cst_85 : f32 to vector<16x32xf32>
    %140 = arith.subf %139, %138 : vector<16x32xf32>
    %141 = math.exp %140 : vector<16x32xf32>
    %cst_86 = arith.constant 1.000000e+00 : f32
    %142 = vector.broadcast %cst_86 : f32 to vector<16x32xf32>
    %143 = arith.addf %142, %141 : vector<16x32xf32>
    %144 = math.log %143 : vector<16x32xf32>
    %145 = arith.addf %137, %144 : vector<16x32xf32>
    %cst_87 = arith.constant 0.693147182 : f32
    %146 = vector.broadcast %cst_87 : f32 to vector<16x32xf32>
    %147 = arith.subf %145, %146 : vector<16x32xf32>
    %c1_88 = arith.constant 1 : index
    %c0_89 = arith.constant 0 : index
    %c0_90 = arith.constant 0 : index
    %148 = vector.load %arg11[%c1_88, %c0_89, %c0_90] : memref<3x32x32xf32, #tpu.memory_space<vmem>>, vector<1x32x32xf32>
    %149 = vector.shape_cast %148 : vector<1x32x32xf32> to vector<32x32xf32>
    %cst_91 = arith.constant dense<0.000000e+00> : vector<128x32xf32>
    %150 = tpu.matmul %109, %149, %cst_91 {dimension_numbers = #tpu.dot_dimension_numbers<[1], [0], [0], [1], [0, 0, 1, 1], [], []>} : vector<128x32xf32>, vector<32x32xf32>, vector<128x32xf32> -> vector<128x32xf32>
    %c1_92 = arith.constant 1 : index
    %c0_93 = arith.constant 0 : index
    %c0_94 = arith.constant 0 : index
    %151 = vector.load %arg12[%c1_92, %c0_93, %c0_94] : memref<3x1x32xf32, #tpu.memory_space<vmem>>, vector<1x1x32xf32>
    %152 = vector.shape_cast %151 : vector<1x1x32xf32> to vector<1x32xf32>
    %153 = vector.broadcast %152 : vector<1x32xf32> to vector<128x32xf32>
    %154 = arith.addf %150, %153 : vector<128x32xf32>
    %155 = arith.truncf %154 : vector<128x32xf32> to vector<128x32xbf16>
    %cst_95 = arith.constant dense<0.000000e+00> : vector<16x32xf32>
    %156 = tpu.matmul %10, %155, %cst_95 {dimension_numbers = #tpu.dot_dimension_numbers<[1], [0], [0], [1], [0, 0, 1, 1], [], []>} : vector<16x128xbf16>, vector<128x32xbf16>, vector<16x32xf32> -> vector<16x32xf32>
    %157 = arith.mulf %156, %147 : vector<16x32xf32>
    %158 = arith.truncf %157 : vector<16x32xf32> to vector<16x32xbf16>
    %cst_96 = arith.constant dense<0.000000e+00> : vector<128x32xf32>
    %159 = tpu.matmul %19, %158, %cst_96 {dimension_numbers = #tpu.dot_dimension_numbers<[1], [0], [0], [1], [0, 0, 1, 1], [], []>} : vector<128x16xbf16>, vector<16x32xbf16>, vector<128x32xf32> -> vector<128x32xf32>
    %c1_97 = arith.constant 1 : index
    %c0_98 = arith.constant 0 : index
    %c0_99 = arith.constant 0 : index
    %160 = vector.load %arg13[%c1_97, %c0_98, %c0_99] : memref<3x32x32xf32, #tpu.memory_space<vmem>>, vector<1x32x32xf32>
    %161 = vector.shape_cast %160 : vector<1x32x32xf32> to vector<32x32xf32>
    %cst_100 = arith.constant dense<0.000000e+00> : vector<128x32xf32>
    %162 = tpu.matmul %159, %161, %cst_100 {dimension_numbers = #tpu.dot_dimension_numbers<[1], [0], [0], [1], [0, 0, 1, 1], [], []>} : vector<128x32xf32>, vector<32x32xf32>, vector<128x32xf32> -> vector<128x32xf32>
    %c1_101 = arith.constant 1 : index
    %c0_102 = arith.constant 0 : index
    %c0_103 = arith.constant 0 : index
    %163 = vector.load %arg14[%c1_101, %c0_102, %c0_103] : memref<3x1x32xf32, #tpu.memory_space<vmem>>, vector<1x1x32xf32>
    %164 = vector.shape_cast %163 : vector<1x1x32xf32> to vector<1x32xf32>
    %165 = vector.broadcast %164 : vector<1x32xf32> to vector<128x32xf32>
    %166 = arith.addf %162, %165 : vector<128x32xf32>
    %cst_104 = arith.constant 0.000000e+00 : f32
    %167 = vector.broadcast %cst_104 : f32 to vector<128x32xf32>
    %168 = arith.maximumf %166, %167 : vector<128x32xf32>
    %169 = math.absf %166 : vector<128x32xf32>
    %cst_105 = arith.constant 0.000000e+00 : f32
    %170 = vector.broadcast %cst_105 : f32 to vector<128x32xf32>
    %171 = arith.subf %170, %169 : vector<128x32xf32>
    %172 = math.exp %171 : vector<128x32xf32>
    %cst_106 = arith.constant 1.000000e+00 : f32
    %173 = vector.broadcast %cst_106 : f32 to vector<128x32xf32>
    %174 = arith.addf %173, %172 : vector<128x32xf32>
    %175 = math.log %174 : vector<128x32xf32>
    %176 = arith.addf %168, %175 : vector<128x32xf32>
    %cst_107 = arith.constant 0.693147182 : f32
    %177 = vector.broadcast %cst_107 : f32 to vector<128x32xf32>
    %178 = arith.subf %176, %177 : vector<128x32xf32>
    %c1_108 = arith.constant 1 : index
    %c0_109 = arith.constant 0 : index
    %c0_110 = arith.constant 0 : index
    %179 = vector.load %arg15[%c1_108, %c0_109, %c0_110] : memref<3x32x32xf32, #tpu.memory_space<vmem>>, vector<1x32x32xf32>
    %180 = vector.shape_cast %179 : vector<1x32x32xf32> to vector<32x32xf32>
    %cst_111 = arith.constant dense<0.000000e+00> : vector<128x32xf32>
    %181 = tpu.matmul %178, %180, %cst_111 {dimension_numbers = #tpu.dot_dimension_numbers<[1], [0], [0], [1], [0, 0, 1, 1], [], []>} : vector<128x32xf32>, vector<32x32xf32>, vector<128x32xf32> -> vector<128x32xf32>
    %c1_112 = arith.constant 1 : index
    %c0_113 = arith.constant 0 : index
    %c0_114 = arith.constant 0 : index
    %182 = vector.load %arg16[%c1_112, %c0_113, %c0_114] : memref<3x1x32xf32, #tpu.memory_space<vmem>>, vector<1x1x32xf32>
    %183 = vector.shape_cast %182 : vector<1x1x32xf32> to vector<1x32xf32>
    %184 = vector.broadcast %183 : vector<1x32xf32> to vector<128x32xf32>
    %185 = arith.addf %181, %184 : vector<128x32xf32>
    %c2 = arith.constant 2 : index
    %c0_115 = arith.constant 0 : index
    %c0_116 = arith.constant 0 : index
    %186 = vector.load %arg7[%c2, %c0_115, %c0_116] : memref<3x32x32xf32, #tpu.memory_space<vmem>>, vector<1x32x32xf32>
    %187 = vector.shape_cast %186 : vector<1x32x32xf32> to vector<32x32xf32>
    %cst_117 = arith.constant dense<0.000000e+00> : vector<16x32xf32>
    %188 = tpu.matmul %31, %187, %cst_117 {dimension_numbers = #tpu.dot_dimension_numbers<[1], [0], [0], [1], [0, 0, 1, 1], [], []>} : vector<16x32xf32>, vector<32x32xf32>, vector<16x32xf32> -> vector<16x32xf32>
    %c2_118 = arith.constant 2 : index
    %c0_119 = arith.constant 0 : index
    %c0_120 = arith.constant 0 : index
    %189 = vector.load %arg8[%c2_118, %c0_119, %c0_120] : memref<3x1x32xf32, #tpu.memory_space<vmem>>, vector<1x1x32xf32>
    %190 = vector.shape_cast %189 : vector<1x1x32xf32> to vector<1x32xf32>
    %191 = vector.broadcast %190 : vector<1x32xf32> to vector<16x32xf32>
    %192 = arith.addf %188, %191 : vector<16x32xf32>
    %cst_121 = arith.constant 0.000000e+00 : f32
    %193 = vector.broadcast %cst_121 : f32 to vector<16x32xf32>
    %194 = arith.maximumf %192, %193 : vector<16x32xf32>
    %195 = math.absf %192 : vector<16x32xf32>
    %cst_122 = arith.constant 0.000000e+00 : f32
    %196 = vector.broadcast %cst_122 : f32 to vector<16x32xf32>
    %197 = arith.subf %196, %195 : vector<16x32xf32>
    %198 = math.exp %197 : vector<16x32xf32>
    %cst_123 = arith.constant 1.000000e+00 : f32
    %199 = vector.broadcast %cst_123 : f32 to vector<16x32xf32>
    %200 = arith.addf %199, %198 : vector<16x32xf32>
    %201 = math.log %200 : vector<16x32xf32>
    %202 = arith.addf %194, %201 : vector<16x32xf32>
    %cst_124 = arith.constant 0.693147182 : f32
    %203 = vector.broadcast %cst_124 : f32 to vector<16x32xf32>
    %204 = arith.subf %202, %203 : vector<16x32xf32>
    %c2_125 = arith.constant 2 : index
    %c0_126 = arith.constant 0 : index
    %c0_127 = arith.constant 0 : index
    %205 = vector.load %arg9[%c2_125, %c0_126, %c0_127] : memref<3x32x32xf32, #tpu.memory_space<vmem>>, vector<1x32x32xf32>
    %206 = vector.shape_cast %205 : vector<1x32x32xf32> to vector<32x32xf32>
    %cst_128 = arith.constant dense<0.000000e+00> : vector<16x32xf32>
    %207 = tpu.matmul %204, %206, %cst_128 {dimension_numbers = #tpu.dot_dimension_numbers<[1], [0], [0], [1], [0, 0, 1, 1], [], []>} : vector<16x32xf32>, vector<32x32xf32>, vector<16x32xf32> -> vector<16x32xf32>
    %c2_129 = arith.constant 2 : index
    %c0_130 = arith.constant 0 : index
    %c0_131 = arith.constant 0 : index
    %208 = vector.load %arg10[%c2_129, %c0_130, %c0_131] : memref<3x1x32xf32, #tpu.memory_space<vmem>>, vector<1x1x32xf32>
    %209 = vector.shape_cast %208 : vector<1x1x32xf32> to vector<1x32xf32>
    %210 = vector.broadcast %209 : vector<1x32xf32> to vector<16x32xf32>
    %211 = arith.addf %207, %210 : vector<16x32xf32>
    %cst_132 = arith.constant 0.000000e+00 : f32
    %212 = vector.broadcast %cst_132 : f32 to vector<16x32xf32>
    %213 = arith.maximumf %211, %212 : vector<16x32xf32>
    %214 = math.absf %211 : vector<16x32xf32>
    %cst_133 = arith.constant 0.000000e+00 : f32
    %215 = vector.broadcast %cst_133 : f32 to vector<16x32xf32>
    %216 = arith.subf %215, %214 : vector<16x32xf32>
    %217 = math.exp %216 : vector<16x32xf32>
    %cst_134 = arith.constant 1.000000e+00 : f32
    %218 = vector.broadcast %cst_134 : f32 to vector<16x32xf32>
    %219 = arith.addf %218, %217 : vector<16x32xf32>
    %220 = math.log %219 : vector<16x32xf32>
    %221 = arith.addf %213, %220 : vector<16x32xf32>
    %cst_135 = arith.constant 0.693147182 : f32
    %222 = vector.broadcast %cst_135 : f32 to vector<16x32xf32>
    %223 = arith.subf %221, %222 : vector<16x32xf32>
    %c2_136 = arith.constant 2 : index
    %c0_137 = arith.constant 0 : index
    %c0_138 = arith.constant 0 : index
    %224 = vector.load %arg11[%c2_136, %c0_137, %c0_138] : memref<3x32x32xf32, #tpu.memory_space<vmem>>, vector<1x32x32xf32>
    %225 = vector.shape_cast %224 : vector<1x32x32xf32> to vector<32x32xf32>
    %cst_139 = arith.constant dense<0.000000e+00> : vector<128x32xf32>
    %226 = tpu.matmul %185, %225, %cst_139 {dimension_numbers = #tpu.dot_dimension_numbers<[1], [0], [0], [1], [0, 0, 1, 1], [], []>} : vector<128x32xf32>, vector<32x32xf32>, vector<128x32xf32> -> vector<128x32xf32>
    %c2_140 = arith.constant 2 : index
    %c0_141 = arith.constant 0 : index
    %c0_142 = arith.constant 0 : index
    %227 = vector.load %arg12[%c2_140, %c0_141, %c0_142] : memref<3x1x32xf32, #tpu.memory_space<vmem>>, vector<1x1x32xf32>
    %228 = vector.shape_cast %227 : vector<1x1x32xf32> to vector<1x32xf32>
    %229 = vector.broadcast %228 : vector<1x32xf32> to vector<128x32xf32>
    %230 = arith.addf %226, %229 : vector<128x32xf32>
    %231 = arith.truncf %230 : vector<128x32xf32> to vector<128x32xbf16>
    %cst_143 = arith.constant dense<0.000000e+00> : vector<16x32xf32>
    %232 = tpu.matmul %10, %231, %cst_143 {dimension_numbers = #tpu.dot_dimension_numbers<[1], [0], [0], [1], [0, 0, 1, 1], [], []>} : vector<16x128xbf16>, vector<128x32xbf16>, vector<16x32xf32> -> vector<16x32xf32>
    %233 = arith.mulf %232, %223 : vector<16x32xf32>
    %234 = arith.truncf %233 : vector<16x32xf32> to vector<16x32xbf16>
    %cst_144 = arith.constant dense<0.000000e+00> : vector<128x32xf32>
    %235 = tpu.matmul %19, %234, %cst_144 {dimension_numbers = #tpu.dot_dimension_numbers<[1], [0], [0], [1], [0, 0, 1, 1], [], []>} : vector<128x16xbf16>, vector<16x32xbf16>, vector<128x32xf32> -> vector<128x32xf32>
    %c2_145 = arith.constant 2 : index
    %c0_146 = arith.constant 0 : index
    %c0_147 = arith.constant 0 : index
    %236 = vector.load %arg13[%c2_145, %c0_146, %c0_147] : memref<3x32x32xf32, #tpu.memory_space<vmem>>, vector<1x32x32xf32>
    %237 = vector.shape_cast %236 : vector<1x32x32xf32> to vector<32x32xf32>
    %cst_148 = arith.constant dense<0.000000e+00> : vector<128x32xf32>
    %238 = tpu.matmul %235, %237, %cst_148 {dimension_numbers = #tpu.dot_dimension_numbers<[1], [0], [0], [1], [0, 0, 1, 1], [], []>} : vector<128x32xf32>, vector<32x32xf32>, vector<128x32xf32> -> vector<128x32xf32>
    %c2_149 = arith.constant 2 : index
    %c0_150 = arith.constant 0 : index
    %c0_151 = arith.constant 0 : index
    %239 = vector.load %arg14[%c2_149, %c0_150, %c0_151] : memref<3x1x32xf32, #tpu.memory_space<vmem>>, vector<1x1x32xf32>
    %240 = vector.shape_cast %239 : vector<1x1x32xf32> to vector<1x32xf32>
    %241 = vector.broadcast %240 : vector<1x32xf32> to vector<128x32xf32>
    %242 = arith.addf %238, %241 : vector<128x32xf32>
    %cst_152 = arith.constant 0.000000e+00 : f32
    %243 = vector.broadcast %cst_152 : f32 to vector<128x32xf32>
    %244 = arith.maximumf %242, %243 : vector<128x32xf32>
    %245 = math.absf %242 : vector<128x32xf32>
    %cst_153 = arith.constant 0.000000e+00 : f32
    %246 = vector.broadcast %cst_153 : f32 to vector<128x32xf32>
    %247 = arith.subf %246, %245 : vector<128x32xf32>
    %248 = math.exp %247 : vector<128x32xf32>
    %cst_154 = arith.constant 1.000000e+00 : f32
    %249 = vector.broadcast %cst_154 : f32 to vector<128x32xf32>
    %250 = arith.addf %249, %248 : vector<128x32xf32>
    %251 = math.log %250 : vector<128x32xf32>
    %252 = arith.addf %244, %251 : vector<128x32xf32>
    %cst_155 = arith.constant 0.693147182 : f32
    %253 = vector.broadcast %cst_155 : f32 to vector<128x32xf32>
    %254 = arith.subf %252, %253 : vector<128x32xf32>
    %c2_156 = arith.constant 2 : index
    %c0_157 = arith.constant 0 : index
    %c0_158 = arith.constant 0 : index
    %255 = vector.load %arg15[%c2_156, %c0_157, %c0_158] : memref<3x32x32xf32, #tpu.memory_space<vmem>>, vector<1x32x32xf32>
    %256 = vector.shape_cast %255 : vector<1x32x32xf32> to vector<32x32xf32>
    %cst_159 = arith.constant dense<0.000000e+00> : vector<128x32xf32>
    %257 = tpu.matmul %254, %256, %cst_159 {dimension_numbers = #tpu.dot_dimension_numbers<[1], [0], [0], [1], [0, 0, 1, 1], [], []>} : vector<128x32xf32>, vector<32x32xf32>, vector<128x32xf32> -> vector<128x32xf32>
    %c2_160 = arith.constant 2 : index
    %c0_161 = arith.constant 0 : index
    %c0_162 = arith.constant 0 : index
    %258 = vector.load %arg16[%c2_160, %c0_161, %c0_162] : memref<3x1x32xf32, #tpu.memory_space<vmem>>, vector<1x1x32xf32>
    %259 = vector.shape_cast %258 : vector<1x1x32xf32> to vector<1x32xf32>
    %260 = vector.broadcast %259 : vector<1x32xf32> to vector<128x32xf32>
    %261 = arith.addf %257, %260 : vector<128x32xf32>
    %c0_163 = arith.constant 0 : index
    %c0_164 = arith.constant 0 : index
    %262 = vector.load %arg17[%c0_163, %c0_164] : memref<32x32xf32, #tpu.memory_space<vmem>>, vector<32x32xf32>
    %cst_165 = arith.constant dense<0.000000e+00> : vector<128x32xf32>
    %263 = tpu.matmul %261, %262, %cst_165 {dimension_numbers = #tpu.dot_dimension_numbers<[1], [0], [0], [1], [0, 0, 1, 1], [], []>} : vector<128x32xf32>, vector<32x32xf32>, vector<128x32xf32> -> vector<128x32xf32>
    %c0_166 = arith.constant 0 : index
    %c0_167 = arith.constant 0 : index
    %264 = vector.load %arg18[%c0_166, %c0_167] : memref<1x32xf32, #tpu.memory_space<vmem>>, vector<1x32xf32>
    %265 = vector.broadcast %264 : vector<1x32xf32> to vector<128x32xf32>
    %266 = arith.addf %263, %265 : vector<128x32xf32>
    %cst_168 = arith.constant 0.000000e+00 : f32
    %267 = vector.broadcast %cst_168 : f32 to vector<128x32xf32>
    %268 = arith.maximumf %266, %267 : vector<128x32xf32>
    %269 = math.absf %266 : vector<128x32xf32>
    %cst_169 = arith.constant 0.000000e+00 : f32
    %270 = vector.broadcast %cst_169 : f32 to vector<128x32xf32>
    %271 = arith.subf %270, %269 : vector<128x32xf32>
    %272 = math.exp %271 : vector<128x32xf32>
    %cst_170 = arith.constant 1.000000e+00 : f32
    %273 = vector.broadcast %cst_170 : f32 to vector<128x32xf32>
    %274 = arith.addf %273, %272 : vector<128x32xf32>
    %275 = math.log %274 : vector<128x32xf32>
    %276 = arith.addf %268, %275 : vector<128x32xf32>
    %cst_171 = arith.constant 0.693147182 : f32
    %277 = vector.broadcast %cst_171 : f32 to vector<128x32xf32>
    %278 = arith.subf %276, %277 : vector<128x32xf32>
    %c0_172 = arith.constant 0 : index
    %c0_173 = arith.constant 0 : index
    %c0_174 = arith.constant 0 : index
    %279 = vector.load %arg4[%c0_172, %c0_173, %c0_174] : memref<1x1x128xf32, #tpu.memory_space<vmem>>, vector<1x1x128xf32>
    %280 = vector.shape_cast %279 : vector<1x1x128xf32> to vector<1x128xf32>
    %cst_175 = arith.constant dense<0.000000e+00> : vector<1x32xf32>
    %281 = tpu.matmul %280, %278, %cst_175 {dimension_numbers = #tpu.dot_dimension_numbers<[1], [0], [0], [1], [0, 0, 1, 1], [], []>} : vector<1x128xf32>, vector<128x32xf32>, vector<1x32xf32> -> vector<1x32xf32>
    %cst_176 = arith.constant dense<0.000000e+00> : vector<1xf32>
    %282 = vector.multi_reduction <add>, %280, %cst_176 [1] : vector<1x128xf32> to vector<1xf32>
    %283 = vector.shape_cast %282 : vector<1xf32> to vector<1x1xf32>
    %c0_177 = arith.constant 0 : index
    %c0_178 = arith.constant 0 : index
    %284 = vector.load %arg19[%c0_177, %c0_178] : memref<32x1xf32, #tpu.memory_space<vmem>>, vector<32x1xf32>
    %cst_179 = arith.constant dense<0.000000e+00> : vector<1x1xf32>
    %285 = tpu.matmul %281, %284, %cst_179 {dimension_numbers = #tpu.dot_dimension_numbers<[1], [0], [0], [1], [0, 0, 1, 1], [], []>} : vector<1x32xf32>, vector<32x1xf32>, vector<1x1xf32> -> vector<1x1xf32>
    %c0_180 = arith.constant 0 : index
    %c0_181 = arith.constant 0 : index
    %286 = vector.load %arg20[%c0_180, %c0_181] : memref<1x1xf32, #tpu.memory_space<vmem>>, vector<1x1xf32>
    %287 = arith.mulf %283, %286 : vector<1x1xf32>
    %288 = arith.addf %285, %287 : vector<1x1xf32>
    %c0_182 = arith.constant 0 : index
    %c0_183 = arith.constant 0 : index
    %c0_184 = arith.constant 0 : index
    %289 = vector.load %arg21[%c0_182, %c0_183, %c0_184] : memref<1x1x1xf32, #tpu.memory_space<vmem>>, vector<1x1x1xf32>
    %290 = vector.shape_cast %289 : vector<1x1x1xf32> to vector<1x1xf32>
    %291 = vector.shape_cast %288 : vector<1x1xf32> to vector<1x1x1xf32>
    tpu.vector_store %arg21[%c0_182, %c0_183, %c0_184], %291 {strides = array<i32>} : memref<1x1x1xf32, #tpu.memory_space<vmem>>, vector<1x1x1xf32>,
    return
  }
  func.func @transform_0(%arg0: i32) -> (i32, i32, i32) {
    %c0_i32 = arith.constant 0 : i32
    %c0_i32_0 = arith.constant 0 : i32
    %c0_i32_1 = arith.constant 0 : i32
    return %arg0, %c0_i32, %c0_i32_0 : i32, i32, i32
  }
  func.func @transform_1(%arg0: i32) -> (i32, i32, i32) {
    %c0_i32 = arith.constant 0 : i32
    %c0_i32_0 = arith.constant 0 : i32
    %c0_i32_1 = arith.constant 0 : i32
    return %arg0, %c0_i32, %c0_i32_0 : i32, i32, i32
  }
  func.func @transform_2(%arg0: i32) -> (i32, i32, i32) {
    %c0_i32 = arith.constant 0 : i32
    %c0_i32_0 = arith.constant 0 : i32
    %c0_i32_1 = arith.constant 0 : i32
    return %arg0, %c0_i32, %c0_i32_0 : i32, i32, i32
  }
  func.func @transform_3(%arg0: i32) -> (i32, i32, i32) {
    %c0_i32 = arith.constant 0 : i32
    %c0_i32_0 = arith.constant 0 : i32
    %c0_i32_1 = arith.constant 0 : i32
    return %arg0, %c0_i32, %c0_i32_0 : i32, i32, i32
  }
  func.func @transform_4(%arg0: i32) -> (i32, i32, i32) {
    %c0_i32 = arith.constant 0 : i32
    %c0_i32_0 = arith.constant 0 : i32
    %c0_i32_1 = arith.constant 0 : i32
    return %arg0, %c0_i32, %c0_i32_0 : i32, i32, i32
  }
  func.func @transform_5(%arg0: i32) -> (i32, i32) {
    %c0_i32 = arith.constant 0 : i32
    %c0_i32_0 = arith.constant 0 : i32
    %c0_i32_1 = arith.constant 0 : i32
    return %c0_i32, %c0_i32_0 : i32, i32
  }
  func.func @transform_6(%arg0: i32) -> (i32, i32, i32) {
    %c0_i32 = arith.constant 0 : i32
    %c0_i32_0 = arith.constant 0 : i32
    %c0_i32_1 = arith.constant 0 : i32
    %c0_i32_2 = arith.constant 0 : i32
    return %c0_i32, %c0_i32_0, %c0_i32_1 : i32, i32, i32
  }
  func.func @transform_7(%arg0: i32) -> (i32, i32, i32) {
    %c0_i32 = arith.constant 0 : i32
    %c0_i32_0 = arith.constant 0 : i32
    %c0_i32_1 = arith.constant 0 : i32
    %c0_i32_2 = arith.constant 0 : i32
    return %c0_i32, %c0_i32_0, %c0_i32_1 : i32, i32, i32
  }
  func.func @transform_8(%arg0: i32) -> (i32, i32, i32) {
    %c0_i32 = arith.constant 0 : i32
    %c0_i32_0 = arith.constant 0 : i32
    %c0_i32_1 = arith.constant 0 : i32
    %c0_i32_2 = arith.constant 0 : i32
    return %c0_i32, %c0_i32_0, %c0_i32_1 : i32, i32, i32
  }
  func.func @transform_9(%arg0: i32) -> (i32, i32, i32) {
    %c0_i32 = arith.constant 0 : i32
    %c0_i32_0 = arith.constant 0 : i32
    %c0_i32_1 = arith.constant 0 : i32
    %c0_i32_2 = arith.constant 0 : i32
    return %c0_i32, %c0_i32_0, %c0_i32_1 : i32, i32, i32
  }
  func.func @transform_10(%arg0: i32) -> (i32, i32, i32) {
    %c0_i32 = arith.constant 0 : i32
    %c0_i32_0 = arith.constant 0 : i32
    %c0_i32_1 = arith.constant 0 : i32
    %c0_i32_2 = arith.constant 0 : i32
    return %c0_i32, %c0_i32_0, %c0_i32_1 : i32, i32, i32
  }
  func.func @transform_11(%arg0: i32) -> (i32, i32, i32) {
    %c0_i32 = arith.constant 0 : i32
    %c0_i32_0 = arith.constant 0 : i32
    %c0_i32_1 = arith.constant 0 : i32
    %c0_i32_2 = arith.constant 0 : i32
    return %c0_i32, %c0_i32_0, %c0_i32_1 : i32, i32, i32
  }
  func.func @transform_12(%arg0: i32) -> (i32, i32, i32) {
    %c0_i32 = arith.constant 0 : i32
    %c0_i32_0 = arith.constant 0 : i32
    %c0_i32_1 = arith.constant 0 : i32
    %c0_i32_2 = arith.constant 0 : i32
    return %c0_i32, %c0_i32_0, %c0_i32_1 : i32, i32, i32
  }
  func.func @transform_13(%arg0: i32) -> (i32, i32, i32) {
    %c0_i32 = arith.constant 0 : i32
    %c0_i32_0 = arith.constant 0 : i32
    %c0_i32_1 = arith.constant 0 : i32
    %c0_i32_2 = arith.constant 0 : i32
    return %c0_i32, %c0_i32_0, %c0_i32_1 : i32, i32, i32
  }
  func.func @transform_14(%arg0: i32) -> (i32, i32, i32) {
    %c0_i32 = arith.constant 0 : i32
    %c0_i32_0 = arith.constant 0 : i32
    %c0_i32_1 = arith.constant 0 : i32
    %c0_i32_2 = arith.constant 0 : i32
    return %c0_i32, %c0_i32_0, %c0_i32_1 : i32, i32, i32
  }
  func.func @transform_15(%arg0: i32) -> (i32, i32, i32) {
    %c0_i32 = arith.constant 0 : i32
    %c0_i32_0 = arith.constant 0 : i32
    %c0_i32_1 = arith.constant 0 : i32
    %c0_i32_2 = arith.constant 0 : i32
    return %c0_i32, %c0_i32_0, %c0_i32_1 : i32, i32, i32
  }
  func.func @transform_16(%arg0: i32) -> (i32, i32) {
    %c0_i32 = arith.constant 0 : i32
    %c0_i32_0 = arith.constant 0 : i32
    %c0_i32_1 = arith.constant 0 : i32
    return %c0_i32, %c0_i32_0 : i32, i32
  }
  func.func @transform_17(%arg0: i32) -> (i32, i32) {
    %c0_i32 = arith.constant 0 : i32
    %c0_i32_0 = arith.constant 0 : i32
    %c0_i32_1 = arith.constant 0 : i32
    return %c0_i32, %c0_i32_0 : i32, i32
  }
  func.func @transform_18(%arg0: i32) -> (i32, i32) {
    %c0_i32 = arith.constant 0 : i32
    %c0_i32_0 = arith.constant 0 : i32
    %c0_i32_1 = arith.constant 0 : i32
    return %c0_i32, %c0_i32_0 : i32, i32
  }
  func.func @transform_19(%arg0: i32) -> (i32, i32) {
    %c0_i32 = arith.constant 0 : i32
    %c0_i32_0 = arith.constant 0 : i32
    %c0_i32_1 = arith.constant 0 : i32
    return %c0_i32, %c0_i32_0 : i32, i32
  }
  func.func @transform_20(%arg0: i32) -> (i32, i32, i32) {
    %c0_i32 = arith.constant 0 : i32
    %c0_i32_0 = arith.constant 0 : i32
    %c0_i32_1 = arith.constant 0 : i32
    return %arg0, %c0_i32, %c0_i32_0 : i32, i32, i32
  }
}

</mosaic_0001>

<bundles_post_ra>
// kernel: tpu_custom_call.1
= control target key start
LH: loop header
LB: loop body
LE: loop exit
PB: predicated region body
PF: predicated region fallthrough
CT: control target
= control target key end

     0   :  { %s7955_s0 = inlined_call_operand.vmem [shape: f32[2,16,1], index: 0, kind: input, shape index: {}]   ;;  %s7956_s1 = inlined_call_operand.vmem [shape: s32[2,16,1], index: 1, kind: input, shape index: {}]   ;;  %s7957_s2 = inlined_call_operand.hbm [shape: s32[2,1,16], index: 2, kind: input, shape index: {}]   ;;  %s7958_s3 = inlined_call_operand.hbm [shape: f32[2,1,128], index: 3, kind: input, shape index: {}]   ;;  %s7959_s4 = inlined_call_operand.vmem [shape: f32[2,128,32], index: 4, kind: input, shape index: {}]   ;;  %s7960_s5 = inlined_call_operand.vmem [shape: f32[1,32], index: 5, kind: input, shape index: {}]   ;;  %s7961_s6 = inlined_call_operand.vmem [shape: f32[3,32,32], index: 6, kind: input, shape index: {}]   ;;  %s7962_s7 = inlined_call_operand.vmem [shape: f32[3,1,32], index: 7, kind: input, shape index: {}]   ;;  %s7963_s8 = inlined_call_operand.vmem [shape: f32[3,32,32], index: 8, kind: input, shape index: {}]   ;;  %s7964_s9 = inlined_call_operand.vmem [shape: f32[3,1,32], index: 9, kind: input, shape index: {}]   ;;  %s7965_s10 = inlined_call_operand.vmem [shape: f32[3,32,32], index: 10, kind: input, shape index: {}]   ;;  %s7966_s11 = inlined_call_operand.vmem [shape: f32[3,1,32], index: 11, kind: input, shape index: {}]   ;;  %s7967_s12 = inlined_call_operand.vmem [shape: f32[3,32,32], index: 12, kind: input, shape index: {}]   ;;  %s7968_s13 = inlined_call_operand.vmem [shape: f32[3,1,32], index: 13, kind: input, shape index: {}]   ;;  %s7969_s14 = inlined_call_operand.hbm [shape: f32[3,32,32], index: 14, kind: input, shape index: {}]   ;;  %s7970_s15 = inlined_call_operand.vmem [shape: f32[3,1,32], index: 15, kind: input, shape index: {}]   ;;  %s7971_s16 = inlined_call_operand.vmem [shape: f32[32,32], index: 16, kind: input, shape index: {}]   ;;  %s7972_s17 = inlined_call_operand.vmem [shape: f32[1,32], index: 17, kind: input, shape index: {}]   ;;  %s7973_s18 = inlined_call_operand.vmem [shape: f32[32,1], index: 18, kind: input, shape index: {}]   ;;  %s7974_s19 = inlined_call_operand.<no memory space> [shape: f32[1,1], index: 19, kind: input, shape index: {}]   ;;  %s7975_s20 = inlined_call_operand.vmem [shape: f32[2,1,1], index: 20, kind: output, shape index: {}]  }
   0x1   :  { %7988 = sst [smem:[#allocation14_spill]] %s7955_s0  ;;  %v25_v0 = vstv %s7974_s19 }
   0x2   :  { %7989 = sst [smem:[#allocation15_spill]] %s7956_s1  ;;  %26 = vst [vmem:[#allocation2] sm:$0x1] %v25_v0 }
   0x3   :  { %7990 = sst [smem:[#allocation16_spill]] %s7957_s2 }
   0x4   :  { %7991 = sst [smem:[#allocation17_spill]] %s7958_s3 }
   0x5   :  { %7992 = sst [smem:[#allocation18_spill]] %s7959_s4 }
   0x6   :  { %7993 = sst [smem:[#allocation19_spill]] %s7969_s14 }
   0x7   :  { %7994 = sst [smem:[#allocation20_spill]] %s7970_s15 }
   0x8   :  { %7995 = sst [smem:[#allocation21_spill]] %s7971_s16 }
   0x9   :  { %7996 = sst [smem:[#allocation22_spill]] %s7972_s17 }
   0xa   :  { %7997 = sst [smem:[#allocation23_spill]] %s7973_s18 }
   0xb   :  { %7998 = sst [smem:[#allocation24_spill]] %s7975_s20 }
   0xc   :  { %27 = vsyncpa [#allocation4], 0 }
   0xd   :  { %29 = vsyncpa [#allocation4 + $0x1], 0 }
   0xe   :  { %30 = vsyncpa [#allocation6], 0 }
   0xf   :  { %32 = vsyncpa [#allocation6 + $0x1], 0  ;;  %s6821_s23 = smov 0   ;;  %s6823_s24 = smov 0  }
  0x10   :  { %s6825_s2 = smov 0   ;;  %s6827_s25 = smov 0  }
  0x11 LB: > { %7999 = sst [smem:[#allocation11_spill]] %s6698_s2  ;;  %s6840_s19 = sadd.s32 4294967295, %s6702_s25   ;;  %s6702_s25 = sphi %s6827_s25, %s8024_s25   ;;  %s6698_s2 = sphi %s6825_s2, %s8029_s2   ;;  %s6694_s24 = sphi %s6823_s24, %s8028_s24   ;;  %s6690_s23 = sphi %s6821_s23, %s8027_s23  }
  0x12   : > { %p110_p0 = scmp.ne.s32.totalorder %s6694_s24, %s6690_s23  ;;  %p7984_p1 = scmp.eq.s32.totalorder %s6840_s19, 0 }
  0x13   : > { %p4988_p2 = scmp.ge.s32.totalorder %s6702_s25, 1  ;;  %p514_p3 = scmp.lt.s32.totalorder %s6702_s25, 3 }
  0x14   : > { %p6848_p4 = por %p7984_p1, %p110_p0  ;;  %s6704_s27 = smov [#allocation7]  }
  0x15   : > { %p6852_p5 = pnand %p4988_p2, %p514_p3  ;;  %s553_s28 = sshll.u32 %s6704_s27, 4  ;;  %s554_s28 = int_to_ptr.vmem [resolvable:$true] %s553_s28 }
  0x16   : > { %s8000_s3 = scalar_select %p6848_p4, 1, 0 }
  0x17   : > { %s8001_s26 = scalar_select %p6852_p5, 1, 0 }
  0x18   : > { %p6211_p6 = pneg %p6852_p5  ;;  %s6865_s29 = sadd.s32 1, %s6702_s25  }
  0x19   : > { %8003 = sst [smem:[#allocation12_spill]] %s6865_s29  ;;  %s97_s30 = sadd.s32 1, %s6698_s2 }
  0x1a   : > { %p6860_p7 = pnand %p6211_p6, %p7984_p1  ;;  %s94_s0 = ssub.s32 %s6702_s25, %s6865_s29 }
  0x1b   : > { %s6589_s21 = scalar_lea.vmem %s554_s28, 1536  ;;  %p6597_p12 = scmp.lt.s32.totalorder %s554_s28, %s554_s28 }
  0x1c   : > { %p6580_p8 = pneg %p6860_p7  ;;  %p6590_p9 = scmp.ne.s32.totalorder %s554_s28, %s6589_s21 }
  0x1d   : > { %p6598_p13 = scmp.lt.s32.totalorder %s6589_s21, %s6589_s21 }
  0x1e   : > { %p6592_p10 = pnand %p6590_p9, %p6580_p8 }
  0x1f   : > { %p6599_p0 = por %p6598_p13, %p6597_p12 }
  0x20   : > { %p6593_p11 = pneg %p6592_p10 }
  0x22   : > { %p6600_p2 = pnand %p6599_p0, %p6593_p11 }
  0x24   : > { %6603 = shalt.err (!%p6600_p2)
}
  0x25   : > { %s6705_s1 = smov 128   ;;  %s6706_s22 = smov 8  }
  0x26   : > { %s8004_s14 = sld [smem:[#allocation19_spill]]  ;;  %p95_p3 = scmp.eq.s32.totalorder %s94_s0, 0 }
  0x27   : > { %p104_p6 = scmp.ne.s32.totalorder %s6698_s2, %s6694_s24  ;;  %p105_p8 = scmp.eq.s32.totalorder %s6702_s25, 0 }
  0x28   : > { %p6223_p9 = scmp.lt.s32.totalorder %s6702_s25, 2  ;;  %s6885_s29 = sand.u32 1, %s6698_s2  }
  0x29   : > { %s6882_s21 = scalar_select %p95_p3, %s6698_s2, %s97_s30  }
  0x2a   : > { %p106_p10 = por %p105_p8, %p104_p6  ;;  %s4991_s20 = sshll.u32 %s6702_s25, 4 }
  0x2b   : > { %8005 = sst [smem:[#allocation13_spill]] %s6882_s21  ;;  %s601_s18 = scalar_lea.vmem [#allocation3], %s6885_s29 }
  0x2c   : > { %6214 = dma.hbm_to_vmem [thread:$0]  (!%p6860_p7), %s8004_s14, 1536, %s554_s28, [#allocation6], %s6705_s1, %s6705_s1, %s6706_s22  }
  0x2d   : > { %s608_s17 = sshll.u32 %s601_s18, 4  ;;  %s8006_s15 = sld [smem:[#allocation16_spill]]  ;;  %s6894_s17 = int_to_ptr.vmem [resolvable:$true] %s608_s17 }
  0x2e   : > { %p6896_p7 = pnand %p6223_p9, %p106_p10  ;;  %s8008_s1 = sld [smem:[#allocation17_spill]] }
  0x2f   : > { %s615_s22 = sand.u32 1, %s6702_s25   ;;  %s599_s16 = scalar_lea.sflag [#allocation4], %s6885_s29 }
  0x30   : > { %p6606_p12 = pneg %p6896_p7 }
  0x33   : > { %s6892_s23 = scalar_lea.hbm %s8006_s15, %s4991_s20  ;;  %s6609_s21 = scalar_lea.hbm %s8006_s15, 32 }
  0x34   : > { %s6903_s18 = scalar_lea.hbm %s8008_s1, %s4991_s20  ;;  %s6604_s27 = scalar_lea.hbm %s6892_s23, 16 }
  0x35   : > { %p6605_p11 = scmp.ne.s32.totalorder %s6892_s23, %s6604_s27  ;;  %p6610_p2 = scmp.lt.s32.totalorder %s6892_s23, %s8006_s15 }
  0x36   : > { %p6611_p3 = scmp.lt.s32.totalorder %s6609_s21, %s6604_s27 }
  0x37   : > { %p6607_p13 = pnand %p6606_p12, %p6605_p11 }
  0x38   : > { %p6612_p6 = por %p6611_p3, %p6610_p2 }
  0x39   : > { %p6608_p0 = pneg %p6607_p13 }
  0x3b   : > { %p6613_p8 = pnand %p6612_p6, %p6608_p0 }
  0x3d   : > { %6616 = shalt.err (!%p6613_p8)
}
  0x3e   : > { %s6617_s20 = scalar_lea.vmem %s6894_s17, 16  ;;  %s6707_s14 = smov [#allocation3]  }
  0x3f   : > { %p6618_p9 = scmp.ne.s32.totalorder %s6894_s17, %s6617_s20  ;;  %s6622_s0 = sshll.u32 %s6707_s14, 4  ;;  %s6623_s0 = int_to_ptr.vmem [resolvable:$false] %s6622_s0 }
  0x40   : > { %s6624_s4 = scalar_lea.vmem %s6623_s0, 32  ;;  %p6625_p13 = scmp.lt.s32.totalorder %s6894_s17, %s6623_s0 }
  0x41   : > { %p6620_p10 = pnand %p6618_p9, %p6606_p12  ;;  %p6626_p1 = scmp.lt.s32.totalorder %s6624_s4, %s6617_s20 }
  0x43   : > { %p6621_p11 = pneg %p6620_p10  ;;  %p6627_p4 = por %p6626_p1, %p6625_p13 }
  0x45   : > { %p6628_p2 = pnand %p6627_p4, %p6621_p11 }
  0x47   : > { %6631 = shalt.err (!%p6628_p2)
}
  0x48   : > { %6218 = dma.hbm_to_vmem [thread:$0]  (!%p6896_p7), %s6892_s23, 16, %s6894_s17, %s599_s16  }
  0x49   : > { %s618_s2 = scalar_lea.vmem [#allocation5], %s6885_s29  ;;  %s616_s27 = scalar_lea.sflag [#allocation6], %s615_s22 }
  0x4a   : > { %s625_s21 = sshll.u32 %s618_s2, 4  ;;  %s6632_s30 = scalar_lea.hbm %s6903_s18, 16  ;;  %s626_s21 = int_to_ptr.vmem [resolvable:$true] %s625_s21 }
  0x4b   : > { %p6633_p1 = scmp.ne.s32.totalorder %s6903_s18, %s6632_s30  ;;  %s6637_s0 = scalar_lea.hbm %s8008_s1, 32 }
  0x4c   : > { %p6638_p3 = scmp.lt.s32.totalorder %s6903_s18, %s8008_s1  ;;  %p6639_p6 = scmp.lt.s32.totalorder %s6637_s0, %s6632_s30 }
  0x4d   : > { %p6635_p4 = pnand %p6633_p1, %p6606_p12 }
  0x4e   : > { %p6640_p8 = por %p6639_p6, %p6638_p3 }
  0x4f   : > { %p6636_p0 = pneg %p6635_p4 }
  0x51   : > { %p6641_p9 = pnand %p6640_p8, %p6636_p0 }
  0x53   : > { %6644 = shalt.err (!%p6641_p9)
}
  0x54   : > { %s6645_s17 = scalar_lea.vmem %s626_s21, 16  ;;  %s6708_s25 = smov [#allocation5]  }
  0x55   : > { %p6646_p10 = scmp.ne.s32.totalorder %s626_s21, %s6645_s17  ;;  %s6650_s29 = sshll.u32 %s6708_s25, 4  ;;  %s6651_s29 = int_to_ptr.vmem [resolvable:$false] %s6650_s29 }
  0x56   : > { %s6652_s23 = scalar_lea.vmem %s6651_s29, 32  ;;  %p6653_p2 = scmp.lt.s32.totalorder %s626_s21, %s6651_s29 }
  0x57   : > { %p6648_p11 = pnand %p6646_p10, %p6606_p12  ;;  %p6654_p1 = scmp.lt.s32.totalorder %s6652_s23, %s6645_s17 }
  0x59   : > { %p6649_p13 = pneg %p6648_p11  ;;  %p6655_p4 = por %p6654_p1, %p6653_p2 }
  0x5b   : > { %p6656_p5 = pnand %p6655_p4, %p6649_p13 }
  0x5d   : > { %6659 = shalt.err (!%p6656_p5)
}
  0x5e   : > { %6221 = dma.hbm_to_vmem [thread:$0]  (!%p6896_p7), %s6903_s18, 16, %s626_s21, %s616_s27  }
  0x5f   : > { %p8009_p0 = scmp.ne.s32.totalorder %s8001_s26, 0 }
  0x60   : > { %s6955_s15 = sand.u32 (!%p8009_p0), 1, %s6694_s24   ;;  %p8010_p12 = scmp.ne.s32.totalorder (!%p8009_p0), %s8000_s3, 0 }
  0x61   : > { %642 = sbr.rel (%p8009_p0) target bundleno = 4301 (0x10cd), region = 100  ;;  %s645_s22 = scalar_lea.sflag (!%p8009_p0), [#allocation4], %s6955_s15 }
  0x62   : > { %s647_s16 = scalar_lea.vmem (!%p8009_p0), [#allocation3], %s6955_s15 }
  0x66   : > { %6677 = dma.done.wait (%p8010_p12), %s645_s22, 16  }
  0x67   : > { %6679 = vsyncadd (%p8010_p12), %s645_s22, 4294967280  ;;  %s652_s28 = sand.u32 1, %s6840_s19   ;;  %s655_s26 = scalar_lea.vmem [#allocation5], %s6955_s15 }
  0x68   : > { %s653_s18 = scalar_lea.sflag [#allocation6], %s652_s28 }
  0x69   : > { %6681 = dma.done.wait (%p8010_p12), %s653_s18, 16  }
  0x6a   : > { %6683 = vsyncadd (%p8010_p12), %s653_s18, 4294967280  ;;  %p8011_p5 = scmp.eq.s32.totalorder %s6840_s19, 0 }
  0x6c   : > { %6685 = dma.done.wait (%p8011_p5), [#allocation6], 1536   ;;  %p8012_p7 = pmov %p8011_p5 }
  0x6d   : > { %p732_p3 = scmp.lt.s32.totalorder %s6840_s19, 1  ;;  %v6709_v1 = vmov 0   ;;  %s8013_s3 = sld [smem:[#allocation14_spill]]  ;;  %v880_v8 = vld [vmem:[%s7961_s6 + $0x18] sm:$0xff]  ;;  %v879_v9 = vld [vmem:[%s7961_s6 + $0x10] sm:$0xff]  ;;  %v878_v10 = vld [vmem:[%s7961_s6 + $0x8] sm:$0xff] }
  0x6e   : > { %6687 = vsyncadd (%p8012_p7), [#allocation6], 4294965760  ;;  %6264 = vset.pattern.permute.xlu0 %v6709_v1  ;;  %6265 = vset.pattern.permute.xlu1 %v6709_v1  ;;  %v877_v11 = vld [vmem:[%s7961_s6] sm:$0xff]  ;;  %v1105_v12 = vld [vmem:[%s7965_s10 + $0x18] sm:$0xff]  ;;  %s8014_s27 = sld [smem:[#allocation15_spill]]  ;;  %vm888_vm0 = vcmask 261120  }
  0x6f   : > { %s8031_s19 = smov (!%p732_p3, %s6840_s19), 1  ;;  %5657 = vmatprep.subr.mxu0 %v880_v8  ;;  %v5002_v15 = vld [vmem:[%s7960_s5] ss:$0 sm:$0xff]  ;;  %s8015_s4 = sld [smem:[#allocation18_spill]]  ;;  %v1104_v29 = vld [vmem:[%s7965_s10 + $0x10] sm:$0xff]  ;;  %v1103_v30 = vld [vmem:[%s7965_s10 + $0x8] sm:$0xff] }
  0x70   : > { %s5342_s2 = sshll.u32 %s8031_s19, 4  ;;  %5658 = vmatpush3.msra.mxu0 %v880_v8  ;;  %v1102_v31 = vld [vmem:[%s7965_s10] sm:$0xff]  ;;  %v993_v47 = vld [vmem:[%s7963_s8 + $0x18] sm:$0xff]  ;;  %v992_v48 = vld [vmem:[%s7963_s8 + $0x10] sm:$0xff]  ;;  %v6710_v51 = vmov 0.0   ;;  %vm6711_vm1 = vmmov 0  }
  0x71   : > { %5659 = vmatprep.subr.mxu0 %v879_v9  ;;  %5668 = vmatprep.subr.mxu1 %v993_v47  ;;  %v991_v49 = vld [vmem:[%s7963_s8 + $0x8] sm:$0xff]  ;;  %v990_v50 = vld [vmem:[%s7963_s8] sm:$0xff]  ;;  %vm1358_vm7 = vcmask 130048   ;;  %s8019_s25 = sld [smem:[#allocation21_spill]] }
  0x72   : > { %5660 = vmatpush3.msra.mxu0 %v879_v9  ;;  %5669 = vmatpush3.msra.mxu1 %v993_v47  ;;  %v5003_v52 = vld [vmem:[%s7962_s7] ss:$0 sm:$0xff] }
  0x73   : > { %s736_s30 = scalar_lea.vmem %s8013_s3, %s5342_s2  ;;  %5661 = vmatprep.subr.mxu0 %v878_v10  ;;  %5670 = vmatprep.subr.mxu1 %v992_v48 }
  0x74   : > { %v828_v2 = vld [vmem:[%s736_s30] sm:$0xff]  ;;  %v829_v3 = vld [vmem:[%s736_s30 + $0x8] sm:$0xff]  ;;  %5662 = vmatpush3.msra.mxu0 %v878_v10  ;;  %s741_s3 = scalar_lea.vmem %s8014_s27, %s5342_s2  ;;  %s5344_s2 = sshll.u32 %s8031_s19, 7  ;;  %5671 = vmatpush3.msra.mxu1 %v992_v48 }
  0x75   : > { %6266 = vrcp.f32 %v828_v2  ;;  %5663 = vmatprep.subr.mxu0 %v877_v11  ;;  %v770_v13 = vld [vmem:[%s741_s3] sm:$0xff]  ;;  %v771_v14 = vld [vmem:[%s741_s3 + $0x8] sm:$0xff]  ;;  %s7008_s17 = scalar_lea.vmem %s8015_s4, %s5344_s2  ;;  %5672 = vmatprep.subr.mxu1 %v991_v49  ;;  %s8018_s27 = sld [smem:[#allocation20_spill]] }
  0x76   : > { %6268 = vrcp.f32 %v829_v3  ;;  %5664 = vmatpush3.msra.mxu0 %v877_v11  ;;  %773 = vperm.xlu1 %6265, %v770_v13   ;;  %v861_v27 = vld [vmem:[%s7008_s17] sm:$0xff]  ;;  %v862_v32 = vld [vmem:[%s7008_s17 + $0x8] sm:$0xff]  ;;  %v863_v33 = vld [vmem:[%s7008_s17 + $0x10] sm:$0xff]  ;;  %s8021_s4 = sld [smem:[#allocation22_spill]] }
  0x77   : > { %5679 = vmatprep.subr.mxu0 %v1105_v12  ;;  %v864_v34 = vld [vmem:[%s7008_s17 + $0x18] sm:$0xff]  ;;  %v865_v35 = vld [vmem:[%s7008_s17 + $0x20] sm:$0xff]  ;;  %v866_v36 = vld [vmem:[%s7008_s17 + $0x28] sm:$0xff]  ;;  %5673 = vmatpush3.msra.mxu1 %v991_v49  ;;  %s8020_s29 = smov %s8019_s25  ;;  %s8023_s30 = sld [smem:[#allocation24_spill]] }
  0x78   : > { %v867_v37 = vld [vmem:[%s7008_s17 + $0x30] sm:$0xff]  ;;  %v868_v38 = vld [vmem:[%s7008_s17 + $0x38] sm:$0xff]  ;;  %v869_v39 = vld [vmem:[%s7008_s17 + $0x40] sm:$0xff]  ;;  %5674 = vmatprep.subr.mxu1 %v990_v50 }
  0x79   : > { %v870_v40 = vld [vmem:[%s7008_s17 + $0x48] sm:$0xff]  ;;  %v871_v41 = vld [vmem:[%s7008_s17 + $0x50] sm:$0xff]  ;;  %v872_v42 = vld [vmem:[%s7008_s17 + $0x58] sm:$0xff]  ;;  %5675 = vmatpush3.msra.mxu1 %v990_v50  ;;  %v751_v50 = vlaneseq }
  0x7a   : > { %776 = vperm.xlu1 %6265, %v771_v14   ;;  %v873_v43 = vld [vmem:[%s7008_s17 + $0x60] sm:$0xff]  ;;  %v874_v44 = vld [vmem:[%s7008_s17 + $0x68] sm:$0xff]  ;;  %v875_v45 = vld [vmem:[%s7008_s17 + $0x70] sm:$0xff]  ;;  %5711 = vmatprep.subr.bf16.mxu1 %v6710_v51 }
  0x7b   : > { %v876_v46 = vld [vmem:[%s7008_s17 + $0x78] sm:$0xff] }
  0x7d   : > { %s749_s20 = scalar_lea.vmem %s8023_s30, %s8031_s19 }
  0x82   : > { %v6267_v4 = vpop.eup %6266 }
  0x83   : > { %v6269_v5 = vpop.eup %6268  ;;  %v831_v6 = vmul.f32 -0.75, %v6267_v4 }
  0x84   : > { %v833_v7 = vmul.f32 -0.75, %v6269_v5 }
  0x85   : > { %837 = vperm.xlu0 %6264, %v831_v6  }
  0x89   : > { %842 = vperm.xlu0 %6264, %v833_v7  }
  0xf1   : > { %v774_v49 = vpop.permute.xlu1 %773 }
 0x100   : > { %v838_v16 = vpop.permute.xlu0 %837 }
 0x101   : > { %v851_v17 = vsub.f32 %v838_v16, %v5002_v15 }
 0x103   : > { %v853_v18 = vmul.f32 -4.0, %v851_v17 }
 0x104   : > { %v843_v19 = vpop.permute.xlu0 %842 }
 0x105   : > { %v855_v20 = vmul.f32 %v853_v18, %v851_v17  ;;  %v852_v21 = vsub.f32 %v843_v19, %v5002_v15 }
 0x107   : > { %v857_v22 = vmul.f32 1.442695, %v855_v20  ;;  %v854_v23 = vmul.f32 -4.0, %v852_v21 }
 0x109   : > { %6270 = vpow2.f32 %v857_v22  ;;  %v856_v24 = vmul.f32 %v854_v23, %v852_v21  ;;  %v5013_v23 = vld [vmem:[%s7966_s11] ss:$0 sm:$0xff] }
 0x10b   : > { %v859_v25 = vmul.f32 1.442695, %v856_v24 }
 0x10d   : > { %6272 = vpow2.f32 %v859_v25 }
 0x116   : > { %v7003_v26 = vpop.eup %6270 }
 0x117   : > { %5665 = vmatprep.mubr.msk.f32.mxu0 %vm888_vm0, %v7003_v26 }
 0x11a   : > { %v7013_v28 = vpop.eup %6272 }
 0x11b   : > { %5666 = vmatmul.mubr.msk.f32.vlgmr.msra.gmra.mxu0 %vm888_vm0, %v7013_v28 }
 0x11c   : > { %5680 = vmatpush3.msra.mxu0 %v1105_v12  ;;  %5687 = vmatprep.mubr.msk.f32.mxu0 %vm888_vm0, %v861_v27 }
 0x11d   : > { %5681 = vmatprep.subr.mxu0 %v1104_v29 }
 0x11e   : > { %5682 = vmatpush3.msra.mxu0 %v1104_v29 }
 0x11f   : > { %5683 = vmatprep.subr.mxu0 %v1103_v30 }
 0x120   : > { %5684 = vmatpush3.msra.mxu0 %v1103_v30 }
 0x121   : > { %5685 = vmatprep.subr.mxu0 %v1102_v31 }
 0x122   : > { %5686 = vmatpush3.msra.mxu0 %v1102_v31 }
 0x123   : > { %5688 = vmatmul.mubr.msk.f32.vlgmr.msra.gmra.mxu0 %vm888_vm0, %v862_v32 }
 0x124   : > { %5690 = vmatprep.mubr.msk.f32.mxu0 %vm888_vm0, %v863_v33 }
 0x127   : > { %5691 = vmatmul.mubr.msk.f32.gmra.mxu0 %vm888_vm0, %v864_v34 }
 0x128   : > { %5693 = vmatprep.mubr.msk.f32.mxu0 %vm888_vm0, %v865_v35 }
 0x12b   : > { %5694 = vmatmul.mubr.msk.f32.gmra.mxu0 %vm888_vm0, %v866_v36 }
 0x12c   : > { %5696 = vmatprep.mubr.msk.f32.mxu0 %vm888_vm0, %v867_v37 }
 0x12f   : > { %5697 = vmatmul.mubr.msk.f32.gmra.mxu0 %vm888_vm0, %v868_v38 }
 0x130   : > { %5699 = vmatprep.mubr.msk.f32.mxu0 %vm888_vm0, %v869_v39 }
 0x133   : > { %5700 = vmatmul.mubr.msk.f32.gmra.mxu0 %vm888_vm0, %v870_v40 }
 0x134   : > { %5702 = vmatprep.mubr.msk.f32.mxu0 %vm888_vm0, %v871_v41 }
 0x137   : > { %5703 = vmatmul.mubr.msk.f32.gmra.mxu0 %vm888_vm0, %v872_v42 }
 0x138   : > { %5705 = vmatprep.mubr.msk.f32.mxu0 %vm888_vm0, %v873_v43 }
 0x13b   : > { %5706 = vmatmul.mubr.msk.f32.gmra.mxu0 %vm888_vm0, %v874_v44 }
 0x13c   : > { %5708 = vmatprep.mubr.msk.f32.mxu0 %vm888_vm0, %v875_v45 }
 0x13f   : > { %5709 = vmatmul.mubr.msk.f32.gmra.mxu0 %vm888_vm0, %v876_v46 }
 0x1db   : > { %v5667_v53 = vpop.f32.mrf.mxu0 }
 0x1dc   : > { %v967_v54 = vadd.f32 %v5667_v53, %v5003_v52 }
 0x1dd   : > { %v961_v55 = vpop.f32.mrf.mxu0 }
 0x1de   : > { %v973_v56 = vand.u32 2147483647, %v967_v54  ;;  %v962_v57 = vadd.f32 %v5003_v52, %v961_v55  ;;  %v971_v22 = vmax.f32 %v967_v54, 0.0  ;;  %v752_v55 = vand.u32 127, %v751_v50 }
 0x1e0   : > { %v975_v58 = vsub.f32 0.0, %v973_v56  ;;  %v972_v59 = vand.u32 2147483647, %v962_v57  ;;  %v970_v24 = vmax.f32 %v962_v57, 0.0  ;;  %vm778_vm2 = vcmp.eq.s32.totalorder %v774_v49, %v752_v55 }
 0x1e2   : > { %v978_v60 = vmul.f32 1.442695, %v975_v58  ;;  %v974_v61 = vsub.f32 0.0, %v972_v59  ;;  %v777_v59 = vpop.permute.xlu1 %776 }
 0x1e3   : > { %v7073_v62 = vpop.f32.mrf.mxu0  ;;  %vm779_vm3 = vcmp.eq.s32.totalorder %v777_v59, %v752_v55 }
 0x1e4   : > { %6274 = vpow2.f32 %v978_v60  ;;  %v976_v63 = vmul.f32 1.442695, %v974_v61  ;;  %v1233_v56 = vadd.f32 %v7073_v62, %v5013_v23  ;;  %vm7099_vm4 = vmpackc.low %vm779_vm3, %vm778_vm2  ;;  %v754_v62 = vshrl.u32 %v751_v50, 7 }
 0x1e5   : > { %v7075_v0 = vpop.f32.mrf.mxu0 }
 0x1e6   : > { %6276 = vpow2.f32 %v976_v63  ;;  %v1228_v57 = vadd.f32 %v5013_v23, %v7075_v0  ;;  %v6712_v63 = vmov 1.0|1.0   ;;  %v755_v0 = vadd.s32 8, %v754_v62 }
 0x1e7   : > { %v7077_v1 = vpop.f32.mrf.mxu0 }
 0x1e8   : > { %v1243_v52 = vadd.f32 %v7077_v1, %v5013_v23  ;;  %v1306_v60 = vpack.c.bf16 %v1233_v56, %v1228_v57  ;;  %v5001_v1 = vld [vmem:[%s647_s16] ss:$0 sm:$0xff]  ;;  %s8022_s16 = sld [smem:[#allocation23_spill]] }
 0x1e9   : > { %v7079_v2 = vpop.f32.mrf.mxu0  ;;  %vm788_vm5 = vcmp.eq.s32.totalorder %v754_v62, %v5001_v1  ;;  %vm789_vm6 = vcmp.eq.s32.totalorder %v755_v0, %v5001_v1 }
 0x1ea   : > { %v1238_v53 = vadd.f32 %v5013_v23, %v7079_v2  ;;  %v756_v2 = vadd.s32 16, %v754_v62 }
 0x1eb   : > { %v5695_v3 = vpop.f32.mrf.mxu0 }
 0x1ec   : > { %v1253_v46 = vadd.f32 %v5695_v3, %v5013_v23  ;;  %v1307_v58 = vpack.c.bf16 %v1243_v52, %v1238_v53  ;;  %v757_v3 = vadd.s32 24, %v754_v62  ;;  %vm790_vm8 = vcmp.eq.s32.totalorder %v756_v2, %v5001_v1 }
 0x1ed   : > { %v1247_v4 = vpop.f32.mrf.mxu0 }
 0x1ee   : > { %v1248_v47 = vadd.f32 %v5013_v23, %v1247_v4  ;;  %v804_v4 = vsel %vm788_vm5, 1.0, %v6710_v51  ;;  %vm791_vm9 = vcmp.eq.s32.totalorder %v757_v3, %v5001_v1 }
 0x1ef   : > { %v5698_v5 = vpop.f32.mrf.mxu0 }
 0x1f0   : > { %v1263_v43 = vadd.f32 %v5698_v5, %v5013_v23  ;;  %v1308_v54 = vpack.c.bf16 %v1253_v46, %v1248_v47  ;;  %v805_v5 = vsel %vm789_vm6, 1.0, %v6710_v51 }
 0x1f1   : > { %v6275_v6 = vpop.eup %6274  ;;  %v1257_v7 = vpop.f32.mrf.mxu0 }
 0x1f2   : > { %v981_v8 = vadd.f32 1.0, %v6275_v6  ;;  %v1258_v44 = vadd.f32 %v5013_v23, %v1257_v7  ;;  %v7110_v6 = vpack.c.bf16 %v805_v5, %v804_v4  ;;  %v806_v7 = vsel %vm790_vm8, 1.0, %v6710_v51 }
 0x1f3   : > { %v6277_v9 = vpop.eup %6276  ;;  %v5701_v10 = vpop.f32.mrf.mxu0 }
 0x1f4   : > { %6278 = vlog2.f32 %v981_v8  ;;  %v980_v11 = vadd.f32 1.0, %v6277_v9  ;;  %v1273_v40 = vadd.f32 %v5701_v10, %v5013_v23  ;;  %v1309_v48 = vpack.c.bf16 %v1263_v43, %v1258_v44  ;;  %5733 = vmatprep.mubr.msk.bf16.mxu0 %vm1358_vm7, %v7110_v6  ;;  %v5008_v43 = vld [vmem:[%s7964_s9] ss:$0 sm:$0xff] }
 0x1f5   : > { %v1267_v12 = vpop.f32.mrf.mxu0  ;;  %v807_v8 = vsel %vm791_vm9, 1.0, %v6710_v51  ;;  %v758_v10 = vadd.s32 32, %v754_v62 }
 0x1f6   : > { %6280 = vlog2.f32 %v980_v11  ;;  %v1268_v41 = vadd.f32 %v5013_v23, %v1267_v12  ;;  %v7116_v9 = vpack.c.bf16 %v807_v8, %v806_v7  ;;  %v759_v11 = vadd.s32 40, %v754_v62 }
 0x1f7   : > { %v5704_v13 = vpop.f32.mrf.mxu0  ;;  %v760_v12 = vadd.s32 48, %v754_v62  ;;  %vm792_vm10 = vcmp.eq.s32.totalorder %v758_v10, %v5001_v1 }
 0x1f8   : > { %v1283_v38 = vadd.f32 %v5704_v13, %v5013_v23  ;;  %v1310_v45 = vpack.c.bf16 %v1273_v40, %v1268_v41  ;;  %v761_v13 = vadd.s32 56, %v754_v62  ;;  %vm793_vm11 = vcmp.eq.s32.totalorder %v759_v11, %v5001_v1 }
 0x1f9   : > { %v1277_v14 = vpop.f32.mrf.mxu0  ;;  %vm794_vm12 = vcmp.eq.s32.totalorder %v760_v12, %v5001_v1 }
 0x1fa   : > { %v1278_v39 = vadd.f32 %v5013_v23, %v1277_v14  ;;  %v808_v14 = vsel %vm792_vm10, 1.0, %v6710_v51  ;;  %vm795_vm13 = vcmp.eq.s32.totalorder %v761_v13, %v5001_v1 }
 0x1fb   : > { %v5707_v15 = vpop.f32.mrf.mxu0 }
 0x1fc   : > { %v1293_v32 = vadd.f32 %v5707_v15, %v5013_v23  ;;  %v1311_v42 = vpack.c.bf16 %v1283_v38, %v1278_v39  ;;  %v809_v15 = vsel %vm793_vm11, 1.0, %v6710_v51 }
 0x1fd   : > { %v1287_v16 = vpop.f32.mrf.mxu0 }
 0x1fe   : > { %v1288_v33 = vadd.f32 %v5013_v23, %v1287_v16  ;;  %v7120_v16 = vpack.c.bf16 %v809_v15, %v808_v14 }
 0x1ff   : > { %v5710_v17 = vpop.f32.mrf.mxu0 }
 0x200   : > { %v1303_v25 = vadd.f32 %v5710_v17, %v5013_v23  ;;  %v1312_v37 = vpack.c.bf16 %v1293_v32, %v1288_v33  ;;  %v810_v17 = vsel %vm794_vm12, 1.0, %v6710_v51  ;;  %v766_v32 = vadd.s32 96, %v754_v62 }
 0x201   : > { %v6279_v18 = vpop.eup %6278  ;;  %v1297_v19 = vpop.f32.mrf.mxu0  ;;  %v767_v33 = vadd.s32 104, %v754_v62 }
 0x202   : > { %v985_v20 = vmul.f32 0.6931472, %v6279_v18  ;;  %v1298_v27 = vadd.f32 %v5013_v23, %v1297_v19  ;;  %v811_v18 = vsel %vm795_vm13, 1.0, %v6710_v51  ;;  %v765_v23 = vadd.s32 88, %v754_v62 }
 0x203   : > { %v6281_v21 = vpop.eup %6280  ;;  %v7124_v19 = vpack.c.bf16 %v811_v18, %v810_v17  ;;  %vm800_vm5 = vcmp.eq.s32.totalorder %v766_v32, %v5001_v1  ;;  %vm801_vm6 = vcmp.eq.s32.totalorder %v767_v33, %v5001_v1  ;;  %v1482_v17 = vld [vmem:[%s7967_s12 + $0x10] sm:$0xff]  ;;  %v1481_v18 = vld [vmem:[%s7967_s12 + $0x8] sm:$0xff] }
 0x204   : > { %v983_v29 = vmul.f32 0.6931472, %v6281_v21  ;;  %v987_v30 = vadd.f32 %v985_v20, %v971_v22  ;;  %v1313_v34 = vpack.c.bf16 %v1303_v25, %v1298_v27  ;;  %v762_v20 = vadd.s32 64, %v754_v62  ;;  %v5091_v32 = vld [vmem:[%s7961_s6 + $0x28] sm:$0xff] }
 0x205   : > { %v763_v21 = vadd.s32 72, %v754_v62  ;;  %v764_v22 = vadd.s32 80, %v754_v62  ;;  %vm799_vm3 = vcmp.eq.s32.totalorder %v765_v23, %v5001_v1 }
 0x206   : > { %v986_v31 = vadd.f32 %v983_v29, %v970_v24  ;;  %v5007_v36 = vadd.f32 -0.6931472, %v987_v30  ;;  %vm796_vm14 = vcmp.eq.s32.totalorder %v762_v20, %v5001_v1  ;;  %v815_v30 = vsel %vm799_vm3, 1.0, %v6710_v51  ;;  %v1480_v20 = vld [vmem:[%s7967_s12] sm:$0xff] }
 0x207   : > { %vm797_vm15 = vcmp.eq.s32.totalorder %v763_v21, %v5001_v1  ;;  %v812_v24 = vsel %vm796_vm14, 1.0, %v6710_v51  ;;  %vm798_vm2 = vcmp.eq.s32.totalorder %v764_v22, %v5001_v1  ;;  %v5093_v21 = vld [vmem:[%s7961_s6 + $0x38] sm:$0xff] }
 0x208   : > { %v5006_v35 = vadd.f32 -0.6931472, %v986_v31  ;;  %v813_v25 = vsel %vm797_vm15, 1.0, %v6710_v51  ;;  %v814_v29 = vsel %vm798_vm2, 1.0, %v6710_v51 }
 0x209   : > { %v7128_v27 = vpack.c.bf16 %v813_v25, %v812_v24  ;;  %v7132_v31 = vpack.c.bf16 %v815_v30, %v814_v29  ;;  %v5092_v29 = vld [vmem:[%s7961_s6 + $0x30] sm:$0xff] }
 0x20a   : > { %5676 = vmatprep.mubr.msk.f32.mxu1 %vm888_vm0, %v5006_v35  ;;  %v769_v35 = vadd.s32 120, %v754_v62 }
 0x20b   : > { %5677 = vmatmul.mubr.msk.f32.vlgmr.msra.gmra.mxu1 %vm888_vm0, %v5007_v36  ;;  %v816_v36 = vsel %vm800_vm5, 1.0, %v6710_v51 }
 0x20c   : > { %5712 = vmatpush3.bf16.msra.mxu1 %v1313_v34  ;;  %5727 = vmatprep.mubr.msk.bf16.mxu1 %vm6711_vm1, %v6710_v51  ;;  %v768_v34 = vadd.s32 112, %v754_v62  ;;  %vm803_vm9 = vcmp.eq.s32.totalorder %v769_v35, %v5001_v1 }
 0x20d   : > { %5713 = vmatprep.subr.bf16.mxu1 %v6710_v51  ;;  %v819_v40 = vsel %vm803_vm9, 1.0, %v6710_v51 }
 0x20e   : > { %vm802_vm8 = vcmp.eq.s32.totalorder %v768_v34, %v5001_v1  ;;  %v5090_v34 = vld [vmem:[%s7961_s6 + $0x20] sm:$0xff] }
 0x20f   : > { %v818_v39 = vsel %vm802_vm8, 1.0, %v6710_v51 }
 0x210   : > { %5714 = vmatpush3.bf16.msra.mxu1 %v1312_v37  ;;  %v817_v37 = vsel %vm801_vm6, 1.0, %v6710_v51  ;;  %v7140_v41 = vpack.c.bf16 %v819_v40, %v818_v39 }
 0x211   : > { %5715 = vmatprep.subr.bf16.mxu1 %v6710_v51  ;;  %v7136_v38 = vpack.c.bf16 %v817_v37, %v816_v36 }
 0x214   : > { %5716 = vmatpush3.bf16.msra.mxu1 %v1311_v42  ;;  %v1483_v42 = vld [vmem:[%s7967_s12 + $0x18] sm:$0xff] }
 0x215   : > { %5717 = vmatprep.subr.bf16.mxu1 %v6710_v51 }
 0x218   : > { %5718 = vmatpush3.bf16.msra.mxu1 %v1310_v45 }
 0x219   : > { %5719 = vmatprep.subr.bf16.mxu1 %v6710_v51 }
 0x21c   : > { %5720 = vmatpush3.bf16.msra.mxu1 %v1309_v48 }
 0x21d   : > { %5721 = vmatprep.subr.bf16.mxu1 %v6710_v51 }
 0x220   : > { %5722 = vmatpush3.bf16.msra.mxu1 %v1308_v54 }
 0x221   : > { %5723 = vmatprep.subr.bf16.mxu1 %v6710_v51 }
 0x224   : > { %5724 = vmatpush3.bf16.msra.mxu1 %v1307_v58 }
 0x225   : > { %5725 = vmatprep.subr.bf16.mxu1 %v6710_v51 }
 0x228   : > { %5726 = vmatpush3.bf16.msra.mxu1 %v1306_v60 }
 0x229   : > { %5749 = vmatprep.subr.mxu1 %v1483_v42 }
 0x22b   : > { %5728 = vmatmul.mubr.msk.bf16.vlgmr.msra.gmra.mxu1 %vm7099_vm4, %v6712_v63 }
 0x22c   : > { %5750 = vmatpush3.msra.mxu1 %v1483_v42 }
 0x22d   : > { %5751 = vmatprep.subr.mxu1 %v1482_v17 }
 0x22e   : > { %5752 = vmatpush3.msra.mxu1 %v1482_v17 }
 0x22f   : > { %5753 = vmatprep.subr.mxu1 %v1481_v18 }
 0x230   : > { %5754 = vmatpush3.msra.mxu1 %v1481_v18 }
 0x231   : > { %5755 = vmatprep.subr.mxu1 %v1480_v20 }
 0x232   : > { %5756 = vmatpush3.msra.mxu1 %v1480_v20 }
 0x233   : > { %5813 = vmatprep.subr.mxu1 %v5093_v21 }
 0x2cb   : > { %v5678_v44 = vpop.f32.mrf.mxu1 }
 0x2cc   : > { %v1079_v45 = vadd.f32 %v5678_v44, %v5008_v43 }
 0x2cd   : > { %v1073_v46 = vpop.f32.mrf.mxu1 }
 0x2ce   : > { %v1085_v47 = vand.u32 2147483647, %v1079_v45  ;;  %v1074_v48 = vadd.f32 %v5008_v43, %v1073_v46  ;;  %v1083_v2 = vmax.f32 %v1079_v45, 0.0 }
 0x2d0   : > { %v1087_v49 = vsub.f32 0.0, %v1085_v47  ;;  %v1084_v50 = vand.u32 2147483647, %v1074_v48  ;;  %v1082_v5 = vmax.f32 %v1074_v48, 0.0  ;;  %v1847_v47 = vld [vmem:[#allocation7 + $0x18] sm:$0xff]  ;;  %v1846_v48 = vld [vmem:[#allocation7 + $0x10] sm:$0xff] }
 0x2d2   : > { %v1090_v52 = vmul.f32 1.442695, %v1087_v49  ;;  %v1086_v53 = vsub.f32 0.0, %v1084_v50  ;;  %v1845_v49 = vld [vmem:[#allocation7 + $0x8] sm:$0xff]  ;;  %v1844_v50 = vld [vmem:[#allocation7] sm:$0xff] }
 0x2d4   : > { %6282 = vpow2.f32 %v1090_v52  ;;  %v1088_v54 = vmul.f32 1.442695, %v1086_v53  ;;  %v5103_v52 = vld [vmem:[%s7963_s8 + $0x38] sm:$0xff]  ;;  %v5102_v53 = vld [vmem:[%s7963_s8 + $0x30] sm:$0xff] }
 0x2d6   : > { %6284 = vpow2.f32 %v1088_v54  ;;  %v5101_v54 = vld [vmem:[%s7963_s8 + $0x28] sm:$0xff] }
 0x2e1   : > { %v6283_v55 = vpop.eup %6282 }
 0x2e2   : > { %v1093_v56 = vadd.f32 1.0, %v6283_v55  ;;  %v5100_v55 = vld [vmem:[%s7963_s8 + $0x20] sm:$0xff] }
 0x2e3   : > { %v6285_v57 = vpop.eup %6284 }
 0x2e4   : > { %6286 = vlog2.f32 %v1093_v56  ;;  %v1092_v58 = vadd.f32 1.0, %v6285_v57  ;;  %v7219_v56 = vld [vmem:[%s7965_s10 + $0x38] sm:$0xff]  ;;  %v7225_v57 = vld [vmem:[%s7968_s13] ss:$0 sm:$0xff] }
 0x2e6   : > { %6288 = vlog2.f32 %v1092_v58 }
 0x2eb   : > { %v1348_v59 = vpop.f32.mrf.mxu1 }
 0x2ed   : > { %v5729_v60 = vpop.f32.mrf.mxu1 }
 0x2ef   : > { %v1351_v62 = vpop.f32.mrf.mxu1 }
 0x2f1   : > { %v6287_v0 = vpop.eup %6286  ;;  %v5730_v1 = vpop.f32.mrf.mxu1 }
 0x2f2   : > { %v1097_v3 = vmul.f32 0.6931472, %v6287_v0 }
 0x2f3   : > { %v6289_v4 = vpop.eup %6288 }
 0x2f4   : > { %v1095_v7 = vmul.f32 0.6931472, %v6289_v4  ;;  %v1099_v8 = vadd.f32 %v1097_v3, %v1083_v2 }
 0x2f6   : > { %v1098_v10 = vadd.f32 %v1095_v7, %v1082_v5  ;;  %v5012_v11 = vadd.f32 -0.6931472, %v1099_v8 }
 0x2f8   : > { %v5011_v12 = vadd.f32 -0.6931472, %v1098_v10  ;;  %v1356_v14 = vmul.f32 %v5012_v11, %v1351_v62 }
 0x2fa   : > { %v1355_v13 = vmul.f32 %v5011_v12, %v1348_v59 }
 0x2fc   : > { %v1357_v15 = vpack.c.bf16 %v1356_v14, %v1355_v13 }
 0x2fe   : > { %5731 = vmatprep.subr.bf16.mxu0 %v1357_v15 }
 0x2ff   : > { %5732 = vmatpush3.bf16.msra.mxu0 %v1357_v15 }
 0x300   : > { %5781 = vmatprep.subr.mxu0 %v1847_v47 }
 0x302   : > { %5734 = vmatmul.mubr.msk.bf16.vlgmr.msra.gmra.mxu0 %vm1358_vm7, %v7116_v9 }
 0x303   : > { %5737 = vmatprep.mubr.msk.bf16.mxu0 %vm1358_vm7, %v7120_v16  ;;  %5782 = vmatpush3.msra.mxu0 %v1847_v47 }
 0x304   : > { %5783 = vmatprep.subr.mxu0 %v1846_v48 }
 0x305   : > { %5784 = vmatpush3.msra.mxu0 %v1846_v48 }
 0x306   : > { %5785 = vmatprep.subr.mxu0 %v1845_v49 }
 0x307   : > { %5786 = vmatpush3.msra.mxu0 %v1845_v49 }
 0x308   : > { %5787 = vmatprep.subr.mxu0 %v1844_v50 }
 0x309   : > { %5788 = vmatpush3.msra.mxu0 %v1844_v50 }
 0x30a   : > { %5738 = vmatmul.mubr.msk.bf16.gmra.mxu0 %vm1358_vm7, %v7124_v19  ;;  %5867 = vmatprep.subr.bf16.mxu0 %v6710_v51 }
 0x30b   : > { %5741 = vmatprep.mubr.msk.bf16.mxu0 %vm1358_vm7, %v7128_v27 }
 0x312   : > { %5742 = vmatmul.mubr.msk.bf16.gmra.mxu0 %vm1358_vm7, %v7132_v31 }
 0x313   : > { %5745 = vmatprep.mubr.msk.bf16.mxu0 %vm1358_vm7, %v7136_v38 }
 0x31a   : > { %5746 = vmatmul.mubr.msk.bf16.gmra.mxu0 %vm1358_vm7, %v7140_v41 }
 0x3c2   : > { %v5735_v22 = vpop.f32.mrf.mxu0 }
 0x3c4   : > { %v1417_v23 = vpop.f32.mrf.mxu0 }
 0x3c5   : > { %5757 = vmatprep.mubr.msk.f32.mxu1 %vm888_vm0, %v1417_v23 }
 0x3c6   : > { %v5736_v24 = vpop.f32.mrf.mxu0 }
 0x3c8   : > { %v1420_v25 = vpop.f32.mrf.mxu0 }
 0x3c9   : > { %5758 = vmatmul.mubr.msk.f32.vlgmr.msra.gmra.mxu1 %vm888_vm0, %v1420_v25 }
 0x3ca   : > { %v5739_v30 = vpop.f32.mrf.mxu0  ;;  %5760 = vmatprep.mubr.msk.f32.mxu1 %vm888_vm0, %v5735_v22  ;;  %5814 = vmatpush3.msra.mxu1 %v5093_v21 }
 0x3cb   : > { %5815 = vmatprep.subr.mxu1 %v5092_v29 }
 0x3cc   : > { %v1433_v33 = vpop.f32.mrf.mxu0  ;;  %5816 = vmatpush3.msra.mxu1 %v5092_v29 }
 0x3cd   : > { %5761 = vmatmul.mubr.msk.f32.gmra.mxu1 %vm888_vm0, %v5736_v24  ;;  %5817 = vmatprep.subr.mxu1 %v5091_v32 }
 0x3ce   : > { %v5740_v35 = vpop.f32.mrf.mxu0  ;;  %5763 = vmatprep.mubr.msk.f32.mxu1 %vm888_vm0, %v1433_v33  ;;  %5818 = vmatpush3.msra.mxu1 %v5091_v32 }
 0x3cf   : > { %5819 = vmatprep.subr.mxu1 %v5090_v34 }
 0x3d0   : > { %v1436_v36 = vpop.f32.mrf.mxu0  ;;  %5820 = vmatpush3.msra.mxu1 %v5090_v34 }
 0x3d1   : > { %5764 = vmatmul.mubr.msk.f32.gmra.mxu1 %vm888_vm0, %v1436_v36  ;;  %5824 = vmatprep.subr.mxu1 %v5103_v52 }
 0x3d2   : > { %v5743_v37 = vpop.f32.mrf.mxu0  ;;  %5766 = vmatprep.mubr.msk.f32.mxu1 %vm888_vm0, %v5739_v30 }
 0x3d4   : > { %v1449_v39 = vpop.f32.mrf.mxu0 }
 0x3d5   : > { %5767 = vmatmul.mubr.msk.f32.gmra.mxu1 %vm888_vm0, %v5740_v35 }
 0x3d6   : > { %v5744_v40 = vpop.f32.mrf.mxu0  ;;  %5769 = vmatprep.mubr.msk.f32.mxu1 %vm888_vm0, %v1449_v39 }
 0x3d8   : > { %v1452_v42 = vpop.f32.mrf.mxu0 }
 0x3d9   : > { %5770 = vmatmul.mubr.msk.f32.gmra.mxu1 %vm888_vm0, %v1452_v42 }
 0x3da   : > { %v5747_v43 = vpop.f32.mrf.mxu0  ;;  %5772 = vmatprep.mubr.msk.f32.mxu1 %vm888_vm0, %v5743_v37 }
 0x3dc   : > { %v1465_v44 = vpop.f32.mrf.mxu0 }
 0x3dd   : > { %5773 = vmatmul.mubr.msk.f32.gmra.mxu1 %vm888_vm0, %v5744_v40 }
 0x3de   : > { %v5748_v45 = vpop.f32.mrf.mxu0  ;;  %5775 = vmatprep.mubr.msk.f32.mxu1 %vm888_vm0, %v1465_v44 }
 0x3e0   : > { %v1468_v46 = vpop.f32.mrf.mxu0 }
 0x3e1   : > { %5776 = vmatmul.mubr.msk.f32.gmra.mxu1 %vm888_vm0, %v1468_v46 }
 0x3e2   : > { %5778 = vmatprep.mubr.msk.f32.mxu1 %vm888_vm0, %v5747_v43 }
 0x3e5   : > { %5779 = vmatmul.mubr.msk.f32.gmra.mxu1 %vm888_vm0, %v5748_v45 }
 0x3e6   : > { %5821 = vmatprep.mubr.msk.f32.mxu1 %vm888_vm0, %v7003_v26 }
 0x3e9   : > { %5822 = vmatmul.mubr.msk.f32.vlgmr.msra.gmra.mxu1 %vm888_vm0, %v7013_v28 }
 0x3ea   : > { %5825 = vmatpush3.msra.mxu1 %v5103_v52 }
 0x3eb   : > { %5826 = vmatprep.subr.mxu1 %v5102_v53 }
 0x3ec   : > { %5827 = vmatpush3.msra.mxu1 %v5102_v53 }
 0x3ed   : > { %5828 = vmatprep.subr.mxu1 %v5101_v54 }
 0x3ee   : > { %5829 = vmatpush3.msra.mxu1 %v5101_v54 }
 0x3ef   : > { %5830 = vmatprep.subr.mxu1 %v5100_v55 }
 0x3f0   : > { %5831 = vmatpush3.msra.mxu1 %v5100_v55 }
 0x3f1   : > { %5835 = vmatprep.subr.mxu1 %v7219_v56 }
 0x489   : > { %v5759_v58 = vpop.f32.mrf.mxu1 }
 0x48a   : > { %v7228_v59 = vadd.f32 %v5759_v58, %v7225_v57 }
 0x48b   : > { %v1605_v60 = vpop.f32.mrf.mxu1 }
 0x48c   : > { %v1701_v62 = vand.u32 2147483647, %v7228_v59  ;;  %v7232_v0 = vadd.f32 %v7225_v57, %v1605_v60 }
 0x48d   : > { %v5762_v1 = vpop.f32.mrf.mxu1 }
 0x48e   : > { %v1717_v2 = vsub.f32 0.0, %v1701_v62  ;;  %v1700_v3 = vand.u32 2147483647, %v7232_v0  ;;  %v7236_v4 = vadd.f32 %v5762_v1, %v7225_v57 }
 0x48f   : > { %v1615_v5 = vpop.f32.mrf.mxu1 }
 0x490   : > { %v1734_v7 = vmul.f32 1.442695, %v1717_v2  ;;  %v1716_v8 = vsub.f32 0.0, %v1700_v3  ;;  %v1703_v10 = vand.u32 2147483647, %v7236_v4  ;;  %v7240_v11 = vadd.f32 %v7225_v57, %v1615_v5 }
 0x491   : > { %v5765_v12 = vpop.f32.mrf.mxu1 }
 0x492   : > { %6290 = vpow2.f32 %v1734_v7  ;;  %v1732_v13 = vmul.f32 1.442695, %v1716_v8  ;;  %v1719_v14 = vsub.f32 0.0, %v1703_v10  ;;  %v7243_v15 = vadd.f32 %v5765_v12, %v7225_v57 }
 0x493   : > { %v1702_v17 = vand.u32 2147483647, %v7240_v11  ;;  %v1625_v18 = vpop.f32.mrf.mxu1 }
 0x494   : > { %6292 = vpow2.f32 %v1732_v13  ;;  %v1738_v20 = vmul.f32 1.442695, %v1719_v14  ;;  %v1705_v21 = vand.u32 2147483647, %v7243_v15  ;;  %v7248_v23 = vadd.f32 %v7225_v57, %v1625_v18 }
 0x495   : > { %v1718_v22 = vsub.f32 0.0, %v1702_v17  ;;  %v5768_v24 = vpop.f32.mrf.mxu1 }
 0x496   : > { %6294 = vpow2.f32 %v1738_v20  ;;  %v1721_v25 = vsub.f32 0.0, %v1705_v21  ;;  %v7251_v29 = vadd.f32 %v5768_v24, %v7225_v57  ;;  %v1704_v32 = vand.u32 2147483647, %v7248_v23 }
 0x497   : > { %v1736_v30 = vmul.f32 1.442695, %v1718_v22  ;;  %v1635_v33 = vpop.f32.mrf.mxu1 }
 0x498   : > { %v1742_v34 = vmul.f32 1.442695, %v1721_v25  ;;  %v1707_v35 = vand.u32 2147483647, %v7251_v29  ;;  %v7256_v36 = vadd.f32 %v7225_v57, %v1635_v33  ;;  %v1720_v37 = vsub.f32 0.0, %v1704_v32 }
 0x499   : > { %6296 = vpow2.f32 %v1736_v30  ;;  %v5771_v39 = vpop.f32.mrf.mxu1 }
 0x49a   : > { %6298 = vpow2.f32 %v1742_v34  ;;  %v1723_v40 = vsub.f32 0.0, %v1707_v35  ;;  %v1706_v42 = vand.u32 2147483647, %v7256_v36  ;;  %v1740_v43 = vmul.f32 1.442695, %v1720_v37 }
 0x49b   : > { %v7260_v44 = vadd.f32 %v5771_v39, %v7225_v57  ;;  %v1645_v45 = vpop.f32.mrf.mxu1 }
 0x49c   : > { %v1746_v46 = vmul.f32 1.442695, %v1723_v40  ;;  %v1722_v47 = vsub.f32 0.0, %v1706_v42  ;;  %v7263_v48 = vadd.f32 %v7225_v57, %v1645_v45  ;;  %6300 = vpow2.f32 %v1740_v43 }
 0x49d   : > { %v1709_v49 = vand.u32 2147483647, %v7260_v44  ;;  %v5774_v50 = vpop.f32.mrf.mxu1 }
 0x49e   : > { %6302 = vpow2.f32 %v1746_v46  ;;  %v1744_v52 = vmul.f32 1.442695, %v1722_v47  ;;  %v1708_v53 = vand.u32 2147483647, %v7263_v48  ;;  %v7268_v58 = vadd.f32 %v5774_v50, %v7225_v57 }
 0x49f   : > { %v6291_v54 = vpop.eup %6290  ;;  %v1725_v55 = vsub.f32 0.0, %v1709_v49  ;;  %v1655_v60 = vpop.f32.mrf.mxu1 }
 0x4a0   : > { %v1765_v62 = vadd.f32 1.0, %v6291_v54  ;;  %6304 = vpow2.f32 %v1744_v52  ;;  %v1724_v1 = vsub.f32 0.0, %v1708_v53  ;;  %v7271_v2 = vadd.f32 %v7225_v57, %v1655_v60  ;;  %v5095_v52 = vld [vmem:[%s7962_s7 + $0x1] ss:$0 sm:$0xff] }
 0x4a1   : > { %v6293_v3 = vpop.eup %6292  ;;  %v1750_v5 = vmul.f32 1.442695, %v1725_v55  ;;  %v1711_v7 = vand.u32 2147483647, %v7268_v58  ;;  %v5777_v8 = vpop.f32.mrf.mxu1 }
 0x4a2   : > { %6306 = vlog2.f32 %v1765_v62  ;;  %v1764_v10 = vadd.f32 1.0, %v6293_v3  ;;  %v1748_v12 = vmul.f32 1.442695, %v1724_v1  ;;  %v1710_v17 = vand.u32 2147483647, %v7271_v2 }
 0x4a3   : > { %v6295_v13 = vpop.eup %6294  ;;  %6308 = vpow2.f32 %v1750_v5  ;;  %v1727_v14 = vsub.f32 0.0, %v1711_v7  ;;  %v7276_v18 = vadd.f32 %v5777_v8, %v7225_v57  ;;  %v1665_v20 = vpop.f32.mrf.mxu1 }
 0x4a4   : > { %6310 = vlog2.f32 %v1764_v10  ;;  %v1767_v21 = vadd.f32 1.0, %v6295_v13  ;;  %v7279_v22 = vadd.f32 %v7225_v57, %v1665_v20  ;;  %v1726_v25 = vsub.f32 0.0, %v1710_v17 }
 0x4a5   : > { %6312 = vpow2.f32 %v1748_v12  ;;  %v1754_v24 = vmul.f32 1.442695, %v1727_v14  ;;  %v5780_v30 = vpop.f32.mrf.mxu1  ;;  %v1713_v33 = vand.u32 2147483647, %v7276_v18 }
 0x4a6   : > { %v6297_v32 = vpop.eup %6296  ;;  %6314 = vlog2.f32 %v1767_v21  ;;  %v1712_v34 = vand.u32 2147483647, %v7279_v22  ;;  %v1752_v39 = vmul.f32 1.442695, %v1726_v25  ;;  %v7284_v40 = vadd.f32 %v5780_v30, %v7225_v57 }
 0x4a7   : > { %v6299_v35 = vpop.eup %6298  ;;  %v1766_v37 = vadd.f32 1.0, %v6297_v32  ;;  %6316 = vpow2.f32 %v1754_v24  ;;  %v1675_v42 = vpop.f32.mrf.mxu1  ;;  %v1729_v45 = vsub.f32 0.0, %v1713_v33 }
 0x4a8   : > { %v1769_v43 = vadd.f32 1.0, %v6299_v35  ;;  %v1728_v46 = vsub.f32 0.0, %v1712_v34  ;;  %v7287_v47 = vadd.f32 %v7225_v57, %v1675_v42  ;;  %v1715_v49 = vand.u32 2147483647, %v7284_v40 }
 0x4a9   : > { %6318 = vlog2.f32 %v1766_v37  ;;  %v5823_v50 = vpop.f32.mrf.mxu1  ;;  %v6301_v53 = vpop.eup %6300  ;;  %v1758_v54 = vmul.f32 1.442695, %v1729_v45  ;;  %v1685_v34 = vmax.f32 %v7228_v59, 0.0  ;;  %v1684_v42 = vmax.f32 %v7232_v0, 0.0 }
 0x4aa   : > { %6320 = vlog2.f32 %v1769_v43  ;;  %v1756_v55 = vmul.f32 1.442695, %v1728_v46  ;;  %v1768_v62 = vadd.f32 1.0, %v6301_v53  ;;  %v1731_v1 = vsub.f32 0.0, %v1715_v49 }
 0x4ab   : > { %v6303_v60 = vpop.eup %6302  ;;  %6322 = vpow2.f32 %v1752_v39  ;;  %v1714_v3 = vand.u32 2147483647, %v7287_v47  ;;  %v2127_v57 = vpop.f32.mrf.mxu1  ;;  %v7294_v7 = vadd.f32 %v5823_v50, %v5095_v52 }
 0x4ac   : > { %v1771_v5 = vadd.f32 1.0, %v6303_v60  ;;  %6324 = vpow2.f32 %v1758_v54  ;;  %v7296_v8 = vadd.f32 %v5095_v52, %v2127_v57  ;;  %v1762_v12 = vmul.f32 1.442695, %v1731_v1 }
 0x4ad   : > { %v6305_v10 = vpop.eup %6304  ;;  %6326 = vlog2.f32 %v1768_v62  ;;  %v1730_v13 = vsub.f32 0.0, %v1714_v3  ;;  %v2139_v17 = vand.u32 2147483647, %v7294_v7  ;;  %v1687_v1 = vmax.f32 %v7236_v4, 0.0 }
 0x4ae   : > { %6328 = vlog2.f32 %v1771_v5  ;;  %v1770_v14 = vadd.f32 1.0, %v6305_v10  ;;  %v2138_v24 = vand.u32 2147483647, %v7296_v8  ;;  %v1686_v57 = vmax.f32 %v7240_v11, 0.0 }
 0x4af   : > { %v6307_v20 = vpop.eup %6306  ;;  %6330 = vpow2.f32 %v1756_v55  ;;  %v1760_v21 = vmul.f32 1.442695, %v1730_v13  ;;  %v2141_v32 = vsub.f32 0.0, %v2139_v17  ;;  %v1689_v4 = vmax.f32 %v7243_v15, 0.0 }
 0x4b0   : > { %v6309_v25 = vpop.eup %6308  ;;  %v1783_v30 = vmul.f32 0.6931472, %v6307_v20  ;;  %6332 = vlog2.f32 %v1770_v14  ;;  %v2140_v37 = vsub.f32 0.0, %v2138_v24  ;;  %v1688_v11 = vmax.f32 %v7248_v23, 0.0 }
 0x4b1   : > { %v6311_v33 = vpop.eup %6310  ;;  %v1773_v35 = vadd.f32 1.0, %v6309_v25  ;;  %6334 = vpow2.f32 %v1762_v12  ;;  %v2144_v45 = vmul.f32 1.442695, %v2141_v32  ;;  %v1691_v15 = vmax.f32 %v7251_v29, 0.0 }
 0x4b2   : > { %v6313_v39 = vpop.eup %6312  ;;  %v1781_v43 = vmul.f32 0.6931472, %v6311_v33  ;;  %6336 = vpow2.f32 %v1760_v21  ;;  %v1813_v49 = vadd.f32 %v1783_v30, %v1685_v34  ;;  %v2142_v52 = vmul.f32 1.442695, %v2140_v37 }
 0x4b3   : > { %v6315_v46 = vpop.eup %6314  ;;  %6338 = vlog2.f32 %v1773_v35  ;;  %v1772_v50 = vadd.f32 1.0, %v6313_v39 }
 0x4b4   : > { %v6317_v53 = vpop.eup %6316  ;;  %v1812_v54 = vadd.f32 %v1781_v43, %v1684_v42  ;;  %v1787_v55 = vmul.f32 0.6931472, %v6315_v46  ;;  %6340 = vpow2.f32 %v2144_v45  ;;  %v5058_v3 = vadd.f32 -0.6931472, %v1813_v49 }
 0x4b5   : > { %6342 = vlog2.f32 %v1772_v50  ;;  %v1775_v59 = vadd.f32 1.0, %v6317_v53  ;;  %v1690_v46 = vmax.f32 %v7256_v36, 0.0  ;;  %v1693_v36 = vmax.f32 %v7260_v44, 0.0 }
 0x4b6   : > { %v6319_v60 = vpop.eup %6318  ;;  %v5057_v62 = vadd.f32 -0.6931472, %v1812_v54  ;;  %6344 = vpow2.f32 %v2142_v52  ;;  %v1815_v12 = vadd.f32 %v1787_v55, %v1687_v1 }
 0x4b7   : > { %v6321_v0 = vpop.eup %6320  ;;  %v1785_v5 = vmul.f32 0.6931472, %v6319_v60  ;;  %6346 = vlog2.f32 %v1775_v59 }
 0x4b8   : > { %v6323_v10 = vpop.eup %6322  ;;  %v1791_v13 = vmul.f32 0.6931472, %v6321_v0  ;;  %5789 = vmatprep.mubr.msk.f32.mxu0 %vm888_vm0, %v5057_v62  ;;  %v5060_v34 = vadd.f32 -0.6931472, %v1815_v12 }
 0x4b9   : > { %v6325_v14 = vpop.eup %6324  ;;  %v1814_v17 = vadd.f32 %v1785_v5, %v1686_v57  ;;  %v1774_v20 = vadd.f32 1.0, %v6323_v10  ;;  %5790 = vmatmul.mubr.msk.f32.vlgmr.msra.gmra.mxu0 %vm888_vm0, %v5058_v3  ;;  %v1692_v5 = vmax.f32 %v7263_v48, 0.0  ;;  %v1694_v48 = vmax.f32 %v7271_v2, 0.0 }
 0x4ba   : > { %v6327_v21 = vpop.eup %6326  ;;  %v1777_v24 = vadd.f32 1.0, %v6325_v14  ;;  %v1817_v35 = vadd.f32 %v1791_v13, %v1689_v4 }
 0x4bb   : > { %v6329_v25 = vpop.eup %6328  ;;  %v5059_v30 = vadd.f32 -0.6931472, %v1814_v17  ;;  %v1789_v32 = vmul.f32 0.6931472, %v6327_v21  ;;  %6348 = vlog2.f32 %v1774_v20 }
 0x4bc   : > { %v6331_v33 = vpop.eup %6330  ;;  %v1795_v37 = vmul.f32 0.6931472, %v6329_v25  ;;  %6350 = vlog2.f32 %v1777_v24  ;;  %v5062_v54 = vadd.f32 -0.6931472, %v1817_v35  ;;  %v1695_v25 = vmax.f32 %v7268_v58, 0.0 }
 0x4bd   : > { %v6333_v39 = vpop.eup %6332  ;;  %v1816_v42 = vadd.f32 %v1789_v32, %v1688_v11  ;;  %v1776_v43 = vadd.f32 1.0, %v6331_v33  ;;  %5792 = vmatprep.mubr.msk.f32.mxu0 %vm888_vm0, %v5059_v30 }
 0x4be   : > { %v6335_v45 = vpop.eup %6334  ;;  %v1793_v49 = vmul.f32 0.6931472, %v6333_v39  ;;  %5793 = vmatmul.mubr.msk.f32.gmra.mxu0 %vm888_vm0, %v5060_v34  ;;  %v1819_v55 = vadd.f32 %v1795_v37, %v1691_v15  ;;  %v1697_v37 = vmax.f32 %v7276_v18, 0.0 }
 0x4bf   : > { %v6337_v23 = vpop.eup %6336  ;;  %v5061_v50 = vadd.f32 -0.6931472, %v1816_v42  ;;  %6352 = vlog2.f32 %v1776_v43  ;;  %v1779_v52 = vadd.f32 1.0, %v6335_v45  ;;  %v1696_v42 = vmax.f32 %v7279_v22, 0.0 }
 0x4c0   : > { %v6339_v53 = vpop.eup %6338  ;;  %v1818_v59 = vadd.f32 %v1793_v49, %v1690_v46  ;;  %v1778_v60 = vadd.f32 1.0, %v6337_v23  ;;  %v5064_v13 = vadd.f32 -0.6931472, %v1819_v55  ;;  %v1699_v23 = vmax.f32 %v7284_v40, 0.0 }
 0x4c1   : > { %v6341_v62 = vpop.eup %6340  ;;  %v1799_v1 = vmul.f32 0.6931472, %v6339_v53  ;;  %6354 = vlog2.f32 %v1779_v52  ;;  %5795 = vmatprep.mubr.msk.f32.mxu0 %vm888_vm0, %v5061_v50  ;;  %v1698_v50 = vmax.f32 %v7287_v47, 0.0 }
 0x4c2   : > { %v6343_v29 = vpop.eup %6342  ;;  %v5063_v0 = vadd.f32 -0.6931472, %v1818_v59  ;;  %6356 = vlog2.f32 %v1778_v60  ;;  %v2147_v3 = vadd.f32 1.0, %v6341_v62  ;;  %5796 = vmatmul.mubr.msk.f32.gmra.mxu0 %vm888_vm0, %v5062_v54  ;;  %v2137_v62 = vmax.f32 %v7294_v7, 0.0  ;;  %v5112_v7 = vld [vmem:[%s7965_s10 + $0x30] sm:$0xff] }
 0x4c3   : > { %v6345_v57 = vpop.eup %6344  ;;  %v1797_v10 = vmul.f32 0.6931472, %v6343_v29  ;;  %v1821_v14 = vadd.f32 %v1799_v1, %v1693_v36  ;;  %v2136_v29 = vmax.f32 %v7296_v8, 0.0  ;;  %v5111_v8 = vld [vmem:[%s7965_s10 + $0x28] sm:$0xff] }
 0x4c4   : > { %v6347_v12 = vpop.eup %6346  ;;  %6358 = vlog2.f32 %v2147_v3  ;;  %v2146_v17 = vadd.f32 1.0, %v6345_v57  ;;  %5798 = vmatprep.mubr.msk.f32.mxu0 %vm888_vm0, %v5063_v0 }
 0x4c5   : > { %v1820_v20 = vadd.f32 %v1797_v10, %v1692_v5  ;;  %v1803_v21 = vmul.f32 0.6931472, %v6347_v12  ;;  %v5066_v24 = vadd.f32 -0.6931472, %v1821_v14  ;;  %v5110_v5 = vld [vmem:[%s7965_s10 + $0x20] sm:$0xff] }
 0x4c6   : > { %6360 = vlog2.f32 %v2146_v17  ;;  %5799 = vmatmul.mubr.msk.f32.gmra.mxu0 %vm888_vm0, %v5064_v13 }
 0x4c7   : > { %v5065_v44 = vadd.f32 -0.6931472, %v1820_v20  ;;  %v1823_v32 = vadd.f32 %v1803_v21, %v1695_v25 }
 0x4c8   : > { %v6349_v4 = vpop.eup %6348 }
 0x4c9   : > { %v6351_v30 = vpop.eup %6350  ;;  %v1801_v11 = vmul.f32 0.6931472, %v6349_v4  ;;  %5801 = vmatprep.mubr.msk.f32.mxu0 %vm888_vm0, %v5065_v44  ;;  %v5068_v58 = vadd.f32 -0.6931472, %v1823_v32 }
 0x4ca   : > { %v1807_v33 = vmul.f32 0.6931472, %v6351_v30  ;;  %5802 = vmatmul.mubr.msk.f32.gmra.mxu0 %vm888_vm0, %v5066_v24 }
 0x4cb   : > { %v1822_v34 = vadd.f32 %v1801_v11, %v1694_v48 }
 0x4cc   : > { %v6353_v35 = vpop.eup %6352  ;;  %v1825_v15 = vadd.f32 %v1807_v33, %v1697_v37 }
 0x4cd   : > { %v5067_v39 = vadd.f32 -0.6931472, %v1822_v34  ;;  %v1805_v43 = vmul.f32 0.6931472, %v6353_v35 }
 0x4ce   : > { %v6355_v45 = vpop.eup %6354  ;;  %v5070_v54 = vadd.f32 -0.6931472, %v1825_v15 }
 0x4cf   : > { %v6357_v46 = vpop.eup %6356  ;;  %v1824_v2 = vadd.f32 %v1805_v43, %v1696_v42  ;;  %v1811_v49 = vmul.f32 0.6931472, %v6355_v45  ;;  %5804 = vmatprep.mubr.msk.f32.mxu0 %vm888_vm0, %v5067_v39 }
 0x4d0   : > { %v1809_v52 = vmul.f32 0.6931472, %v6357_v46  ;;  %5805 = vmatmul.mubr.msk.f32.gmra.mxu0 %vm888_vm0, %v5068_v58 }
 0x4d1   : > { %v6359_v18 = vpop.eup %6358  ;;  %v5069_v53 = vadd.f32 -0.6931472, %v1824_v2  ;;  %v1827_v22 = vadd.f32 %v1811_v49, %v1699_v23 }
 0x4d2   : > { %v1826_v55 = vadd.f32 %v1809_v52, %v1698_v50  ;;  %v2151_v59 = vmul.f32 0.6931472, %v6359_v18 }
 0x4d3   : > { %v6361_v60 = vpop.eup %6360  ;;  %5807 = vmatprep.mubr.msk.f32.mxu0 %vm888_vm0, %v5069_v53  ;;  %v5072_v0 = vadd.f32 -0.6931472, %v1827_v22 }
 0x4d4   : > { %v5071_v1 = vadd.f32 -0.6931472, %v1826_v55  ;;  %v2149_v40 = vmul.f32 0.6931472, %v6361_v60  ;;  %5808 = vmatmul.mubr.msk.f32.gmra.mxu0 %vm888_vm0, %v5070_v54  ;;  %v2153_v47 = vadd.f32 %v2151_v59, %v2137_v62 }
 0x4d6   : > { %v2152_v36 = vadd.f32 %v2149_v40, %v2136_v29  ;;  %5810 = vmatprep.mubr.msk.f32.mxu0 %vm888_vm0, %v5071_v1  ;;  %v5099_v57 = vadd.f32 -0.6931472, %v2153_v47 }
 0x4d8   : > { %v5098_v3 = vadd.f32 -0.6931472, %v2152_v36  ;;  %5811 = vmatmul.mubr.msk.f32.gmra.mxu0 %vm888_vm0, %v5072_v0 }
 0x4d9   : > { %5883 = vmatprep.mubr.msk.bf16.mxu0 %vm6711_vm1, %v6710_v51 }
 0x4da   : > { %5832 = vmatprep.mubr.msk.f32.mxu1 %vm888_vm0, %v5098_v3 }
 0x4db   : > { %5833 = vmatmul.mubr.msk.f32.vlgmr.msra.gmra.mxu1 %vm888_vm0, %v5099_v57 }
 0x4dc   : > { %5836 = vmatpush3.msra.mxu1 %v7219_v56  ;;  %v5073_v56 = vld [vmem:[%s8018_s27] ss:$0 sm:$0xff] }
 0x4dd   : > { %5837 = vmatprep.subr.mxu1 %v5112_v7 }
 0x4de   : > { %5838 = vmatpush3.msra.mxu1 %v5112_v7 }
 0x4df   : > { %5839 = vmatprep.subr.mxu1 %v5111_v8 }
 0x4e0   : > { %5840 = vmatpush3.msra.mxu1 %v5111_v8 }
 0x4e1   : > { %5841 = vmatprep.subr.mxu1 %v5110_v5 }
 0x4e2   : > { %5842 = vmatpush3.msra.mxu1 %v5110_v5  ;;  %v5115_v5 = vld [vmem:[%s7966_s11 + $0x1] ss:$0 sm:$0xff] }
 0x579   : > { %v5791_v10 = vpop.f32.mrf.mxu0 }
 0x57a   : > { %v1975_v14 = vadd.f32 %v5791_v10, %v5073_v56 }
 0x57b   : > { %v1969_v12 = vpop.f32.mrf.mxu0 }
 0x57c   : > { %v1970_v13 = vadd.f32 %v5073_v56, %v1969_v12 }
 0x57e   : > { %v5794_v17 = vpop.f32.mrf.mxu0  ;;  %5843 = vmatprep.mubr.msk.f32.mxu1 %vm888_vm0, %v1970_v13 }
 0x57f   : > { %5844 = vmatmul.mubr.msk.f32.vlgmr.msra.gmra.mxu1 %vm888_vm0, %v1975_v14  ;;  %v1985_v44 = vadd.f32 %v5794_v17, %v5073_v56 }
 0x580   : > { %v1979_v20 = vpop.f32.mrf.mxu0 }
 0x581   : > { %v1980_v21 = vadd.f32 %v5073_v56, %v1979_v20 }
 0x582   : > { %v5797_v4 = vpop.f32.mrf.mxu0 }
 0x583   : > { %5846 = vmatprep.mubr.msk.f32.mxu1 %vm888_vm0, %v1980_v21  ;;  %v1995_v30 = vadd.f32 %v5797_v4, %v5073_v56 }
 0x584   : > { %v1989_v24 = vpop.f32.mrf.mxu0  ;;  %5847 = vmatmul.mubr.msk.f32.gmra.mxu1 %vm888_vm0, %v1985_v44 }
 0x585   : > { %v1990_v25 = vadd.f32 %v5073_v56, %v1989_v24 }
 0x586   : > { %v5800_v48 = vpop.f32.mrf.mxu0 }
 0x587   : > { %5849 = vmatprep.mubr.msk.f32.mxu1 %vm888_vm0, %v1990_v25  ;;  %v2005_v33 = vadd.f32 %v5800_v48, %v5073_v56 }
 0x588   : > { %v1999_v11 = vpop.f32.mrf.mxu0  ;;  %5850 = vmatmul.mubr.msk.f32.gmra.mxu1 %vm888_vm0, %v1995_v30 }
 0x589   : > { %v2000_v32 = vadd.f32 %v5073_v56, %v1999_v11 }
 0x58a   : > { %v5803_v34 = vpop.f32.mrf.mxu0 }
 0x58b   : > { %5852 = vmatprep.mubr.msk.f32.mxu1 %vm888_vm0, %v2000_v32  ;;  %v2015_v39 = vadd.f32 %v5803_v34, %v5073_v56 }
 0x58c   : > { %v2009_v35 = vpop.f32.mrf.mxu0  ;;  %5853 = vmatmul.mubr.msk.f32.gmra.mxu1 %vm888_vm0, %v2005_v33 }
 0x58d   : > { %v2010_v37 = vadd.f32 %v5073_v56, %v2009_v35 }
 0x58f   : > { %5855 = vmatprep.mubr.msk.f32.mxu1 %vm888_vm0, %v2010_v37 }
 0x590   : > { %v5806_v42 = vpop.f32.mrf.mxu0  ;;  %5856 = vmatmul.mubr.msk.f32.gmra.mxu1 %vm888_vm0, %v2015_v39 }
 0x591   : > { %v2025_v58 = vadd.f32 %v5806_v42, %v5073_v56 }
 0x592   : > { %v2019_v43 = vpop.f32.mrf.mxu0 }
 0x593   : > { %v2020_v45 = vadd.f32 %v5073_v56, %v2019_v43 }
 0x594   : > { %v5809_v15 = vpop.f32.mrf.mxu0 }
 0x595   : > { %5858 = vmatprep.mubr.msk.f32.mxu1 %vm888_vm0, %v2020_v45  ;;  %v2035_v49 = vadd.f32 %v5809_v15, %v5073_v56  ;;  %v5145_v15 = vld [vmem:[%s7967_s12 + $0x38] sm:$0xff] }
 0x596   : > { %v2029_v46 = vpop.f32.mrf.mxu0  ;;  %5859 = vmatmul.mubr.msk.f32.gmra.mxu1 %vm888_vm0, %v2025_v58  ;;  %5905 = vmatprep.subr.mxu1 %v5145_v15 }
 0x597   : > { %v2030_v2 = vadd.f32 %v5073_v56, %v2029_v46  ;;  %5906 = vmatpush3.msra.mxu1 %v5145_v15  ;;  %v5105_v46 = vld [vmem:[%s7964_s9 + $0x1] ss:$0 sm:$0xff] }
 0x598   : > { %v5812_v23 = vpop.f32.mrf.mxu0 }
 0x599   : > { %5861 = vmatprep.mubr.msk.f32.mxu1 %vm888_vm0, %v2030_v2  ;;  %v2045_v18 = vadd.f32 %v5812_v23, %v5073_v56 }
 0x59a   : > { %v2039_v50 = vpop.f32.mrf.mxu0  ;;  %5862 = vmatmul.mubr.msk.f32.gmra.mxu1 %vm888_vm0, %v2035_v49 }
 0x59b   : > { %v2040_v52 = vadd.f32 %v5073_v56, %v2039_v50  ;;  %v7367_v53 = vpop.f32.mrf.mxu1 }
 0x59c   : > { %v2247_v2 = vadd.f32 %v7367_v53, %v5105_v46 }
 0x59d   : > { %5864 = vmatprep.mubr.msk.f32.mxu1 %vm888_vm0, %v2040_v52  ;;  %v7369_v54 = vpop.f32.mrf.mxu1 }
 0x59e   : > { %5865 = vmatmul.mubr.msk.f32.gmra.mxu1 %vm888_vm0, %v2045_v18  ;;  %v2242_v49 = vadd.f32 %v5105_v46, %v7369_v54  ;;  %v2253_v23 = vand.u32 2147483647, %v2247_v2 }
 0x5a0   : > { %v2252_v50 = vand.u32 2147483647, %v2242_v49  ;;  %v2255_v52 = vsub.f32 0.0, %v2253_v23  ;;  %v2250_v54 = vmax.f32 %v2242_v49, 0.0  ;;  %v2995_v49 = vld [vmem:[#allocation7 + $0x38] sm:$0xff]  ;;  %v2994_v23 = vld [vmem:[#allocation7 + $0x30] sm:$0xff] }
 0x5a2   : > { %v2254_v18 = vsub.f32 0.0, %v2252_v50  ;;  %v2993_v50 = vld [vmem:[#allocation7 + $0x28] sm:$0xff] }
 0x63f   : > { %v5845_v22 = vpop.f32.mrf.mxu1 }
 0x640   : > { %v2403_v45 = vadd.f32 %v5845_v22, %v5115_v5  ;;  %v2258_v22 = vmul.f32 1.442695, %v2255_v52  ;;  %v2992_v52 = vld [vmem:[#allocation7 + $0x20] sm:$0xff] }
 0x641   : > { %v2397_v55 = vpop.f32.mrf.mxu1 }
 0x642   : > { %v2398_v42 = vadd.f32 %v5115_v5, %v2397_v55  ;;  %v2256_v55 = vmul.f32 1.442695, %v2254_v18  ;;  %6362 = vpow2.f32 %v2258_v22  ;;  %v5209_v18 = vld [vmem:[%s7963_s8 + $0x48] sm:$0xff]  ;;  %v5208_v22 = vld [vmem:[%s7963_s8 + $0x40] sm:$0xff] }
 0x644   : > { %v5848_v59 = vpop.f32.mrf.mxu1  ;;  %v2476_v58 = vpack.c.bf16 %v2403_v45, %v2398_v42  ;;  %6364 = vpow2.f32 %v2256_v55  ;;  %v7465_v55 = vld [vmem:[%s7965_s10 + $0x58] sm:$0xff] }
 0x645   : > { %v2413_v39 = vadd.f32 %v5848_v59, %v5115_v5 }
 0x646   : > { %v2407_v60 = vpop.f32.mrf.mxu1 }
 0x647   : > { %v2408_v35 = vadd.f32 %v5115_v5, %v2407_v60 }
 0x648   : > { %v5851_v62 = vpop.f32.mrf.mxu1 }
 0x649   : > { %v2423_v34 = vadd.f32 %v5851_v62, %v5115_v5  ;;  %v2477_v43 = vpack.c.bf16 %v2413_v39, %v2408_v35 }
 0x64a   : > { %v2417_v1 = vpop.f32.mrf.mxu1 }
 0x64b   : > { %v2418_v32 = vadd.f32 %v5115_v5, %v2417_v1 }
 0x64c   : > { %v5854_v29 = vpop.f32.mrf.mxu1 }
 0x64d   : > { %v2433_v11 = vadd.f32 %v5854_v29, %v5115_v5  ;;  %v2478_v37 = vpack.c.bf16 %v2423_v34, %v2418_v32  ;;  %v5199_v32 = vld [vmem:[%s7961_s6 + $0x48] sm:$0xff]  ;;  %v5198_v34 = vld [vmem:[%s7961_s6 + $0x40] sm:$0xff] }
 0x64e   : > { %v2427_v40 = vpop.f32.mrf.mxu1 }
 0x64f   : > { %v2428_v30 = vadd.f32 %v5115_v5, %v2427_v40  ;;  %v6363_v59 = vpop.eup %6362 }
 0x650   : > { %v5857_v47 = vpop.f32.mrf.mxu1  ;;  %v2261_v62 = vadd.f32 1.0, %v6363_v59  ;;  %v7471_v59 = vld [vmem:[%s7968_s13 + $0x1] ss:$0 sm:$0xff] }
 0x651   : > { %v2443_v25 = vadd.f32 %v5857_v47, %v5115_v5  ;;  %v2479_v33 = vpack.c.bf16 %v2433_v11, %v2428_v30  ;;  %v6365_v60 = vpop.eup %6364 }
 0x652   : > { %v2437_v0 = vpop.f32.mrf.mxu1  ;;  %v2260_v1 = vadd.f32 1.0, %v6365_v60  ;;  %6366 = vlog2.f32 %v2261_v62 }
 0x653   : > { %v2438_v4 = vadd.f32 %v5115_v5, %v2437_v0  ;;  %v2251_v0 = vmax.f32 %v2247_v2, 0.0 }
 0x654   : > { %6368 = vlog2.f32 %v2260_v1 }
 0x655   : > { %v2480_v48 = vpack.c.bf16 %v2443_v25, %v2438_v4 }
 0x656   : > { %v5860_v36 = vpop.f32.mrf.mxu1 }
 0x657   : > { %v2453_v44 = vadd.f32 %v5860_v36, %v5115_v5 }
 0x658   : > { %v2447_v3 = vpop.f32.mrf.mxu1 }
 0x659   : > { %v2448_v20 = vadd.f32 %v5115_v5, %v2447_v3 }
 0x65a   : > { %v5863_v57 = vpop.f32.mrf.mxu1 }
 0x65b   : > { %v2463_v17 = vadd.f32 %v5863_v57, %v5115_v5  ;;  %v2481_v24 = vpack.c.bf16 %v2453_v44, %v2448_v20  ;;  %v5143_v20 = vld [vmem:[%s7967_s12 + $0x28] sm:$0xff]  ;;  %v5201_v44 = vld [vmem:[%s7961_s6 + $0x58] sm:$0xff] }
 0x65c   : > { %v2457_v7 = vpop.f32.mrf.mxu1 }
 0x65d   : > { %v2458_v13 = vadd.f32 %v5115_v5, %v2457_v7 }
 0x65e   : > { %v5866_v8 = vpop.f32.mrf.mxu1 }
 0x65f   : > { %v2473_v56 = vadd.f32 %v5866_v8, %v5115_v5  ;;  %v2482_v21 = vpack.c.bf16 %v2463_v17, %v2458_v13  ;;  %v6367_v29 = vpop.eup %6366  ;;  %v5144_v17 = vld [vmem:[%s7967_s12 + $0x30] sm:$0xff] }
 0x660   : > { %v2467_v10 = vpop.f32.mrf.mxu1  ;;  %v2265_v53 = vmul.f32 0.6931472, %v6367_v29  ;;  %5907 = vmatprep.subr.mxu1 %v5144_v17 }
 0x661   : > { %v2468_v12 = vadd.f32 %v5115_v5, %v2467_v10  ;;  %v6369_v40 = vpop.eup %6368  ;;  %5908 = vmatpush3.msra.mxu1 %v5144_v17 }
 0x662   : > { %v2263_v47 = vmul.f32 0.6931472, %v6369_v40  ;;  %v2267_v3 = vadd.f32 %v2265_v53, %v2251_v0  ;;  %5909 = vmatprep.subr.mxu1 %v5143_v20 }
 0x663   : > { %v2483_v14 = vpack.c.bf16 %v2473_v56, %v2468_v12  ;;  %5910 = vmatpush3.msra.mxu1 %v5143_v20 }
 0x664   : > { %v2266_v36 = vadd.f32 %v2263_v47, %v2250_v54  ;;  %v5109_v5 = vadd.f32 -0.6931472, %v2267_v3 }
 0x665   : > { %5868 = vmatpush3.bf16.msra.mxu0 %v2483_v14 }
 0x666   : > { %5869 = vmatprep.subr.bf16.mxu0 %v6710_v51  ;;  %v5108_v8 = vadd.f32 -0.6931472, %v2266_v36 }
 0x669   : > { %5870 = vmatpush3.bf16.msra.mxu0 %v2482_v21  ;;  %v5142_v21 = vld [vmem:[%s7967_s12 + $0x20] sm:$0xff] }
 0x66a   : > { %5871 = vmatprep.subr.bf16.mxu0 %v6710_v51  ;;  %5911 = vmatprep.subr.mxu1 %v5142_v21 }
 0x66b   : > { %5912 = vmatpush3.msra.mxu1 %v5142_v21 }
 0x66c   : > { %5969 = vmatprep.subr.mxu1 %v5201_v44 }
 0x66d   : > { %5872 = vmatpush3.bf16.msra.mxu0 %v2481_v24 }
 0x66e   : > { %5873 = vmatprep.subr.bf16.mxu0 %v6710_v51 }
 0x671   : > { %5874 = vmatpush3.bf16.msra.mxu0 %v2480_v48  ;;  %v5200_v48 = vld [vmem:[%s7961_s6 + $0x50] sm:$0xff] }
 0x672   : > { %5875 = vmatprep.subr.bf16.mxu0 %v6710_v51 }
 0x675   : > { %5876 = vmatpush3.bf16.msra.mxu0 %v2479_v33 }
 0x676   : > { %5877 = vmatprep.subr.bf16.mxu0 %v6710_v51 }
 0x679   : > { %5878 = vmatpush3.bf16.msra.mxu0 %v2478_v37 }
 0x67a   : > { %5879 = vmatprep.subr.bf16.mxu0 %v6710_v51 }
 0x67d   : > { %5880 = vmatpush3.bf16.msra.mxu0 %v2477_v43 }
 0x67e   : > { %5881 = vmatprep.subr.bf16.mxu0 %v6710_v51 }
 0x681   : > { %5882 = vmatpush3.bf16.msra.mxu0 %v2476_v58 }
 0x684   : > { %5884 = vmatmul.mubr.msk.bf16.vlgmr.msra.gmra.mxu0 %vm7099_vm4, %v6712_v63 }
 0x685   : > { %5889 = vmatprep.mubr.msk.bf16.mxu0 %vm1358_vm7, %v7110_v6 }
 0x744   : > { %v2518_v57 = vpop.f32.mrf.mxu0 }
 0x745   : > { %v2525_v56 = vmul.f32 %v5108_v8, %v2518_v57 }
 0x746   : > { %v5885_v7 = vpop.f32.mrf.mxu0 }
 0x748   : > { %v2521_v10 = vpop.f32.mrf.mxu0 }
 0x749   : > { %v2526_v12 = vmul.f32 %v5109_v5, %v2521_v10 }
 0x74a   : > { %v5886_v13 = vpop.f32.mrf.mxu0 }
 0x74b   : > { %v2527_v14 = vpack.c.bf16 %v2526_v12, %v2525_v56 }
 0x74d   : > { %5887 = vmatprep.subr.bf16.mxu0 %v2527_v14 }
 0x74e   : > { %5888 = vmatpush3.bf16.msra.mxu0 %v2527_v14 }
 0x74f   : > { %5937 = vmatprep.subr.mxu0 %v2995_v49 }
 0x751   : > { %5890 = vmatmul.mubr.msk.bf16.vlgmr.msra.gmra.mxu0 %vm1358_vm7, %v7116_v9 }
 0x752   : > { %5893 = vmatprep.mubr.msk.bf16.mxu0 %vm1358_vm7, %v7120_v16  ;;  %5938 = vmatpush3.msra.mxu0 %v2995_v49 }
 0x753   : > { %5939 = vmatprep.subr.mxu0 %v2994_v23 }
 0x754   : > { %5940 = vmatpush3.msra.mxu0 %v2994_v23 }
 0x755   : > { %5941 = vmatprep.subr.mxu0 %v2993_v50 }
 0x756   : > { %5942 = vmatpush3.msra.mxu0 %v2993_v50 }
 0x757   : > { %5943 = vmatprep.subr.mxu0 %v2992_v52 }
 0x758   : > { %5944 = vmatpush3.msra.mxu0 %v2992_v52 }
 0x759   : > { %5894 = vmatmul.mubr.msk.bf16.gmra.mxu0 %vm1358_vm7, %v7124_v19  ;;  %6023 = vmatprep.subr.bf16.mxu0 %v6710_v51 }
 0x75a   : > { %5897 = vmatprep.mubr.msk.bf16.mxu0 %vm1358_vm7, %v7128_v27 }
 0x761   : > { %5898 = vmatmul.mubr.msk.bf16.gmra.mxu0 %vm1358_vm7, %v7132_v31 }
 0x762   : > { %5901 = vmatprep.mubr.msk.bf16.mxu0 %vm1358_vm7, %v7136_v38 }
 0x769   : > { %5902 = vmatmul.mubr.msk.bf16.gmra.mxu0 %vm1358_vm7, %v7140_v41 }
 0x811   : > { %v5891_v4 = vpop.f32.mrf.mxu0 }
 0x813   : > { %v2562_v24 = vpop.f32.mrf.mxu0 }
 0x814   : > { %5913 = vmatprep.mubr.msk.f32.mxu1 %vm888_vm0, %v2562_v24 }
 0x815   : > { %v5892_v25 = vpop.f32.mrf.mxu0 }
 0x817   : > { %v2565_v30 = vpop.f32.mrf.mxu0 }
 0x818   : > { %5914 = vmatmul.mubr.msk.f32.vlgmr.msra.gmra.mxu1 %vm888_vm0, %v2565_v30 }
 0x819   : > { %v5895_v11 = vpop.f32.mrf.mxu0  ;;  %5916 = vmatprep.mubr.msk.f32.mxu1 %vm888_vm0, %v5891_v4  ;;  %5970 = vmatpush3.msra.mxu1 %v5201_v44 }
 0x81a   : > { %5971 = vmatprep.subr.mxu1 %v5200_v48 }
 0x81b   : > { %v2578_v33 = vpop.f32.mrf.mxu0  ;;  %5972 = vmatpush3.msra.mxu1 %v5200_v48 }
 0x81c   : > { %5917 = vmatmul.mubr.msk.f32.gmra.mxu1 %vm888_vm0, %v5892_v25  ;;  %5973 = vmatprep.subr.mxu1 %v5199_v32 }
 0x81d   : > { %v5896_v35 = vpop.f32.mrf.mxu0  ;;  %5919 = vmatprep.mubr.msk.f32.mxu1 %vm888_vm0, %v2578_v33  ;;  %5974 = vmatpush3.msra.mxu1 %v5199_v32 }
 0x81e   : > { %5975 = vmatprep.subr.mxu1 %v5198_v34 }
 0x81f   : > { %v2581_v37 = vpop.f32.mrf.mxu0  ;;  %5976 = vmatpush3.msra.mxu1 %v5198_v34 }
 0x820   : > { %5920 = vmatmul.mubr.msk.f32.gmra.mxu1 %vm888_vm0, %v2581_v37 }
 0x821   : > { %v5899_v39 = vpop.f32.mrf.mxu0  ;;  %5922 = vmatprep.mubr.msk.f32.mxu1 %vm888_vm0, %v5895_v11 }
 0x823   : > { %v2594_v42 = vpop.f32.mrf.mxu0 }
 0x824   : > { %5923 = vmatmul.mubr.msk.f32.gmra.mxu1 %vm888_vm0, %v5896_v35 }
 0x825   : > { %v5900_v43 = vpop.f32.mrf.mxu0  ;;  %5925 = vmatprep.mubr.msk.f32.mxu1 %vm888_vm0, %v2594_v42 }
 0x827   : > { %v2597_v45 = vpop.f32.mrf.mxu0 }
 0x828   : > { %5926 = vmatmul.mubr.msk.f32.gmra.mxu1 %vm888_vm0, %v2597_v45 }
 0x829   : > { %v5903_v58 = vpop.f32.mrf.mxu0  ;;  %5928 = vmatprep.mubr.msk.f32.mxu1 %vm888_vm0, %v5899_v39 }
 0x82b   : > { %v2610_v15 = vpop.f32.mrf.mxu0 }
 0x82c   : > { %5929 = vmatmul.mubr.msk.f32.gmra.mxu1 %vm888_vm0, %v5900_v43 }
 0x82d   : > { %v5904_v46 = vpop.f32.mrf.mxu0  ;;  %5931 = vmatprep.mubr.msk.f32.mxu1 %vm888_vm0, %v2610_v15 }
 0x82f   : > { %v2613_v2 = vpop.f32.mrf.mxu0 }
 0x830   : > { %5932 = vmatmul.mubr.msk.f32.gmra.mxu1 %vm888_vm0, %v2613_v2 }
 0x831   : > { %5934 = vmatprep.mubr.msk.f32.mxu1 %vm888_vm0, %v5903_v58 }
 0x834   : > { %5935 = vmatmul.mubr.msk.f32.gmra.mxu1 %vm888_vm0, %v5904_v46 }
 0x835   : > { %5977 = vmatprep.mubr.msk.f32.mxu1 %vm888_vm0, %v7003_v26  ;;  %v5211_v26 = vld [vmem:[%s7963_s8 + $0x58] sm:$0xff] }
 0x836   : > { %5980 = vmatprep.subr.mxu1 %v5211_v26 }
 0x838   : > { %5978 = vmatmul.mubr.msk.f32.vlgmr.msra.gmra.mxu1 %vm888_vm0, %v7013_v28  ;;  %v5210_v28 = vld [vmem:[%s7963_s8 + $0x50] sm:$0xff] }
 0x839   : > { %5981 = vmatpush3.msra.mxu1 %v5211_v26 }
 0x83a   : > { %5982 = vmatprep.subr.mxu1 %v5210_v28 }
 0x83b   : > { %5983 = vmatpush3.msra.mxu1 %v5210_v28 }
 0x83c   : > { %5984 = vmatprep.subr.mxu1 %v5209_v18 }
 0x83d   : > { %5985 = vmatpush3.msra.mxu1 %v5209_v18 }
 0x83e   : > { %5986 = vmatprep.subr.mxu1 %v5208_v22 }
 0x83f   : > { %5987 = vmatpush3.msra.mxu1 %v5208_v22 }
 0x840   : > { %5991 = vmatprep.subr.mxu1 %v7465_v55 }
 0x8d8   : > { %v5915_v60 = vpop.f32.mrf.mxu1 }
 0x8d9   : > { %v7474_v62 = vadd.f32 %v5915_v60, %v7471_v59 }
 0x8da   : > { %v2752_v1 = vpop.f32.mrf.mxu1 }
 0x8db   : > { %v2848_v29 = vand.u32 2147483647, %v7474_v62  ;;  %v7478_v40 = vadd.f32 %v7471_v59, %v2752_v1 }
 0x8dc   : > { %v5918_v47 = vpop.f32.mrf.mxu1 }
 0x8dd   : > { %v2864_v53 = vsub.f32 0.0, %v2848_v29  ;;  %v2847_v0 = vand.u32 2147483647, %v7478_v40  ;;  %v7482_v54 = vadd.f32 %v5918_v47, %v7471_v59 }
 0x8de   : > { %v2762_v36 = vpop.f32.mrf.mxu1 }
 0x8df   : > { %v2881_v3 = vmul.f32 1.442695, %v2864_v53  ;;  %v2863_v57 = vsub.f32 0.0, %v2847_v0  ;;  %v2850_v7 = vand.u32 2147483647, %v7482_v54  ;;  %v7486_v8 = vadd.f32 %v7471_v59, %v2762_v36 }
 0x8e0   : > { %v5921_v5 = vpop.f32.mrf.mxu1 }
 0x8e1   : > { %6370 = vpow2.f32 %v2881_v3  ;;  %v2879_v10 = vmul.f32 1.442695, %v2863_v57  ;;  %v2866_v56 = vsub.f32 0.0, %v2850_v7  ;;  %v7489_v12 = vadd.f32 %v5921_v5, %v7471_v59 }
 0x8e2   : > { %v2849_v13 = vand.u32 2147483647, %v7486_v8  ;;  %v2772_v14 = vpop.f32.mrf.mxu1 }
 0x8e3   : > { %6372 = vpow2.f32 %v2879_v10  ;;  %v2885_v17 = vmul.f32 1.442695, %v2866_v56  ;;  %v2852_v20 = vand.u32 2147483647, %v7489_v12  ;;  %v7494_v44 = vadd.f32 %v7471_v59, %v2772_v14 }
 0x8e4   : > { %v2865_v21 = vsub.f32 0.0, %v2849_v13  ;;  %v5924_v4 = vpop.f32.mrf.mxu1 }
 0x8e5   : > { %6374 = vpow2.f32 %v2885_v17  ;;  %v2868_v24 = vsub.f32 0.0, %v2852_v20  ;;  %v7497_v25 = vadd.f32 %v5924_v4, %v7471_v59  ;;  %v2851_v48 = vand.u32 2147483647, %v7494_v44 }
 0x8e6   : > { %v2883_v30 = vmul.f32 1.442695, %v2865_v21  ;;  %v2782_v11 = vpop.f32.mrf.mxu1 }
 0x8e7   : > { %v2889_v32 = vmul.f32 1.442695, %v2868_v24  ;;  %v2854_v33 = vand.u32 2147483647, %v7497_v25  ;;  %v7502_v34 = vadd.f32 %v7471_v59, %v2782_v11  ;;  %v2867_v35 = vsub.f32 0.0, %v2851_v48 }
 0x8e8   : > { %6376 = vpow2.f32 %v2883_v30  ;;  %v5927_v37 = vpop.f32.mrf.mxu1 }
 0x8e9   : > { %6378 = vpow2.f32 %v2889_v32  ;;  %v2870_v39 = vsub.f32 0.0, %v2854_v33  ;;  %v2853_v42 = vand.u32 2147483647, %v7502_v34  ;;  %v2887_v43 = vmul.f32 1.442695, %v2867_v35 }
 0x8ea   : > { %v7506_v45 = vadd.f32 %v5927_v37, %v7471_v59  ;;  %v2792_v58 = vpop.f32.mrf.mxu1 }
 0x8eb   : > { %v2893_v15 = vmul.f32 1.442695, %v2870_v39  ;;  %v2869_v46 = vsub.f32 0.0, %v2853_v42  ;;  %v7509_v2 = vadd.f32 %v7471_v59, %v2792_v58  ;;  %6380 = vpow2.f32 %v2887_v43 }
 0x8ec   : > { %v2856_v49 = vand.u32 2147483647, %v7506_v45  ;;  %v5930_v23 = vpop.f32.mrf.mxu1 }
 0x8ed   : > { %6382 = vpow2.f32 %v2893_v15  ;;  %v2891_v50 = vmul.f32 1.442695, %v2869_v46  ;;  %v2855_v52 = vand.u32 2147483647, %v7509_v2  ;;  %v7514_v18 = vadd.f32 %v5930_v23, %v7471_v59 }
 0x8ee   : > { %v6371_v26 = vpop.eup %6370  ;;  %v2872_v28 = vsub.f32 0.0, %v2856_v49  ;;  %v2802_v22 = vpop.f32.mrf.mxu1  ;;  %v5203_v49 = vld [vmem:[%s7962_s7 + $0x2] ss:$0 sm:$0xff] }
 0x8ef   : > { %v2912_v60 = vadd.f32 1.0, %v6371_v26  ;;  %6384 = vpow2.f32 %v2891_v50  ;;  %v2871_v1 = vsub.f32 0.0, %v2855_v52  ;;  %v7517_v29 = vadd.f32 %v7471_v59, %v2802_v22 }
 0x8f0   : > { %v6373_v47 = vpop.eup %6372  ;;  %v2897_v53 = vmul.f32 1.442695, %v2872_v28  ;;  %v2858_v0 = vand.u32 2147483647, %v7514_v18  ;;  %v5933_v36 = vpop.f32.mrf.mxu1 }
 0x8f1   : > { %6386 = vlog2.f32 %v2912_v60  ;;  %v2911_v3 = vadd.f32 1.0, %v6373_v47  ;;  %v2895_v57 = vmul.f32 1.442695, %v2871_v1  ;;  %v2857_v10 = vand.u32 2147483647, %v7517_v29 }
 0x8f2   : > { %v6375_v7 = vpop.eup %6374  ;;  %6388 = vpow2.f32 %v2897_v53  ;;  %v2874_v5 = vsub.f32 0.0, %v2858_v0  ;;  %v7522_v56 = vadd.f32 %v5933_v36, %v7471_v59  ;;  %v2812_v13 = vpop.f32.mrf.mxu1 }
 0x8f3   : > { %6390 = vlog2.f32 %v2911_v3  ;;  %v2914_v14 = vadd.f32 1.0, %v6375_v7  ;;  %v7525_v17 = vadd.f32 %v7471_v59, %v2812_v13  ;;  %v2873_v21 = vsub.f32 0.0, %v2857_v10 }
 0x8f4   : > { %6392 = vpow2.f32 %v2895_v57  ;;  %v2901_v20 = vmul.f32 1.442695, %v2874_v5  ;;  %v5936_v4 = vpop.f32.mrf.mxu1  ;;  %v2860_v30 = vand.u32 2147483647, %v7522_v56 }
 0x8f5   : > { %v6377_v24 = vpop.eup %6376  ;;  %6394 = vlog2.f32 %v2914_v14  ;;  %v2859_v48 = vand.u32 2147483647, %v7525_v17  ;;  %v2899_v33 = vmul.f32 1.442695, %v2873_v21  ;;  %v7530_v35 = vadd.f32 %v5936_v4, %v7471_v59 }
 0x8f6   : > { %v6379_v11 = vpop.eup %6378  ;;  %v2913_v32 = vadd.f32 1.0, %v6377_v24  ;;  %6396 = vpow2.f32 %v2901_v20  ;;  %v2822_v37 = vpop.f32.mrf.mxu1  ;;  %v2876_v42 = vsub.f32 0.0, %v2860_v30  ;;  %v2832_v24 = vmax.f32 %v7474_v62, 0.0 }
 0x8f7   : > { %v2916_v39 = vadd.f32 1.0, %v6379_v11  ;;  %v2875_v43 = vsub.f32 0.0, %v2859_v48  ;;  %v7533_v58 = vadd.f32 %v7471_v59, %v2822_v37  ;;  %v2862_v15 = vand.u32 2147483647, %v7530_v35 }
 0x8f8   : > { %6398 = vlog2.f32 %v2913_v32  ;;  %v5979_v46 = vpop.f32.mrf.mxu1  ;;  %v6381_v23 = vpop.eup %6380  ;;  %v2905_v50 = vmul.f32 1.442695, %v2876_v42  ;;  %v2831_v32 = vmax.f32 %v7478_v40, 0.0 }
 0x8f9   : > { %6400 = vlog2.f32 %v2916_v39  ;;  %v2903_v52 = vmul.f32 1.442695, %v2875_v43  ;;  %v2915_v28 = vadd.f32 1.0, %v6381_v23  ;;  %v2878_v22 = vsub.f32 0.0, %v2862_v15 }
 0x8fa   : > { %v6383_v26 = vpop.eup %6382  ;;  %6402 = vpow2.f32 %v2899_v33  ;;  %v2861_v60 = vand.u32 2147483647, %v7533_v58  ;;  %v3276_v59 = vpop.f32.mrf.mxu1  ;;  %v7540_v47 = vadd.f32 %v5979_v46, %v5203_v49 }
 0x8fb   : > { %v2918_v1 = vadd.f32 1.0, %v6383_v26  ;;  %6404 = vpow2.f32 %v2905_v50  ;;  %v7542_v53 = vadd.f32 %v5203_v49, %v3276_v59  ;;  %v2909_v36 = vmul.f32 1.442695, %v2878_v22 }
 0x8fc   : > { %v6385_v0 = vpop.eup %6384  ;;  %6406 = vlog2.f32 %v2915_v28  ;;  %v2877_v3 = vsub.f32 0.0, %v2861_v60  ;;  %v3288_v7 = vand.u32 2147483647, %v7540_v47  ;;  %v2834_v26 = vmax.f32 %v7482_v54, 0.0 }
 0x8fd   : > { %6408 = vlog2.f32 %v2918_v1  ;;  %v2917_v57 = vadd.f32 1.0, %v6385_v0  ;;  %v3287_v13 = vand.u32 2147483647, %v7542_v53  ;;  %v2833_v22 = vmax.f32 %v7486_v8, 0.0 }
 0x8fe   : > { %v6387_v5 = vpop.eup %6386  ;;  %6410 = vpow2.f32 %v2903_v52  ;;  %v2907_v10 = vmul.f32 1.442695, %v2877_v3  ;;  %v3290_v21 = vsub.f32 0.0, %v3288_v7  ;;  %v2836_v54 = vmax.f32 %v7489_v12, 0.0 }
 0x8ff   : > { %v6389_v14 = vpop.eup %6388  ;;  %v2930_v20 = vmul.f32 0.6931472, %v6387_v5  ;;  %6412 = vlog2.f32 %v2917_v57  ;;  %v3289_v48 = vsub.f32 0.0, %v3287_v13  ;;  %v2835_v8 = vmax.f32 %v7494_v44, 0.0 }
 0x900   : > { %v6391_v4 = vpop.eup %6390  ;;  %v2920_v30 = vadd.f32 1.0, %v6389_v14  ;;  %6414 = vpow2.f32 %v2909_v36  ;;  %v3293_v37 = vmul.f32 1.442695, %v3290_v21  ;;  %v2838_v12 = vmax.f32 %v7497_v25, 0.0 }
 0x901   : > { %v6393_v11 = vpop.eup %6392  ;;  %v2928_v33 = vmul.f32 0.6931472, %v6391_v4  ;;  %6416 = vpow2.f32 %v2907_v10  ;;  %v2960_v42 = vadd.f32 %v2930_v20, %v2832_v24  ;;  %v3291_v15 = vmul.f32 1.442695, %v3289_v48 }
 0x902   : > { %v6395_v39 = vpop.eup %6394  ;;  %6418 = vlog2.f32 %v2920_v30  ;;  %v2919_v43 = vadd.f32 1.0, %v6393_v11 }
 0x903   : > { %v6397_v46 = vpop.eup %6396  ;;  %v2959_v49 = vadd.f32 %v2928_v33, %v2831_v32  ;;  %v2934_v23 = vmul.f32 0.6931472, %v6395_v39  ;;  %6420 = vpow2.f32 %v3293_v37  ;;  %v5165_v28 = vadd.f32 -0.6931472, %v2960_v42 }
 0x904   : > { %6422 = vlog2.f32 %v2919_v43  ;;  %v2922_v62 = vadd.f32 1.0, %v6397_v46  ;;  %v2837_v33 = vmax.f32 %v7502_v34, 0.0  ;;  %v2840_v34 = vmax.f32 %v7506_v45, 0.0 }
 0x905   : > { %v6399_v50 = vpop.eup %6398  ;;  %v5164_v52 = vadd.f32 -0.6931472, %v2959_v49  ;;  %6424 = vpow2.f32 %v3291_v15  ;;  %v2962_v1 = vadd.f32 %v2934_v23, %v2834_v26 }
 0x906   : > { %v6401_v40 = vpop.eup %6400  ;;  %v2932_v60 = vmul.f32 0.6931472, %v6399_v50  ;;  %6426 = vlog2.f32 %v2922_v62 }
 0x907   : > { %v6403_v59 = vpop.eup %6402  ;;  %v2938_v0 = vmul.f32 0.6931472, %v6401_v40  ;;  %5945 = vmatprep.mubr.msk.f32.mxu0 %vm888_vm0, %v5164_v52  ;;  %v5167_v21 = vadd.f32 -0.6931472, %v2962_v1 }
 0x908   : > { %v6405_v36 = vpop.eup %6404  ;;  %v2961_v3 = vadd.f32 %v2932_v60, %v2833_v22  ;;  %v2921_v57 = vadd.f32 1.0, %v6403_v59  ;;  %5946 = vmatmul.mubr.msk.f32.vlgmr.msra.gmra.mxu0 %vm888_vm0, %v5165_v28  ;;  %v2839_v28 = vmax.f32 %v7509_v2, 0.0  ;;  %v2841_v2 = vmax.f32 %v7517_v29, 0.0 }
 0x909   : > { %v6407_v7 = vpop.eup %6406  ;;  %v2924_v5 = vadd.f32 1.0, %v6405_v36  ;;  %v2964_v4 = vadd.f32 %v2938_v0, %v2836_v54  ;;  %v2842_v54 = vmax.f32 %v7514_v18, 0.0 }
 0x90a   : > { %v6409_v10 = vpop.eup %6408  ;;  %v5166_v13 = vadd.f32 -0.6931472, %v2961_v3  ;;  %v2936_v14 = vmul.f32 0.6931472, %v6407_v7  ;;  %6428 = vlog2.f32 %v2921_v57 }
 0x90b   : > { %v6411_v20 = vpop.eup %6410  ;;  %v2942_v24 = vmul.f32 0.6931472, %v6409_v10  ;;  %6430 = vlog2.f32 %v2924_v5  ;;  %v5169_v15 = vadd.f32 -0.6931472, %v2964_v4 }
 0x90c   : > { %v6413_v30 = vpop.eup %6412  ;;  %v2963_v48 = vadd.f32 %v2936_v14, %v2835_v8  ;;  %v2923_v11 = vadd.f32 1.0, %v6411_v20  ;;  %5948 = vmatprep.mubr.msk.f32.mxu0 %vm888_vm0, %v5166_v13 }
 0x90d   : > { %v6415_v32 = vpop.eup %6414  ;;  %v2940_v37 = vmul.f32 0.6931472, %v6413_v30  ;;  %5949 = vmatmul.mubr.msk.f32.gmra.mxu0 %vm888_vm0, %v5167_v21  ;;  %v2966_v46 = vadd.f32 %v2942_v24, %v2838_v12  ;;  %v2844_v21 = vmax.f32 %v7522_v56, 0.0  ;;  %v2843_v24 = vmax.f32 %v7525_v17, 0.0 }
 0x90e   : > { %v6417_v44 = vpop.eup %6416  ;;  %v5168_v39 = vadd.f32 -0.6931472, %v2963_v48  ;;  %6432 = vlog2.f32 %v2923_v11  ;;  %v2926_v42 = vadd.f32 1.0, %v6415_v32 }
 0x90f   : > { %v6419_v43 = vpop.eup %6418  ;;  %v2965_v49 = vadd.f32 %v2940_v37, %v2837_v33  ;;  %v2925_v23 = vadd.f32 1.0, %v6417_v44  ;;  %v5171_v59 = vadd.f32 -0.6931472, %v2966_v46  ;;  %v2846_v33 = vmax.f32 %v7530_v35, 0.0 }
 0x910   : > { %v6421_v62 = vpop.eup %6420  ;;  %v2946_v50 = vmul.f32 0.6931472, %v6419_v43  ;;  %6434 = vlog2.f32 %v2926_v42  ;;  %5951 = vmatprep.mubr.msk.f32.mxu0 %vm888_vm0, %v5168_v39  ;;  %v2845_v37 = vmax.f32 %v7533_v58, 0.0 }
 0x911   : > { %v6423_v25 = vpop.eup %6422  ;;  %v5170_v52 = vadd.f32 -0.6931472, %v2965_v49  ;;  %6436 = vlog2.f32 %v2925_v23  ;;  %v3296_v26 = vadd.f32 1.0, %v6421_v62  ;;  %5952 = vmatmul.mubr.msk.f32.gmra.mxu0 %vm888_vm0, %v5169_v15  ;;  %v3286_v49 = vmax.f32 %v7540_v47, 0.0  ;;  %v5220_v47 = vld [vmem:[%s7965_s10 + $0x50] sm:$0xff] }
 0x912   : > { %v6425_v40 = vpop.eup %6424  ;;  %v2944_v22 = vmul.f32 0.6931472, %v6423_v25  ;;  %v2968_v1 = vadd.f32 %v2946_v50, %v2840_v34  ;;  %v3285_v62 = vmax.f32 %v7542_v53, 0.0  ;;  %v5219_v53 = vld [vmem:[%s7965_s10 + $0x48] sm:$0xff] }
 0x913   : > { %v6427_v60 = vpop.eup %6426  ;;  %6438 = vlog2.f32 %v3296_v26  ;;  %v3295_v0 = vadd.f32 1.0, %v6425_v40  ;;  %5954 = vmatprep.mubr.msk.f32.mxu0 %vm888_vm0, %v5170_v52  ;;  %v5218_v26 = vld [vmem:[%s7965_s10 + $0x40] sm:$0xff] }
 0x914   : > { %v2967_v36 = vadd.f32 %v2944_v22, %v2839_v28  ;;  %v2950_v3 = vmul.f32 0.6931472, %v6427_v60  ;;  %v5173_v7 = vadd.f32 -0.6931472, %v2968_v1 }
 0x915   : > { %6440 = vlog2.f32 %v3295_v0  ;;  %5955 = vmatmul.mubr.msk.f32.gmra.mxu0 %vm888_vm0, %v5171_v59 }
 0x916   : > { %v5172_v45 = vadd.f32 -0.6931472, %v2967_v36  ;;  %v2970_v13 = vadd.f32 %v2950_v3, %v2842_v54 }
 0x917   : > { %v6429_v57 = vpop.eup %6428 }
 0x918   : > { %v6431_v5 = vpop.eup %6430  ;;  %v2948_v10 = vmul.f32 0.6931472, %v6429_v57  ;;  %5957 = vmatprep.mubr.msk.f32.mxu0 %vm888_vm0, %v5172_v45  ;;  %v5175_v18 = vadd.f32 -0.6931472, %v2970_v13 }
 0x919   : > { %v2954_v8 = vmul.f32 0.6931472, %v6431_v5  ;;  %5958 = vmatmul.mubr.msk.f32.gmra.mxu0 %vm888_vm0, %v5173_v7 }
 0x91a   : > { %v2969_v14 = vadd.f32 %v2948_v10, %v2841_v2 }
 0x91b   : > { %v6433_v20 = vpop.eup %6432  ;;  %v2972_v11 = vadd.f32 %v2954_v8, %v2844_v21 }
 0x91c   : > { %v5174_v4 = vadd.f32 -0.6931472, %v2969_v14  ;;  %v2952_v30 = vmul.f32 0.6931472, %v6433_v20 }
 0x91d   : > { %v6435_v48 = vpop.eup %6434  ;;  %v5177_v42 = vadd.f32 -0.6931472, %v2972_v11 }
 0x91e   : > { %v6437_v32 = vpop.eup %6436  ;;  %v2971_v29 = vadd.f32 %v2952_v30, %v2843_v24  ;;  %v2958_v12 = vmul.f32 0.6931472, %v6435_v48  ;;  %5960 = vmatprep.mubr.msk.f32.mxu0 %vm888_vm0, %v5174_v4 }
 0x91f   : > { %v2956_v44 = vmul.f32 0.6931472, %v6437_v32  ;;  %5961 = vmatmul.mubr.msk.f32.gmra.mxu0 %vm888_vm0, %v5175_v18 }
 0x920   : > { %v6439_v56 = vpop.eup %6438  ;;  %v5176_v39 = vadd.f32 -0.6931472, %v2971_v29  ;;  %v2974_v17 = vadd.f32 %v2958_v12, %v2846_v33 }
 0x921   : > { %v2973_v43 = vadd.f32 %v2956_v44, %v2845_v37  ;;  %v3300_v15 = vmul.f32 0.6931472, %v6439_v56 }
 0x922   : > { %v6441_v46 = vpop.eup %6440  ;;  %5963 = vmatprep.mubr.msk.f32.mxu0 %vm888_vm0, %v5176_v39  ;;  %v5179_v50 = vadd.f32 -0.6931472, %v2974_v17 }
 0x923   : > { %v5178_v23 = vadd.f32 -0.6931472, %v2973_v43  ;;  %v3298_v35 = vmul.f32 0.6931472, %v6441_v46  ;;  %5964 = vmatmul.mubr.msk.f32.gmra.mxu0 %vm888_vm0, %v5177_v42  ;;  %v3302_v58 = vadd.f32 %v3300_v15, %v3286_v49 }
 0x925   : > { %v3301_v25 = vadd.f32 %v3298_v35, %v3285_v62  ;;  %5966 = vmatprep.mubr.msk.f32.mxu0 %vm888_vm0, %v5178_v23  ;;  %v5207_v34 = vadd.f32 -0.6931472, %v3302_v58 }
 0x927   : > { %v5206_v52 = vadd.f32 -0.6931472, %v3301_v25  ;;  %5967 = vmatmul.mubr.msk.f32.gmra.mxu0 %vm888_vm0, %v5179_v50 }
 0x928   : > { %6039 = vmatprep.mubr.msk.bf16.mxu0 %vm6711_vm1, %v6710_v51 }
 0x929   : > { %5988 = vmatprep.mubr.msk.f32.mxu1 %vm888_vm0, %v5206_v52 }
 0x92a   : > { %5989 = vmatmul.mubr.msk.f32.vlgmr.msra.gmra.mxu1 %vm888_vm0, %v5207_v34 }
 0x92b   : > { %5992 = vmatpush3.msra.mxu1 %v7465_v55  ;;  %v5181_v55 = vld [vmem:[%s8018_s27 + $0x1] ss:$0 sm:$0xff] }
 0x92c   : > { %5993 = vmatprep.subr.mxu1 %v5220_v47 }
 0x92d   : > { %5994 = vmatpush3.msra.mxu1 %v5220_v47  ;;  %v5223_v47 = vld [vmem:[%s7966_s11 + $0x2] ss:$0 sm:$0xff] }
 0x92e   : > { %5995 = vmatprep.subr.mxu1 %v5219_v53 }
 0x92f   : > { %5996 = vmatpush3.msra.mxu1 %v5219_v53 }
 0x930   : > { %5997 = vmatprep.subr.mxu1 %v5218_v26 }
 0x931   : > { %5998 = vmatpush3.msra.mxu1 %v5218_v26 }
 0x9c8   : > { %v5947_v40 = vpop.f32.mrf.mxu0 }
 0x9c9   : > { %v3124_v60 = vadd.f32 %v5947_v40, %v5181_v55 }
 0x9ca   : > { %v3118_v28 = vpop.f32.mrf.mxu0 }
 0x9cb   : > { %v3119_v22 = vadd.f32 %v5181_v55, %v3118_v28 }
 0x9cd   : > { %v5950_v59 = vpop.f32.mrf.mxu0  ;;  %5999 = vmatprep.mubr.msk.f32.mxu1 %vm888_vm0, %v3119_v22 }
 0x9ce   : > { %6000 = vmatmul.mubr.msk.f32.vlgmr.msra.gmra.mxu1 %vm888_vm0, %v3124_v60  ;;  %v3134_v36 = vadd.f32 %v5950_v59, %v5181_v55 }
 0x9cf   : > { %v3128_v1 = vpop.f32.mrf.mxu0 }
 0x9d0   : > { %v3129_v0 = vadd.f32 %v5181_v55, %v3128_v1 }
 0x9d1   : > { %v5953_v3 = vpop.f32.mrf.mxu0 }
 0x9d2   : > { %6002 = vmatprep.mubr.msk.f32.mxu1 %vm888_vm0, %v3129_v0  ;;  %v3144_v7 = vadd.f32 %v5953_v3, %v5181_v55 }
 0x9d3   : > { %v3138_v45 = vpop.f32.mrf.mxu0  ;;  %6003 = vmatmul.mubr.msk.f32.gmra.mxu1 %vm888_vm0, %v3134_v36 }
 0x9d4   : > { %v3139_v57 = vadd.f32 %v5181_v55, %v3138_v45 }
 0x9d5   : > { %v5956_v54 = vpop.f32.mrf.mxu0 }
 0x9d6   : > { %6005 = vmatprep.mubr.msk.f32.mxu1 %vm888_vm0, %v3139_v57  ;;  %v3154_v10 = vadd.f32 %v5956_v54, %v5181_v55 }
 0x9d7   : > { %v3148_v5 = vpop.f32.mrf.mxu0  ;;  %6006 = vmatmul.mubr.msk.f32.gmra.mxu1 %vm888_vm0, %v3144_v7 }
 0x9d8   : > { %v3149_v2 = vadd.f32 %v5181_v55, %v3148_v5 }
 0x9d9   : > { %v5959_v13 = vpop.f32.mrf.mxu0 }
 0x9da   : > { %6008 = vmatprep.mubr.msk.f32.mxu1 %vm888_vm0, %v3149_v2  ;;  %v3164_v20 = vadd.f32 %v5959_v13, %v5181_v55 }
 0x9db   : > { %v3158_v8 = vpop.f32.mrf.mxu0  ;;  %6009 = vmatmul.mubr.msk.f32.gmra.mxu1 %vm888_vm0, %v3154_v10 }
 0x9dc   : > { %v3159_v14 = vadd.f32 %v5181_v55, %v3158_v8 }
 0x9de   : > { %6011 = vmatprep.mubr.msk.f32.mxu1 %vm888_vm0, %v3159_v14 }
 0x9df   : > { %v5962_v21 = vpop.f32.mrf.mxu0  ;;  %6012 = vmatmul.mubr.msk.f32.gmra.mxu1 %vm888_vm0, %v3164_v20 }
 0x9e0   : > { %v3174_v30 = vadd.f32 %v5962_v21, %v5181_v55 }
 0x9e1   : > { %v3168_v4 = vpop.f32.mrf.mxu0 }
 0x9e2   : > { %v3169_v24 = vadd.f32 %v5181_v55, %v3168_v4 }
 0x9e3   : > { %v5965_v48 = vpop.f32.mrf.mxu0 }
 0x9e4   : > { %6014 = vmatprep.mubr.msk.f32.mxu1 %vm888_vm0, %v3169_v24  ;;  %v3184_v32 = vadd.f32 %v5965_v48, %v5181_v55  ;;  %v5253_v24 = vld [vmem:[%s7967_s12 + $0x58] sm:$0xff] }
 0x9e5   : > { %v3178_v18 = vpop.f32.mrf.mxu0  ;;  %6015 = vmatmul.mubr.msk.f32.gmra.mxu1 %vm888_vm0, %v3174_v30  ;;  %6061 = vmatprep.subr.mxu1 %v5253_v24  ;;  %v5213_v30 = vld [vmem:[%s7964_s9 + $0x2] ss:$0 sm:$0xff] }
 0x9e6   : > { %v3179_v11 = vadd.f32 %v5181_v55, %v3178_v18  ;;  %6062 = vmatpush3.msra.mxu1 %v5253_v24 }
 0x9e7   : > { %v5968_v29 = vpop.f32.mrf.mxu0 }
 0x9e8   : > { %6017 = vmatprep.mubr.msk.f32.mxu1 %vm888_vm0, %v3179_v11  ;;  %v3194_v37 = vadd.f32 %v5968_v29, %v5181_v55 }
 0x9e9   : > { %v3188_v12 = vpop.f32.mrf.mxu0  ;;  %6018 = vmatmul.mubr.msk.f32.gmra.mxu1 %vm888_vm0, %v3184_v32 }
 0x9ea   : > { %v3189_v33 = vadd.f32 %v5181_v55, %v3188_v12  ;;  %v7613_v44 = vpop.f32.mrf.mxu1 }
 0x9eb   : > { %v3396_v48 = vadd.f32 %v7613_v44, %v5213_v30 }
 0x9ec   : > { %6020 = vmatprep.mubr.msk.f32.mxu1 %vm888_vm0, %v3189_v33  ;;  %v7615_v56 = vpop.f32.mrf.mxu1 }
 0x9ed   : > { %6021 = vmatmul.mubr.msk.f32.gmra.mxu1 %vm888_vm0, %v3194_v37  ;;  %v3391_v18 = vadd.f32 %v5213_v30, %v7615_v56  ;;  %v3402_v11 = vand.u32 2147483647, %v3396_v48 }
 0x9ef   : > { %v3401_v61 = vand.u32 2147483647, %v3391_v18  ;;  %v3399_v56 = vmax.f32 %v3391_v18, 0.0 }
 0x9f1   : > { %v3403_v32 = vsub.f32 0.0, %v3401_v61 }
 0xa8e   : > { %v6001_v39 = vpop.f32.mrf.mxu1 }
 0xa8f   : > { %v3552_v21 = vadd.f32 %v6001_v39, %v5223_v47 }
 0xa90   : > { %v3546_v42 = vpop.f32.mrf.mxu1 }
 0xa91   : > { %v3547_v14 = vadd.f32 %v5223_v47, %v3546_v42 }
 0xa93   : > { %v6004_v17 = vpop.f32.mrf.mxu1  ;;  %v3625_v4 = vpack.c.bf16 %v3552_v21, %v3547_v14 }
 0xa94   : > { %v3562_v8 = vadd.f32 %v6004_v17, %v5223_v47 }
 0xa95   : > { %v3556_v43 = vpop.f32.mrf.mxu1 }
 0xa96   : > { %v3557_v10 = vadd.f32 %v5223_v47, %v3556_v43 }
 0xa97   : > { %v6007_v15 = vpop.f32.mrf.mxu1 }
 0xa98   : > { %v3572_v2 = vadd.f32 %v6007_v15, %v5223_v47  ;;  %v3626_v20 = vpack.c.bf16 %v3562_v8, %v3557_v10  ;;  %v3400_v15 = vmax.f32 %v3396_v48, 0.0 }
 0xa99   : > { %v3566_v46 = vpop.f32.mrf.mxu1 }
 0xa9a   : > { %v3567_v54 = vadd.f32 %v5223_v47, %v3566_v46 }
 0xa9b   : > { %v6010_v49 = vpop.f32.mrf.mxu1 }
 0xa9c   : > { %v3582_v7 = vadd.f32 %v6010_v49, %v5223_v47  ;;  %v3627_v13 = vpack.c.bf16 %v3572_v2, %v3567_v54  ;;  %v4141_v54 = vld [vmem:[#allocation7 + $0x40] sm:$0xff]  ;;  %v7686_v2 = vld [vmem:[%s7968_s13 + $0x2] ss:$0 sm:$0xff] }
 0xa9d   : > { %v3576_v23 = vpop.f32.mrf.mxu1 }
 0xa9e   : > { %v3577_v45 = vadd.f32 %v5223_v47, %v3576_v23 }
 0xa9f   : > { %v6013_v62 = vpop.f32.mrf.mxu1 }
 0xaa0   : > { %v3592_v3 = vadd.f32 %v6013_v62, %v5223_v47  ;;  %v3628_v5 = vpack.c.bf16 %v3582_v7, %v3577_v45  ;;  %v4144_v45 = vld [vmem:[#allocation7 + $0x58] sm:$0xff]  ;;  %v4142_v7 = vld [vmem:[#allocation7 + $0x48] sm:$0xff] }
 0xaa1   : > { %v3586_v35 = vpop.f32.mrf.mxu1 }
 0xaa2   : > { %v3587_v0 = vadd.f32 %v5223_v47, %v3586_v35 }
 0xaa4   : > { %v3629_v57 = vpack.c.bf16 %v3592_v3, %v3587_v0 }
 0xaa5   : > { %v6016_v58 = vpop.f32.mrf.mxu1 }
 0xaa6   : > { %v3602_v1 = vadd.f32 %v6016_v58, %v5223_v47 }
 0xaa7   : > { %v3596_v50 = vpop.f32.mrf.mxu1 }
 0xaa8   : > { %v3597_v60 = vadd.f32 %v5223_v47, %v3596_v50 }
 0xaa9   : > { %v6019_v25 = vpop.f32.mrf.mxu1 }
 0xaaa   : > { %v3612_v22 = vadd.f32 %v6019_v25, %v5223_v47  ;;  %v3630_v36 = vpack.c.bf16 %v3602_v1, %v3597_v60 }
 0xaab   : > { %v3606_v52 = vpop.f32.mrf.mxu1 }
 0xaac   : > { %v3607_v55 = vadd.f32 %v5223_v47, %v3606_v52 }
 0xaad   : > { %v6022_v34 = vpop.f32.mrf.mxu1 }
 0xaae   : > { %v3622_v26 = vadd.f32 %v6022_v34, %v5223_v47  ;;  %v3631_v59 = vpack.c.bf16 %v3612_v22, %v3607_v55 }
 0xaaf   : > { %v3616_v53 = vpop.f32.mrf.mxu1 }
 0xab0   : > { %v3617_v40 = vadd.f32 %v5223_v47, %v3616_v53 }
 0xab2   : > { %v3632_v28 = vpack.c.bf16 %v3622_v26, %v3617_v40 }
 0xab4   : > { %6024 = vmatpush3.bf16.msra.mxu0 %v3632_v28 }
 0xab5   : > { %6025 = vmatprep.subr.bf16.mxu0 %v6710_v51 }
 0xab8   : > { %6026 = vmatpush3.bf16.msra.mxu0 %v3631_v59 }
 0xab9   : > { %6027 = vmatprep.subr.bf16.mxu0 %v6710_v51 }
 0xabc   : > { %6028 = vmatpush3.bf16.msra.mxu0 %v3630_v36 }
 0xabd   : > { %6029 = vmatprep.subr.bf16.mxu0 %v6710_v51 }
 0xac0   : > { %6030 = vmatpush3.bf16.msra.mxu0 %v3629_v57  ;;  %v4143_v57 = vld [vmem:[#allocation7 + $0x50] sm:$0xff] }
 0xac1   : > { %6031 = vmatprep.subr.bf16.mxu0 %v6710_v51 }
 0xac4   : > { %6032 = vmatpush3.bf16.msra.mxu0 %v3628_v5  ;;  %v4349_v5 = vld [vmem:[%s8019_s25 + $0x18] sm:$0xff] }
 0xac5   : > { %6033 = vmatprep.subr.bf16.mxu0 %v6710_v51 }
 0xac8   : > { %6034 = vmatpush3.bf16.msra.mxu0 %v3627_v13 }
 0xac9   : > { %6035 = vmatprep.subr.bf16.mxu0 %v6710_v51 }
 0xacc   : > { %6036 = vmatpush3.bf16.msra.mxu0 %v3626_v20 }
 0xacd   : > { %6037 = vmatprep.subr.bf16.mxu0 %v6710_v51 }
 0xad0   : > { %6038 = vmatpush3.bf16.msra.mxu0 %v3625_v4 }
 0xad3   : > { %6040 = vmatmul.mubr.msk.bf16.vlgmr.msra.gmra.mxu0 %vm7099_vm4, %v6712_v63  ;;  %v3404_v63 = vsub.f32 0.0, %v3402_v11  ;;  %vm4781_vm4 = vcmask 1040384  }
 0xad4   : > { %6045 = vmatprep.mubr.msk.bf16.mxu0 %vm1358_vm7, %v7110_v6  ;;  %v3405_v6 = vmul.f32 1.442695, %v3403_v32 }
 0xad5   : > { %v3407_v29 = vmul.f32 1.442695, %v3404_v63 }
 0xad7   : > { %6442 = vpow2.f32 %v3407_v29 }
 0xad8   : > { %6444 = vpow2.f32 %v3405_v6 }
 0xae4   : > { %v6443_v12 = vpop.eup %6442 }
 0xae5   : > { %v6445_v33 = vpop.eup %6444  ;;  %v3410_v37 = vadd.f32 1.0, %v6443_v12 }
 0xae6   : > { %v3409_v39 = vadd.f32 1.0, %v6445_v33 }
 0xae7   : > { %6446 = vlog2.f32 %v3410_v37 }
 0xae8   : > { %6448 = vlog2.f32 %v3409_v39 }
 0xaf4   : > { %v6447_v42 = vpop.eup %6446 }
 0xaf5   : > { %v6449_v17 = vpop.eup %6448  ;;  %v3414_v44 = vmul.f32 0.6931472, %v6447_v42 }
 0xaf6   : > { %v3412_v43 = vmul.f32 0.6931472, %v6449_v17 }
 0xaf7   : > { %v3416_v49 = vadd.f32 %v3414_v44, %v3400_v15 }
 0xaf8   : > { %v3415_v46 = vadd.f32 %v3412_v43, %v3399_v56 }
 0xaf9   : > { %v5217_v58 = vadd.f32 -0.6931472, %v3416_v49 }
 0xafa   : > { %v5216_v35 = vadd.f32 -0.6931472, %v3415_v46 }
 0xb93   : > { %v3667_v23 = vpop.f32.mrf.mxu0 }
 0xb94   : > { %v3674_v25 = vmul.f32 %v5216_v35, %v3667_v23 }
 0xb95   : > { %v6041_v62 = vpop.f32.mrf.mxu0 }
 0xb97   : > { %v3670_v50 = vpop.f32.mrf.mxu0 }
 0xb98   : > { %v3675_v52 = vmul.f32 %v5217_v58, %v3670_v50 }
 0xb99   : > { %v6042_v34 = vpop.f32.mrf.mxu0 }
 0xb9a   : > { %v3676_v47 = vpack.c.bf16 %v3675_v52, %v3674_v25 }
 0xb9c   : > { %6043 = vmatprep.subr.bf16.mxu0 %v3676_v47 }
 0xb9d   : > { %6044 = vmatpush3.bf16.msra.mxu0 %v3676_v47 }
 0xb9e   : > { %6093 = vmatprep.subr.mxu0 %v4144_v45 }
 0xba0   : > { %6046 = vmatmul.mubr.msk.bf16.vlgmr.msra.gmra.mxu0 %vm1358_vm7, %v7116_v9  ;;  %v5252_v9 = vld [vmem:[%s7967_s12 + $0x50] sm:$0xff] }
 0xba1   : > { %6049 = vmatprep.mubr.msk.bf16.mxu0 %vm1358_vm7, %v7120_v16  ;;  %6063 = vmatprep.subr.mxu1 %v5252_v9  ;;  %v5251_v16 = vld [vmem:[%s7967_s12 + $0x48] sm:$0xff] }
 0xba2   : > { %6064 = vmatpush3.msra.mxu1 %v5252_v9  ;;  %6094 = vmatpush3.msra.mxu0 %v4144_v45 }
 0xba3   : > { %6065 = vmatprep.subr.mxu1 %v5251_v16  ;;  %6095 = vmatprep.subr.mxu0 %v4143_v57 }
 0xba4   : > { %6066 = vmatpush3.msra.mxu1 %v5251_v16  ;;  %6096 = vmatpush3.msra.mxu0 %v4143_v57 }
 0xba5   : > { %6097 = vmatprep.subr.mxu0 %v4142_v7 }
 0xba6   : > { %6098 = vmatpush3.msra.mxu0 %v4142_v7 }
 0xba7   : > { %6099 = vmatprep.subr.mxu0 %v4141_v54 }
 0xba8   : > { %6050 = vmatmul.mubr.msk.bf16.gmra.mxu0 %vm1358_vm7, %v7124_v19  ;;  %v5250_v19 = vld [vmem:[%s7967_s12 + $0x40] sm:$0xff] }
 0xba9   : > { %6053 = vmatprep.mubr.msk.bf16.mxu0 %vm1358_vm7, %v7128_v27  ;;  %6067 = vmatprep.subr.mxu1 %v5250_v19 }
 0xbaa   : > { %6068 = vmatpush3.msra.mxu1 %v5250_v19  ;;  %6100 = vmatpush3.msra.mxu0 %v4141_v54 }
 0xbab   : > { %6157 = vmatprep.subr.mxu0 %v6710_v51  ;;  %6125 = vmatprep.subr.mxu1 %v4349_v5 }
 0xbb0   : > { %6054 = vmatmul.mubr.msk.bf16.gmra.mxu0 %vm1358_vm7, %v7132_v31 }
 0xbb1   : > { %6057 = vmatprep.mubr.msk.bf16.mxu0 %vm1358_vm7, %v7136_v38 }
 0xbb8   : > { %6058 = vmatmul.mubr.msk.bf16.gmra.mxu0 %vm1358_vm7, %v7140_v41 }
 0xc60   : > { %v6047_v27 = vpop.f32.mrf.mxu0 }
 0xc62   : > { %v3711_v31 = vpop.f32.mrf.mxu0 }
 0xc63   : > { %6069 = vmatprep.mubr.msk.f32.mxu1 %vm888_vm0, %v3711_v31 }
 0xc64   : > { %v6048_v38 = vpop.f32.mrf.mxu0 }
 0xc66   : > { %v3714_v41 = vpop.f32.mrf.mxu0 }
 0xc67   : > { %6070 = vmatmul.mubr.msk.f32.vlgmr.msra.gmra.mxu1 %vm888_vm0, %v3714_v41 }
 0xc68   : > { %v6051_v53 = vpop.f32.mrf.mxu0  ;;  %6072 = vmatprep.mubr.msk.f32.mxu1 %vm888_vm0, %v6047_v27  ;;  %6126 = vmatpush3.msra.mxu1 %v4349_v5 }
 0xc6a   : > { %v3727_v26 = vpop.f32.mrf.mxu0 }
 0xc6b   : > { %6073 = vmatmul.mubr.msk.f32.gmra.mxu1 %vm888_vm0, %v6048_v38 }
 0xc6c   : > { %v6052_v40 = vpop.f32.mrf.mxu0  ;;  %6075 = vmatprep.mubr.msk.f32.mxu1 %vm888_vm0, %v3727_v26 }
 0xc6e   : > { %v3730_v55 = vpop.f32.mrf.mxu0 }
 0xc6f   : > { %6076 = vmatmul.mubr.msk.f32.gmra.mxu1 %vm888_vm0, %v3730_v55 }
 0xc70   : > { %v6055_v28 = vpop.f32.mrf.mxu0  ;;  %6078 = vmatprep.mubr.msk.f32.mxu1 %vm888_vm0, %v6051_v53 }
 0xc72   : > { %v3743_v22 = vpop.f32.mrf.mxu0 }
 0xc73   : > { %6079 = vmatmul.mubr.msk.f32.gmra.mxu1 %vm888_vm0, %v6052_v40 }
 0xc74   : > { %v6056_v60 = vpop.f32.mrf.mxu0  ;;  %6081 = vmatprep.mubr.msk.f32.mxu1 %vm888_vm0, %v3743_v22 }
 0xc76   : > { %v3746_v59 = vpop.f32.mrf.mxu0 }
 0xc77   : > { %6082 = vmatmul.mubr.msk.f32.gmra.mxu1 %vm888_vm0, %v3746_v59 }
 0xc78   : > { %v6059_v1 = vpop.f32.mrf.mxu0  ;;  %6084 = vmatprep.mubr.msk.f32.mxu1 %vm888_vm0, %v6055_v28 }
 0xc7a   : > { %v3759_v0 = vpop.f32.mrf.mxu0 }
 0xc7b   : > { %6085 = vmatmul.mubr.msk.f32.gmra.mxu1 %vm888_vm0, %v6056_v60 }
 0xc7c   : > { %v6060_v36 = vpop.f32.mrf.mxu0  ;;  %6087 = vmatprep.mubr.msk.f32.mxu1 %vm888_vm0, %v3759_v0 }
 0xc7e   : > { %v3762_v3 = vpop.f32.mrf.mxu0 }
 0xc7f   : > { %6088 = vmatmul.mubr.msk.f32.gmra.mxu1 %vm888_vm0, %v3762_v3 }
 0xc80   : > { %6090 = vmatprep.mubr.msk.f32.mxu1 %vm888_vm0, %v6059_v1 }
 0xc83   : > { %6091 = vmatmul.mubr.msk.f32.gmra.mxu1 %vm888_vm0, %v6060_v36 }
 0xd27   : > { %v6071_v10 = vpop.f32.mrf.mxu1 }
 0xd28   : > { %v7689_v13 = vadd.f32 %v6071_v10, %v7686_v2 }
 0xd29   : > { %v3901_v8 = vpop.f32.mrf.mxu1 }
 0xd2a   : > { %v3997_v14 = vand.u32 2147483647, %v7689_v13  ;;  %v7693_v20 = vadd.f32 %v7686_v2, %v3901_v8 }
 0xd2b   : > { %v6074_v21 = vpop.f32.mrf.mxu1 }
 0xd2c   : > { %v4013_v4 = vsub.f32 0.0, %v3997_v14  ;;  %v3996_v24 = vand.u32 2147483647, %v7693_v20  ;;  %v7697_v30 = vadd.f32 %v6074_v21, %v7686_v2 }
 0xd2d   : > { %v3911_v48 = vpop.f32.mrf.mxu1 }
 0xd2e   : > { %v4030_v18 = vmul.f32 1.442695, %v4013_v4  ;;  %v4012_v11 = vsub.f32 0.0, %v3996_v24  ;;  %v3999_v61 = vand.u32 2147483647, %v7697_v30  ;;  %v7701_v63 = vadd.f32 %v7686_v2, %v3911_v48 }
 0xd2f   : > { %v6077_v32 = vpop.f32.mrf.mxu1 }
 0xd30   : > { %6450 = vpow2.f32 %v4030_v18  ;;  %v4028_v29 = vmul.f32 1.442695, %v4012_v11  ;;  %v4015_v6 = vsub.f32 0.0, %v3999_v61  ;;  %v7704_v12 = vadd.f32 %v6077_v32, %v7686_v2 }
 0xd31   : > { %v3998_v33 = vand.u32 2147483647, %v7701_v63  ;;  %v3921_v37 = vpop.f32.mrf.mxu1 }
 0xd32   : > { %6452 = vpow2.f32 %v4028_v29  ;;  %v4034_v39 = vmul.f32 1.442695, %v4015_v6  ;;  %v4001_v42 = vand.u32 2147483647, %v7704_v12  ;;  %v7709_v43 = vadd.f32 %v7686_v2, %v3921_v37 }
 0xd33   : > { %v4014_v17 = vsub.f32 0.0, %v3998_v33  ;;  %v6080_v44 = vpop.f32.mrf.mxu1 }
 0xd34   : > { %6454 = vpow2.f32 %v4034_v39  ;;  %v4017_v15 = vsub.f32 0.0, %v4001_v42  ;;  %v7712_v56 = vadd.f32 %v6080_v44, %v7686_v2  ;;  %v4000_v49 = vand.u32 2147483647, %v7709_v43 }
 0xd35   : > { %v4032_v46 = vmul.f32 1.442695, %v4014_v17  ;;  %v3931_v23 = vpop.f32.mrf.mxu1 }
 0xd36   : > { %v4038_v62 = vmul.f32 1.442695, %v4017_v15  ;;  %v4003_v35 = vand.u32 2147483647, %v7712_v56  ;;  %v7717_v58 = vadd.f32 %v7686_v2, %v3931_v23  ;;  %v4016_v50 = vsub.f32 0.0, %v4000_v49 }
 0xd37   : > { %6456 = vpow2.f32 %v4032_v46  ;;  %v6083_v25 = vpop.f32.mrf.mxu1 }
 0xd38   : > { %6458 = vpow2.f32 %v4038_v62  ;;  %v4019_v52 = vsub.f32 0.0, %v4003_v35  ;;  %v4002_v34 = vand.u32 2147483647, %v7717_v58  ;;  %v4036_v47 = vmul.f32 1.442695, %v4016_v50 }
 0xd39   : > { %v7721_v9 = vadd.f32 %v6083_v25, %v7686_v2  ;;  %v3941_v16 = vpop.f32.mrf.mxu1 }
 0xd3a   : > { %v4042_v19 = vmul.f32 1.442695, %v4019_v52  ;;  %v4018_v27 = vsub.f32 0.0, %v4002_v34  ;;  %v7724_v31 = vadd.f32 %v7686_v2, %v3941_v16  ;;  %6460 = vpow2.f32 %v4036_v47 }
 0xd3b   : > { %v4005_v38 = vand.u32 2147483647, %v7721_v9  ;;  %v6086_v41 = vpop.f32.mrf.mxu1 }
 0xd3c   : > { %6462 = vpow2.f32 %v4042_v19  ;;  %v4040_v53 = vmul.f32 1.442695, %v4018_v27  ;;  %v4004_v26 = vand.u32 2147483647, %v7724_v31  ;;  %v7729_v28 = vadd.f32 %v6086_v41, %v7686_v2 }
 0xd3d   : > { %v6451_v40 = vpop.eup %6450  ;;  %v4021_v55 = vsub.f32 0.0, %v4005_v38  ;;  %v3951_v22 = vpop.f32.mrf.mxu1 }
 0xd3e   : > { %v4061_v60 = vadd.f32 1.0, %v6451_v40  ;;  %6464 = vpow2.f32 %v4040_v53  ;;  %v4020_v59 = vsub.f32 0.0, %v4004_v26  ;;  %v7732_v1 = vadd.f32 %v7686_v2, %v3951_v22 }
 0xd3f   : > { %v6453_v0 = vpop.eup %6452  ;;  %v4046_v36 = vmul.f32 1.442695, %v4021_v55  ;;  %v4007_v3 = vand.u32 2147483647, %v7729_v28  ;;  %v6089_v45 = vpop.f32.mrf.mxu1  ;;  %v3981_v40 = vmax.f32 %v7689_v13, 0.0  ;;  %v3983_v13 = vmax.f32 %v7697_v30, 0.0 }
 0xd40   : > { %6466 = vlog2.f32 %v4061_v60  ;;  %v4060_v57 = vadd.f32 1.0, %v6453_v0  ;;  %v4044_v7 = vmul.f32 1.442695, %v4020_v59  ;;  %v4006_v10 = vand.u32 2147483647, %v7732_v1 }
 0xd41   : > { %v6455_v54 = vpop.eup %6454  ;;  %6468 = vpow2.f32 %v4046_v36  ;;  %v4023_v5 = vsub.f32 0.0, %v4007_v3  ;;  %v7737_v8 = vadd.f32 %v6089_v45, %v7686_v2  ;;  %v3961_v14 = vpop.f32.mrf.mxu1  ;;  %v3980_v60 = vmax.f32 %v7693_v20, 0.0 }
 0xd42   : > { %6470 = vlog2.f32 %v4060_v57  ;;  %v4063_v21 = vadd.f32 1.0, %v6455_v54  ;;  %v7740_v4 = vadd.f32 %v7686_v2, %v3961_v14  ;;  %v4022_v48 = vsub.f32 0.0, %v4006_v10 }
 0xd43   : > { %6472 = vpow2.f32 %v4044_v7  ;;  %v4050_v24 = vmul.f32 1.442695, %v4023_v5  ;;  %v6092_v18 = vpop.f32.mrf.mxu1  ;;  %v4009_v61 = vand.u32 2147483647, %v7737_v8 }
 0xd44   : > { %v6457_v11 = vpop.eup %6456  ;;  %6474 = vlog2.f32 %v4063_v21  ;;  %v4008_v32 = vand.u32 2147483647, %v7740_v4  ;;  %v4048_v33 = vmul.f32 1.442695, %v4022_v48  ;;  %v7745_v37 = vadd.f32 %v6092_v18, %v7686_v2 }
 0xd45   : > { %v6459_v29 = vpop.eup %6458  ;;  %v4062_v6 = vadd.f32 1.0, %v6457_v11  ;;  %6476 = vpow2.f32 %v4050_v24  ;;  %v3971_v39 = vpop.f32.mrf.mxu1  ;;  %v4025_v17 = vsub.f32 0.0, %v4009_v61  ;;  %v3982_v24 = vmax.f32 %v7701_v63, 0.0 }
 0xd46   : > { %v4065_v42 = vadd.f32 1.0, %v6459_v29  ;;  %v4024_v44 = vsub.f32 0.0, %v4008_v32  ;;  %v7748_v15 = vadd.f32 %v7686_v2, %v3971_v39  ;;  %v4011_v46 = vand.u32 2147483647, %v7745_v37 }
 0xd47   : > { %6478 = vlog2.f32 %v4062_v6  ;;  %v6461_v49 = vpop.eup %6460  ;;  %v4054_v23 = vmul.f32 1.442695, %v4025_v17  ;;  %v3984_v63 = vmax.f32 %v7709_v43, 0.0 }
 0xd48   : > { %6480 = vlog2.f32 %v4065_v42  ;;  %v4052_v62 = vmul.f32 1.442695, %v4024_v44  ;;  %v4064_v50 = vadd.f32 1.0, %v6461_v49  ;;  %v4027_v25 = vsub.f32 0.0, %v4011_v46 }
 0xd49   : > { %v6463_v35 = vpop.eup %6462  ;;  %6482 = vpow2.f32 %v4048_v33  ;;  %v4010_v52 = vand.u32 2147483647, %v7748_v15  ;;  %v3985_v33 = vmax.f32 %v7704_v12, 0.0  ;;  %v3987_v12 = vmax.f32 %v7712_v56, 0.0 }
 0xd4a   : > { %v4067_v34 = vadd.f32 1.0, %v6463_v35  ;;  %6484 = vpow2.f32 %v4054_v23  ;;  %v4058_v16 = vmul.f32 1.442695, %v4027_v25 }
 0xd4b   : > { %v6465_v47 = vpop.eup %6464  ;;  %6486 = vlog2.f32 %v4064_v50  ;;  %v4026_v2 = vsub.f32 0.0, %v4010_v52  ;;  %v3986_v52 = vmax.f32 %v7717_v58, 0.0  ;;  %v3989_v58 = vmax.f32 %v7721_v9, 0.0 }
 0xd4c   : > { %6488 = vlog2.f32 %v4067_v34  ;;  %v4066_v19 = vadd.f32 1.0, %v6465_v47  ;;  %v3991_v9 = vmax.f32 %v7729_v28, 0.0 }
 0xd4d   : > { %v6467_v27 = vpop.eup %6466  ;;  %6490 = vpow2.f32 %v4052_v62  ;;  %v4056_v38 = vmul.f32 1.442695, %v4026_v2 }
 0xd4e   : > { %v6469_v41 = vpop.eup %6468  ;;  %v4079_v53 = vmul.f32 0.6931472, %v6467_v27  ;;  %6492 = vlog2.f32 %v4066_v19 }
 0xd4f   : > { %v6471_v26 = vpop.eup %6470  ;;  %v4069_v55 = vadd.f32 1.0, %v6469_v41  ;;  %6494 = vpow2.f32 %v4058_v16 }
 0xd50   : > { %v6473_v22 = vpop.eup %6472  ;;  %v4077_v59 = vmul.f32 0.6931472, %v6471_v26  ;;  %6496 = vpow2.f32 %v4056_v38  ;;  %v4109_v36 = vadd.f32 %v4079_v53, %v3981_v40  ;;  %v3988_v40 = vmax.f32 %v7724_v31, 0.0 }
 0xd51   : > { %v6475_v0 = vpop.eup %6474  ;;  %6498 = vlog2.f32 %v4069_v55  ;;  %v4068_v3 = vadd.f32 1.0, %v6473_v22 }
 0xd52   : > { %v6477_v45 = vpop.eup %6476  ;;  %v4108_v57 = vadd.f32 %v4077_v59, %v3980_v60  ;;  %v4083_v7 = vmul.f32 0.6931472, %v6475_v0  ;;  %v5273_v21 = vadd.f32 -0.6931472, %v4109_v36 }
 0xd53   : > { %6500 = vlog2.f32 %v4068_v3  ;;  %v4071_v54 = vadd.f32 1.0, %v6477_v45 }
 0xd54   : > { %v6479_v5 = vpop.eup %6478  ;;  %v5272_v10 = vadd.f32 -0.6931472, %v4108_v57  ;;  %v4111_v18 = vadd.f32 %v4083_v7, %v3983_v13 }
 0xd55   : > { %v6481_v14 = vpop.eup %6480  ;;  %v4081_v20 = vmul.f32 0.6931472, %v6479_v5  ;;  %6502 = vlog2.f32 %v4071_v54  ;;  %v3990_v54 = vmax.f32 %v7732_v1, 0.0 }
 0xd56   : > { %v6483_v48 = vpop.eup %6482  ;;  %v4087_v11 = vmul.f32 0.6931472, %v6481_v14  ;;  %6101 = vmatprep.mubr.msk.f32.mxu0 %vm888_vm0, %v5272_v10  ;;  %v5275_v46 = vadd.f32 -0.6931472, %v4111_v18 }
 0xd57   : > { %v6485_v61 = vpop.eup %6484  ;;  %v4110_v32 = vadd.f32 %v4081_v20, %v3982_v24  ;;  %v4070_v29 = vadd.f32 1.0, %v6483_v48  ;;  %6102 = vmatmul.mubr.msk.f32.vlgmr.msra.gmra.mxu0 %vm888_vm0, %v5273_v21  ;;  %v3993_v21 = vmax.f32 %v7737_v8, 0.0  ;;  %v3992_v20 = vmax.f32 %v7740_v4, 0.0 }
 0xd58   : > { %v6487_v6 = vpop.eup %6486  ;;  %v4073_v30 = vadd.f32 1.0, %v6485_v61  ;;  %v4113_v49 = vadd.f32 %v4087_v11, %v3985_v33 }
 0xd59   : > { %v6489_v39 = vpop.eup %6488  ;;  %v5274_v42 = vadd.f32 -0.6931472, %v4110_v32  ;;  %v4085_v17 = vmul.f32 0.6931472, %v6487_v6  ;;  %6504 = vlog2.f32 %v4070_v29  ;;  %v3995_v29 = vmax.f32 %v7745_v37, 0.0  ;;  %v4348_v37 = vld [vmem:[%s8020_s29 + $0x10] sm:$0xff] }
 0xd5a   : > { %v6491_v44 = vpop.eup %6490  ;;  %v4091_v23 = vmul.f32 0.6931472, %v6489_v39  ;;  %6506 = vlog2.f32 %v4073_v30  ;;  %v5277_v19 = vadd.f32 -0.6931472, %v4113_v49  ;;  %v3994_v6 = vmax.f32 %v7748_v15, 0.0  ;;  %6127 = vmatprep.subr.mxu1 %v4348_v37  ;;  %v4347_v15 = vld [vmem:[%s8020_s29 + $0x8] sm:$0xff] }
 0xd5b   : > { %v6493_v62 = vpop.eup %6492  ;;  %v4112_v35 = vadd.f32 %v4085_v17, %v3984_v63  ;;  %v4072_v50 = vadd.f32 1.0, %v6491_v44  ;;  %6104 = vmatprep.mubr.msk.f32.mxu0 %vm888_vm0, %v5274_v42  ;;  %6128 = vmatpush3.msra.mxu1 %v4348_v37  ;;  %v4346_v17 = vld [vmem:[%s8020_s29] sm:$0xff] }
 0xd5c   : > { %v6495_v25 = vpop.eup %6494  ;;  %v4089_v34 = vmul.f32 0.6931472, %v6493_v62  ;;  %6105 = vmatmul.mubr.msk.f32.gmra.mxu0 %vm888_vm0, %v5275_v46  ;;  %v4115_v27 = vadd.f32 %v4091_v23, %v3987_v12  ;;  %6129 = vmatprep.subr.mxu1 %v4347_v15  ;;  %v5289_v46 = vld [vmem:[%s8018_s27 + $0x2] ss:$0 sm:$0xff] }
 0xd5d   : > { %v6497_v43 = vpop.eup %6496  ;;  %v5276_v47 = vadd.f32 -0.6931472, %v4112_v35  ;;  %6508 = vlog2.f32 %v4072_v50  ;;  %v4075_v16 = vadd.f32 1.0, %v6495_v25  ;;  %6130 = vmatpush3.msra.mxu1 %v4347_v15 }
 0xd5e   : > { %v6499_v2 = vpop.eup %6498  ;;  %v4114_v38 = vadd.f32 %v4089_v34, %v3986_v52  ;;  %v4074_v41 = vadd.f32 1.0, %v6497_v43  ;;  %v5279_v60 = vadd.f32 -0.6931472, %v4115_v27  ;;  %6131 = vmatprep.subr.mxu1 %v4346_v17 }
 0xd5f   : > { %v4095_v53 = vmul.f32 0.6931472, %v6499_v2  ;;  %6510 = vlog2.f32 %v4075_v16  ;;  %6107 = vmatprep.mubr.msk.f32.mxu0 %vm888_vm0, %v5276_v47  ;;  %6132 = vmatpush3.msra.mxu1 %v4346_v17 }
 0xd60   : > { %v6501_v26 = vpop.eup %6500  ;;  %v5278_v56 = vadd.f32 -0.6931472, %v4114_v38  ;;  %6512 = vlog2.f32 %v4074_v41  ;;  %6108 = vmatmul.mubr.msk.f32.gmra.mxu0 %vm888_vm0, %v5277_v19 }
 0xd61   : > { %v4093_v55 = vmul.f32 0.6931472, %v6501_v26  ;;  %v4117_v59 = vadd.f32 %v4095_v53, %v3989_v58 }
 0xd62   : > { %v6503_v22 = vpop.eup %6502  ;;  %6110 = vmatprep.mubr.msk.f32.mxu0 %vm888_vm0, %v5278_v56 }
 0xd63   : > { %v4116_v0 = vadd.f32 %v4093_v55, %v3988_v40  ;;  %v4099_v36 = vmul.f32 0.6931472, %v6503_v22  ;;  %v5281_v57 = vadd.f32 -0.6931472, %v4117_v59 }
 0xd64   : > { %6111 = vmatmul.mubr.msk.f32.gmra.mxu0 %vm888_vm0, %v5279_v60 }
 0xd65   : > { %v5280_v3 = vadd.f32 -0.6931472, %v4116_v0  ;;  %v4119_v31 = vadd.f32 %v4099_v36, %v3991_v9 }
 0xd66   : > { %v6505_v45 = vpop.eup %6504 }
 0xd67   : > { %v6507_v7 = vpop.eup %6506  ;;  %v4097_v5 = vmul.f32 0.6931472, %v6505_v45  ;;  %6113 = vmatprep.mubr.msk.f32.mxu0 %vm888_vm0, %v5280_v3  ;;  %v5283_v28 = vadd.f32 -0.6931472, %v4119_v31 }
 0xd68   : > { %v4103_v10 = vmul.f32 0.6931472, %v6507_v7  ;;  %6114 = vmatmul.mubr.msk.f32.gmra.mxu0 %vm888_vm0, %v5281_v57 }
 0xd69   : > { %v4118_v13 = vadd.f32 %v4097_v5, %v3990_v54 }
 0xd6a   : > { %v6509_v14 = vpop.eup %6508  ;;  %v4121_v11 = vadd.f32 %v4103_v10, %v3993_v21 }
 0xd6b   : > { %v5282_v24 = vadd.f32 -0.6931472, %v4118_v13  ;;  %v4101_v48 = vmul.f32 0.6931472, %v6509_v14 }
 0xd6c   : > { %v6511_v18 = vpop.eup %6510  ;;  %v5285_v30 = vadd.f32 -0.6931472, %v4121_v11 }
 0xd6d   : > { %v6513_v61 = vpop.eup %6512  ;;  %v4120_v1 = vadd.f32 %v4101_v48, %v3992_v20  ;;  %v4107_v32 = vmul.f32 0.6931472, %v6511_v18  ;;  %6116 = vmatprep.mubr.msk.f32.mxu0 %vm888_vm0, %v5282_v24  ;;  %v7819_v20 = vld [vmem:[%s8021_s4] ss:$0 sm:$0xff] }
 0xd6e   : > { %v4105_v33 = vmul.f32 0.6931472, %v6513_v61  ;;  %6117 = vmatmul.mubr.msk.f32.gmra.mxu0 %vm888_vm0, %v5283_v28 }
 0xd6f   : > { %v5284_v8 = vadd.f32 -0.6931472, %v4120_v1  ;;  %v4123_v39 = vadd.f32 %v4107_v32, %v3995_v29 }
 0xd70   : > { %v4122_v4 = vadd.f32 %v4105_v33, %v3994_v6 }
 0xd71   : > { %6119 = vmatprep.mubr.msk.f32.mxu0 %vm888_vm0, %v5284_v8  ;;  %v5287_v63 = vadd.f32 -0.6931472, %v4123_v39 }
 0xd72   : > { %v5286_v42 = vadd.f32 -0.6931472, %v4122_v4  ;;  %6120 = vmatmul.mubr.msk.f32.gmra.mxu0 %vm888_vm0, %v5285_v30 }
 0xd74   : > { %6122 = vmatprep.mubr.msk.f32.mxu0 %vm888_vm0, %v5286_v42 }
 0xd76   : > { %6123 = vmatmul.mubr.msk.f32.gmra.mxu0 %vm888_vm0, %v5287_v63 }
 0xd77   : > { %6189 = vmatprep.mubr.msk.f32.mxu0 %vm6711_vm1, %v6710_v51 }
 0xe17   : > { %v6103_v44 = vpop.f32.mrf.mxu0 }
 0xe18   : > { %v4273_v62 = vadd.f32 %v6103_v44, %v5289_v46 }
 0xe19   : > { %v4267_v49 = vpop.f32.mrf.mxu0 }
 0xe1a   : > { %v4268_v23 = vadd.f32 %v5289_v46, %v4267_v49 }
 0xe1c   : > { %v6106_v35 = vpop.f32.mrf.mxu0  ;;  %6133 = vmatprep.mubr.msk.f32.mxu1 %vm888_vm0, %v4268_v23 }
 0xe1d   : > { %6134 = vmatmul.mubr.msk.f32.vlgmr.msra.gmra.mxu1 %vm888_vm0, %v4273_v62  ;;  %v4283_v12 = vadd.f32 %v6106_v35, %v5289_v46 }
 0xe1e   : > { %v4277_v50 = vpop.f32.mrf.mxu0 }
 0xe1f   : > { %v4278_v25 = vadd.f32 %v5289_v46, %v4277_v50 }
 0xe20   : > { %v6109_v52 = vpop.f32.mrf.mxu0 }
 0xe21   : > { %6136 = vmatprep.mubr.msk.f32.mxu1 %vm888_vm0, %v4278_v25  ;;  %v4293_v47 = vadd.f32 %v6109_v52, %v5289_v46 }
 0xe22   : > { %v4287_v34 = vpop.f32.mrf.mxu0  ;;  %6137 = vmatmul.mubr.msk.f32.gmra.mxu1 %vm888_vm0, %v4283_v12 }
 0xe23   : > { %v4288_v43 = vadd.f32 %v5289_v46, %v4287_v34 }
 0xe24   : > { %v6112_v16 = vpop.f32.mrf.mxu0 }
 0xe25   : > { %6139 = vmatprep.mubr.msk.f32.mxu1 %vm888_vm0, %v4288_v43  ;;  %v4303_v27 = vadd.f32 %v6112_v16, %v5289_v46 }
 0xe26   : > { %v4297_v2 = vpop.f32.mrf.mxu0  ;;  %6140 = vmatmul.mubr.msk.f32.gmra.mxu1 %vm888_vm0, %v4293_v47 }
 0xe27   : > { %v4298_v19 = vadd.f32 %v5289_v46, %v4297_v2 }
 0xe28   : > { %v6115_v38 = vpop.f32.mrf.mxu0 }
 0xe29   : > { %6142 = vmatprep.mubr.msk.f32.mxu1 %vm888_vm0, %v4298_v19  ;;  %v4313_v26 = vadd.f32 %v6115_v38, %v5289_v46 }
 0xe2a   : > { %v4307_v41 = vpop.f32.mrf.mxu0  ;;  %6143 = vmatmul.mubr.msk.f32.gmra.mxu1 %vm888_vm0, %v4303_v27 }
 0xe2b   : > { %v4308_v53 = vadd.f32 %v5289_v46, %v4307_v41 }
 0xe2d   : > { %6145 = vmatprep.mubr.msk.f32.mxu1 %vm888_vm0, %v4308_v53 }
 0xe2e   : > { %v6118_v56 = vpop.f32.mrf.mxu0  ;;  %6146 = vmatmul.mubr.msk.f32.gmra.mxu1 %vm888_vm0, %v4313_v26 }
 0xe2f   : > { %v4323_v55 = vadd.f32 %v6118_v56, %v5289_v46 }
 0xe30   : > { %v4317_v58 = vpop.f32.mrf.mxu0 }
 0xe31   : > { %v4318_v40 = vadd.f32 %v5289_v46, %v4317_v58 }
 0xe32   : > { %v6121_v22 = vpop.f32.mrf.mxu0 }
 0xe33   : > { %6148 = vmatprep.mubr.msk.f32.mxu1 %vm888_vm0, %v4318_v40  ;;  %v4333_v0 = vadd.f32 %v6121_v22, %v5289_v46 }
 0xe34   : > { %v4327_v60 = vpop.f32.mrf.mxu0  ;;  %6149 = vmatmul.mubr.msk.f32.gmra.mxu1 %vm888_vm0, %v4323_v55 }
 0xe35   : > { %v4328_v59 = vadd.f32 %v5289_v46, %v4327_v60 }
 0xe36   : > { %v6124_v36 = vpop.f32.mrf.mxu0 }
 0xe37   : > { %6151 = vmatprep.mubr.msk.f32.mxu1 %vm888_vm0, %v4328_v59  ;;  %v4343_v57 = vadd.f32 %v6124_v36, %v5289_v46 }
 0xe38   : > { %v4337_v3 = vpop.f32.mrf.mxu0  ;;  %6152 = vmatmul.mubr.msk.f32.gmra.mxu1 %vm888_vm0, %v4333_v0 }
 0xe39   : > { %v4338_v45 = vadd.f32 %v5289_v46, %v4337_v3 }
 0xe3b   : > { %6154 = vmatprep.mubr.msk.f32.mxu1 %vm888_vm0, %v4338_v45 }
 0xe3c   : > { %6155 = vmatmul.mubr.msk.f32.gmra.mxu1 %vm888_vm0, %v4343_v57 }
 0xedd   : > { %v6135_v9 = vpop.f32.mrf.mxu1 }
 0xede   : > { %v7832_v29 = vadd.f32 %v6135_v9, %v7819_v20 }
 0xedf   : > { %v7814_v7 = vpop.f32.mrf.mxu1 }
 0xee0   : > { %v4567_v44 = vand.u32 2147483647, %v7832_v29 }
 0xee2   : > { %v6138_v54 = vpop.f32.mrf.mxu1 }
 0xee3   : > { %v7858_v12 = vadd.f32 %v6138_v54, %v7819_v20  ;;  %v4583_v54 = vsub.f32 0.0, %v4567_v44 }
 0xee4   : > { %v4481_v5 = vpop.f32.mrf.mxu1 }
 0xee5   : > { %v7870_v27 = vadd.f32 %v7819_v20, %v4481_v5  ;;  %v4569_v36 = vand.u32 2147483647, %v7858_v12 }
 0xee6   : > { %v6141_v31 = vpop.f32.mrf.mxu1 }
 0xee7   : > { %v7863_v47 = vadd.f32 %v6141_v31, %v7819_v20  ;;  %v4568_v5 = vand.u32 2147483647, %v7870_v27 }
 0xee8   : > { %v4491_v10 = vpop.f32.mrf.mxu1 }
 0xee9   : > { %v7873_v38 = vadd.f32 %v7819_v20, %v4491_v10  ;;  %v4571_v60 = vand.u32 2147483647, %v7863_v47 }
 0xeea   : > { %v6144_v13 = vpop.f32.mrf.mxu1 }
 0xeeb   : > { %v7843_v42 = vadd.f32 %v6144_v13, %v7819_v20  ;;  %v4570_v3 = vand.u32 2147483647, %v7873_v38  ;;  %v4587_v31 = vsub.f32 0.0, %v4571_v60  ;;  %v7883_v13 = vadd.f32 %v7819_v20, %v7814_v7 }
 0xeec   : > { %v4501_v14 = vpop.f32.mrf.mxu1 }
 0xeed   : > { %v7851_v46 = vadd.f32 %v7819_v20, %v4501_v14  ;;  %v4573_v16 = vand.u32 2147483647, %v7843_v42  ;;  %v4586_v14 = vsub.f32 0.0, %v4570_v3 }
 0xeee   : > { %v6147_v21 = vpop.f32.mrf.mxu1 }
 0xeef   : > { %v7825_v28 = vadd.f32 %v6147_v21, %v7819_v20  ;;  %v4572_v26 = vand.u32 2147483647, %v7851_v46  ;;  %v4589_v59 = vsub.f32 0.0, %v4573_v16  ;;  %v4585_v21 = vsub.f32 0.0, %v4569_v36 }
 0xef0   : > { %v4511_v24 = vpop.f32.mrf.mxu1 }
 0xef1   : > { %v4575_v33 = vand.u32 2147483647, %v7825_v28  ;;  %v7839_v8 = vadd.f32 %v7819_v20, %v4511_v24  ;;  %v4588_v45 = vsub.f32 0.0, %v4572_v26  ;;  %v4612_v10 = vmul.f32 1.442695, %v4589_v59 }
 0xef3   : > { %v4591_v23 = vsub.f32 0.0, %v4575_v33  ;;  %v4574_v62 = vand.u32 2147483647, %v7839_v8  ;;  %v4610_v24 = vmul.f32 1.442695, %v4588_v45 }
 0xef4   : > { %v6150_v48 = vpop.f32.mrf.mxu1  ;;  %v4606_v33 = vmul.f32 1.442695, %v4586_v14 }
 0xef5   : > { %v7822_v18 = vadd.f32 %v6150_v48, %v7819_v20  ;;  %v4590_v56 = vsub.f32 0.0, %v4574_v62  ;;  %v4616_v40 = vmul.f32 1.442695, %v4591_v23  ;;  %v4600_v48 = vmul.f32 1.442695, %v4583_v54 }
 0xef6   : > { %v4521_v11 = vpop.f32.mrf.mxu1 }
 0xef7   : > { %v4577_v61 = vand.u32 2147483647, %v7822_v18  ;;  %v7829_v1 = vadd.f32 %v7819_v20, %v4521_v11  ;;  %v4614_v57 = vmul.f32 1.442695, %v4590_v56  ;;  %v4584_v11 = vsub.f32 0.0, %v4568_v5 }
 0xef8   : > { %v6153_v32 = vpop.f32.mrf.mxu1 }
 0xef9   : > { %v7835_v6 = vadd.f32 %v6153_v32, %v7819_v20  ;;  %v4593_v30 = vsub.f32 0.0, %v4577_v61  ;;  %v4576_v39 = vand.u32 2147483647, %v7829_v1  ;;  %v4608_v61 = vmul.f32 1.442695, %v4587_v31 }
 0xefa   : > { %v4531_v4 = vpop.f32.mrf.mxu1  ;;  %v4566_v32 = vand.u32 2147483647, %v7883_v13 }
 0xefb   : > { %v4592_v63 = vsub.f32 0.0, %v4576_v39  ;;  %v4579_v37 = vand.u32 2147483647, %v7835_v6  ;;  %v7847_v15 = vadd.f32 %v7819_v20, %v4531_v4  ;;  %v4620_v35 = vmul.f32 1.442695, %v4593_v30 }
 0xefc   : > { %v6156_v17 = vpop.f32.mrf.mxu1  ;;  %v4604_v30 = vmul.f32 1.442695, %v4585_v21  ;;  %v4602_v4 = vmul.f32 1.442695, %v4584_v11 }
 0xefd   : > { %v7854_v49 = vadd.f32 %v6156_v17, %v7819_v20  ;;  %v4595_v50 = vsub.f32 0.0, %v4579_v37  ;;  %v4618_v52 = vmul.f32 1.442695, %v4592_v63  ;;  %v4578_v34 = vand.u32 2147483647, %v7847_v15 }
 0xefe   : > { %v4541_v25 = vpop.f32.mrf.mxu1  ;;  %6514 = vpow2.f32 %v4620_v35 }
 0xeff   : > { %v4581_v43 = vand.u32 2147483647, %v7854_v49  ;;  %v4624_v2 = vmul.f32 1.442695, %v4595_v50  ;;  %v7867_v19 = vadd.f32 %v7819_v20, %v4541_v25  ;;  %v4594_v41 = vsub.f32 0.0, %v4578_v34 }
 0xf00   : > { %6516 = vpow2.f32 %v4618_v52  ;;  %v4582_v20 = vsub.f32 0.0, %v4566_v32  ;;  %v4565_v31 = vmax.f32 %v7854_v49, 0.0 }
 0xf01   : > { %v4597_v53 = vsub.f32 0.0, %v4581_v43  ;;  %v4580_v58 = vand.u32 2147483647, %v7867_v19  ;;  %v4622_v55 = vmul.f32 1.442695, %v4594_v41  ;;  %6518 = vpow2.f32 %v4624_v2 }
 0xf02   : > { %v4598_v52 = vmul.f32 1.442695, %v4582_v20  ;;  %v4564_v32 = vmax.f32 %v7867_v19, 0.0 }
 0xf03   : > { %v4628_v22 = vmul.f32 1.442695, %v4597_v53  ;;  %v4596_v0 = vsub.f32 0.0, %v4580_v58  ;;  %6520 = vpow2.f32 %v4622_v55 }
 0xf05   : > { %6522 = vpow2.f32 %v4628_v22  ;;  %v4626_v9 = vmul.f32 1.442695, %v4596_v0 }
 0xf06   : > { %6524 = vpow2.f32 %v4616_v40 }
 0xf07   : > { %6526 = vpow2.f32 %v4626_v9 }
 0xf08   : > { %6528 = vpow2.f32 %v4614_v57 }
 0xf09   : > { %6530 = vpow2.f32 %v4612_v10 }
 0xf0a   : > { %6532 = vpow2.f32 %v4610_v24  ;;  %v4563_v24 = vmax.f32 %v7835_v6, 0.0 }
 0xf0b   : > { %v6515_v39 = vpop.eup %6514  ;;  %6534 = vpow2.f32 %v4600_v48 }
 0xf0c   : > { %6536 = vpow2.f32 %v4608_v61  ;;  %v4641_v23 = vadd.f32 1.0, %v6515_v39 }
 0xf0d   : > { %v6517_v63 = vpop.eup %6516  ;;  %6538 = vpow2.f32 %v4606_v33 }
 0xf0e   : > { %v6519_v7 = vpop.eup %6518  ;;  %6540 = vpow2.f32 %v4604_v30  ;;  %v4640_v34 = vadd.f32 1.0, %v6517_v63 }
 0xf0f   : > { %v4643_v17 = vadd.f32 1.0, %v6519_v7  ;;  %6542 = vpow2.f32 %v4602_v4  ;;  %v4562_v4 = vmax.f32 %v7847_v15, 0.0  ;;  %v4560_v15 = vmax.f32 %v7829_v1, 0.0 }
 0xf10   : > { %v6521_v37 = vpop.eup %6520 }
 0xf11   : > { %v4642_v62 = vadd.f32 1.0, %v6521_v37  ;;  %6544 = vlog2.f32 %v4643_v17 }
 0xf12   : > { %v6523_v44 = vpop.eup %6522 }
 0xf13   : > { %v6525_v35 = vpop.eup %6524  ;;  %v4645_v50 = vadd.f32 1.0, %v6523_v44  ;;  %6546 = vlog2.f32 %v4642_v62  ;;  %v4561_v44 = vmax.f32 %v7822_v18, 0.0 }
 0xf14   : > { %v6527_v25 = vpop.eup %6526  ;;  %v4639_v2 = vadd.f32 1.0, %v6525_v35 }
 0xf15   : > { %6548 = vlog2.f32 %v4645_v50  ;;  %v4644_v43 = vadd.f32 1.0, %v6527_v25  ;;  %v6529_v16 = vpop.eup %6528 }
 0xf16   : > { %6550 = vlog2.f32 %v4641_v23  ;;  %v6531_v41 = vpop.eup %6530  ;;  %v4638_v53 = vadd.f32 1.0, %v6529_v16 }
 0xf17   : > { %6552 = vlog2.f32 %v4644_v43  ;;  %v6533_v26 = vpop.eup %6532  ;;  %v4637_v58 = vadd.f32 1.0, %v6531_v41 }
 0xf18   : > { %6554 = vpow2.f32 %v4598_v52  ;;  %v6535_v56 = vpop.eup %6534  ;;  %v4636_v22 = vadd.f32 1.0, %v6533_v26  ;;  %v4558_v26 = vmax.f32 %v7839_v8, 0.0 }
 0xf19   : > { %6556 = vlog2.f32 %v4640_v34  ;;  %v6537_v40 = vpop.eup %6536  ;;  %v4631_v39 = vadd.f32 1.0, %v6535_v56  ;;  %v4559_v34 = vmax.f32 %v7825_v28, 0.0 }
 0xf1a   : > { %6558 = vlog2.f32 %v4639_v2  ;;  %v6539_v55 = vpop.eup %6538  ;;  %v4635_v0 = vadd.f32 1.0, %v6537_v40 }
 0xf1b   : > { %6560 = vlog2.f32 %v4638_v53  ;;  %v6541_v60 = vpop.eup %6540  ;;  %v4634_v3 = vadd.f32 1.0, %v6539_v55 }
 0xf1c   : > { %v6543_v59 = vpop.eup %6542  ;;  %6562 = vlog2.f32 %v4637_v58  ;;  %v4633_v9 = vadd.f32 1.0, %v6541_v60  ;;  %v4557_v58 = vmax.f32 %v7843_v42, 0.0 }
 0xf1d   : > { %6564 = vlog2.f32 %v4636_v22  ;;  %v4632_v21 = vadd.f32 1.0, %v6543_v59 }
 0xf1e   : > { %v6545_v36 = vpop.eup %6544  ;;  %6566 = vlog2.f32 %v4635_v0 }
 0xf1f   : > { %v4673_v5 = vmul.f32 0.6931472, %v6545_v36  ;;  %6568 = vlog2.f32 %v4634_v3  ;;  %v4556_v36 = vmax.f32 %v7851_v46, 0.0  ;;  %v4555_v3 = vmax.f32 %v7863_v47, 0.0 }
 0xf20   : > { %v6547_v45 = vpop.eup %6546  ;;  %6570 = vlog2.f32 %v4633_v9  ;;  %v4553_v46 = vmax.f32 %v7858_v12, 0.0 }
 0xf21   : > { %v4671_v11 = vmul.f32 0.6931472, %v6547_v45  ;;  %v4691_v7 = vadd.f32 %v4673_v5, %v4563_v24  ;;  %6572 = vlog2.f32 %v4632_v21 }
 0xf22   : > { %v6549_v57 = vpop.eup %6548  ;;  %6574 = vlog2.f32 %v4631_v39 }
 0xf23   : > { %v6551_v54 = vpop.eup %6550  ;;  %v4677_v10 = vmul.f32 0.6931472, %v6549_v57  ;;  %v4690_v23 = vadd.f32 %v4671_v11, %v4562_v4  ;;  %v5336_v25 = vadd.f32 -0.6931472, %v4691_v7 }
 0xf24   : > { %v6553_v14 = vpop.eup %6552  ;;  %v4669_v63 = vmul.f32 0.6931472, %v6551_v54 }
 0xf25   : > { %v6555_v48 = vpop.eup %6554  ;;  %v4693_v61 = vadd.f32 %v4677_v10, %v4565_v31  ;;  %v4675_v33 = vmul.f32 0.6931472, %v6553_v14  ;;  %v5335_v16 = vadd.f32 -0.6931472, %v4690_v23  ;;  %v4554_v10 = vmax.f32 %v7873_v38, 0.0 }
 0xf26   : > { %v6557_v30 = vpop.eup %6556  ;;  %v4630_v17 = vadd.f32 1.0, %v6555_v48  ;;  %v4689_v50 = vadd.f32 %v4669_v63, %v4561_v44  ;;  %v4551_v38 = vmax.f32 %v7832_v29, 0.0  ;;  %v4550_v63 = vmax.f32 %v7883_v13, 0.0  ;;  %v4788_v13 = vld [vmem:[%s8022_s16 + $0x18] sm:$0xff]  ;;  %v4786_v44 = vld [vmem:[%s8022_s16 + $0x8] sm:$0xff] }
 0xf27   : > { %v5338_v49 = vadd.f32 -0.6931472, %v4693_v61  ;;  %v4692_v20 = vadd.f32 %v4675_v33, %v4564_v32  ;;  %v6559_v37 = vpop.eup %6558  ;;  %v4667_v6 = vmul.f32 0.6931472, %v6557_v30  ;;  %v4552_v32 = vmax.f32 %v7870_v27, 0.0 }
 0xf28   : > { %v6561_v19 = vpop.eup %6560  ;;  %v4665_v35 = vmul.f32 0.6931472, %v6559_v37  ;;  %6576 = vlog2.f32 %v4630_v17  ;;  %v5334_v1 = vadd.f32 -0.6931472, %v4689_v50  ;;  %v4710_v37 = vld [vmem:[%s655_s26] sm:$0x1] }
 0xf29   : > { %v5337_v62 = vadd.f32 -0.6931472, %v4692_v20  ;;  %6158 = vmatpush3.msra.mxu0 %v5338_v49  ;;  %v6563_v52 = vpop.eup %6562  ;;  %v4663_v18 = vmul.f32 0.6931472, %v6561_v19  ;;  %v4688_v43 = vadd.f32 %v4667_v6, %v4560_v15  ;;  %v4787_v17 = vld [vmem:[%s8022_s16 + $0x10] sm:$0xff]  ;;  %v4785_v6 = vld [vmem:[%s8022_s16] sm:$0xff] }
 0xf2a   : > { %6159 = vmatprep.subr.mxu0 %v6710_v51  ;;  %v6565_v2 = vpop.eup %6564  ;;  %v4661_v41 = vmul.f32 0.6931472, %v6563_v52  ;;  %v4687_v53 = vadd.f32 %v4665_v35, %v4559_v34  ;;  %v4782_v23 = vsel %vm4781_vm4, %v4710_v37, 0.0  ;;  %v4789_v35 = vld [vmem:[#allocation2] sm:$0x1] }
 0xf2b   : > { %6160 = vmatpush3.msra.mxu0 %v5337_v62  ;;  %v6567_v56 = vpop.eup %6566  ;;  %v4659_v40 = vmul.f32 0.6931472, %v6565_v2  ;;  %v4686_v55 = vadd.f32 %v4663_v18, %v4558_v26  ;;  %v5333_v22 = vadd.f32 -0.6931472, %v4688_v43  ;;  %4783 = vadd.xlane.f32.xlu0 %v4782_v23 }
 0xf2c   : > { %6161 = vmatprep.subr.mxu0 %v6710_v51  ;;  %v6569_v28 = vpop.eup %6568  ;;  %v4657_v59 = vmul.f32 0.6931472, %v6567_v56  ;;  %v4685_v0 = vadd.f32 %v4661_v41, %v4557_v58  ;;  %v5332_v8 = vadd.f32 -0.6931472, %v4687_v53 }
 0xf2d   : > { %6162 = vmatpush3.msra.mxu0 %v5336_v25  ;;  %v6571_v60 = vpop.eup %6570  ;;  %v4655_v45 = vmul.f32 0.6931472, %v6569_v28  ;;  %v4684_v57 = vadd.f32 %v4659_v40, %v4556_v36  ;;  %v5331_v42 = vadd.f32 -0.6931472, %v4686_v55 }
 0xf2e   : > { %6163 = vmatprep.subr.mxu0 %v6710_v51  ;;  %v6573_v9 = vpop.eup %6572  ;;  %v4653_v5 = vmul.f32 0.6931472, %v6571_v60  ;;  %v4683_v31 = vadd.f32 %v4657_v59, %v4555_v3  ;;  %v5330_v14 = vadd.f32 -0.6931472, %v4685_v0 }
 0xf2f   : > { %6164 = vmatpush3.msra.mxu0 %v5335_v16  ;;  %v6575_v54 = vpop.eup %6574  ;;  %v4651_v21 = vmul.f32 0.6931472, %v6573_v9  ;;  %v4682_v47 = vadd.f32 %v4655_v45, %v4554_v10  ;;  %v5329_v24 = vadd.f32 -0.6931472, %v4684_v57 }
 0xf30   : > { %6165 = vmatprep.subr.mxu0 %v6710_v51  ;;  %v4649_v11 = vmul.f32 0.6931472, %v6575_v54  ;;  %v4681_v61 = vadd.f32 %v4653_v5, %v4553_v46  ;;  %v5328_v33 = vadd.f32 -0.6931472, %v4683_v31 }
 0xf31   : > { %6166 = vmatpush3.msra.mxu0 %v5334_v1  ;;  %v4680_v39 = vadd.f32 %v4651_v21, %v4552_v32  ;;  %v5327_v12 = vadd.f32 -0.6931472, %v4682_v47 }
 0xf32   : > { %6167 = vmatprep.subr.mxu0 %v6710_v51  ;;  %v4679_v4 = vadd.f32 %v4649_v11, %v4551_v38  ;;  %v5326_v7 = vadd.f32 -0.6931472, %v4681_v61 }
 0xf33   : > { %6168 = vmatpush3.msra.mxu0 %v5333_v22  ;;  %v5325_v49 = vadd.f32 -0.6931472, %v4680_v39 }
 0xf34   : > { %6169 = vmatprep.subr.mxu0 %v6710_v51  ;;  %v5324_v29 = vadd.f32 -0.6931472, %v4679_v4 }
 0xf35   : > { %6170 = vmatpush3.msra.mxu0 %v5332_v8  ;;  %v6577_v48 = vpop.eup %6576 }
 0xf36   : > { %6171 = vmatprep.subr.mxu0 %v6710_v51  ;;  %v4647_v30 = vmul.f32 0.6931472, %v6577_v48 }
 0xf37   : > { %6172 = vmatpush3.msra.mxu0 %v5331_v42 }
 0xf38   : > { %6173 = vmatprep.subr.mxu0 %v6710_v51  ;;  %v4678_v27 = vadd.f32 %v4647_v30, %v4550_v63 }
 0xf39   : > { %6174 = vmatpush3.msra.mxu0 %v5330_v14 }
 0xf3a   : > { %6175 = vmatprep.subr.mxu0 %v6710_v51  ;;  %v5323_v20 = vadd.f32 -0.6931472, %v4678_v27 }
 0xf3b   : > { %6176 = vmatpush3.msra.mxu0 %v5329_v24 }
 0xf3c   : > { %6177 = vmatprep.subr.mxu0 %v6710_v51 }
 0xf3d   : > { %6178 = vmatpush3.msra.mxu0 %v5328_v33 }
 0xf3e   : > { %6179 = vmatprep.subr.mxu0 %v6710_v51 }
 0xf3f   : > { %6180 = vmatpush3.msra.mxu0 %v5327_v12 }
 0xf40   : > { %6181 = vmatprep.subr.mxu0 %v6710_v51 }
 0xf41   : > { %6182 = vmatpush3.msra.mxu0 %v5326_v7 }
 0xf42   : > { %6183 = vmatprep.subr.mxu0 %v6710_v51 }
 0xf43   : > { %6184 = vmatpush3.msra.mxu0 %v5325_v49 }
 0xf44   : > { %6185 = vmatprep.subr.mxu0 %v6710_v51 }
 0xf45   : > { %6186 = vmatpush3.msra.mxu0 %v5324_v29 }
 0xf46   : > { %6187 = vmatprep.subr.mxu0 %v6710_v51 }
 0xf47   : > { %6188 = vmatpush3.msra.mxu0 %v5323_v20 }
 0xf48   : > { %6190 = vmatmul.mubr.f32.vlgmr.msra.gmra.mxu0 %v4710_v37  ;;  %6192 = vmatprep.subr.mxu0 %v6710_v51 }
 0xf49   : > { %6193 = vmatpush3.msra.mxu0 %v4788_v13  ;;  %6200 = vmatprep.mubr.msk.f32.mxu0 %vm6711_vm1, %v6710_v51  ;;  %vm4864_vm1 = vcmask 0  }
 0xf4a   : > { %6194 = vmatprep.subr.mxu0 %v6710_v51 }
 0xf4b   : > { %6195 = vmatpush3.msra.mxu0 %v4787_v17 }
 0xf4c   : > { %6196 = vmatprep.subr.mxu0 %v6710_v51 }
 0xf4d   : > { %6197 = vmatpush3.msra.mxu0 %v4786_v44 }
 0xf4e   : > { %6198 = vmatprep.subr.mxu0 %v6710_v51 }
 0xf4f   : > { %6199 = vmatpush3.msra.mxu0 %v4785_v6 }
 0xfb4   : > { %v4784_v50 = vpop.xlane.xlu0 %4783 }
 0xfb5   : > { %v4790_v15 = vmul.f32 %v4789_v35, %v4784_v50 }
0x1008   : > { %v4777_v62 = vpop.f32.mrf.mxu0 }
0x1009   : > { %6201 = vmatmul.mubr.msk.f32.vlgmr.msra.gmra.mxu0 %vm888_vm0, %v4777_v62 }
0x100a   : > { %v6191_v19 = vpop.f32.mrf.mxu0 }
0x10c9   : > { %v4860_v51 = vpop.f32.mrf.mxu0 }
0x10ca   : > { %v4861_v25 = vadd.f32 %v4860_v51, %v4790_v15 }
0x10cb   : > { %v6202_v52 = vpop.f32.mrf.mxu0 }
0x10cc   : > { %4865 = vst.msk [vmem:[%s749_s20] sm:$0x1] %vm4864_vm1, %v4861_v25 }
0x10cd PF: > { %s8024_s25 = sld [smem:[#allocation12_spill]]  ;;  %s8027_s23 = smov %s6694_s24 }
0x10ce   : > { %s8025_s2 = sld [smem:[#allocation11_spill]] }
0x10cf   : > { %s8026_s14 = sld [smem:[#allocation13_spill]] }
0x10d3   : > { %p35_p6 = scmp.ge.s32.totalorder %s8024_s25, 4  }
0x10d4   : > { %s8028_s24 = smov %s8025_s2 }
0x10d5   : > { %s8029_s2 = smov %s8026_s14  ;;  %37 = sbr.rel (!%p35_p6) target bundleno = 17 (0x11), region = 186 }
0x10da   :  { %4883 = vsyncpa [#allocation4], 1 }
0x10db   :  { %4885 = vsyncpa [#allocation4 + $0x1], 1 }
0x10dc   :  { %4886 = vsyncpa [#allocation6], 1 }
0x10dd   :  { %4888 = vsyncpa [#allocation6 + $0x1], 1 }

</bundles_post_ra>
